<compile_context>
chip_gen: v5e
topology: v5e:2x2
jax: 0.10.0
libtpu: 0.0.40
codegen_flags: <defaults>
</compile_context>

<pallas_src>
import functools

import jax
import jax.numpy as jnp
from jax.experimental import pallas as pl
from jax.experimental.pallas import tpu as pltpu


def _round_up(x, m):
    return ((x + m - 1) // m) * m


def _pick_tile_m(n):
    # v5e's MXU is 4x128x128, so 128-row tiles fill it exactly and halve VMEM;
    # v6e/v7x prefer 256.  Small (padded) graphs use 128 so the grid has >= 2
    # steps (double-buffered pipelining / 2 TCs on v7x).
    try:
        kind = jax.devices()[0].device_kind.lower()
        prefer = 128 if ("v5 lite" in kind or "v5e" in kind) else 256
    except Exception:  # pragma: no cover
        prefer = 256
    if n < 2 * prefer:
        return 128
    return prefer


# Use the single fully-fused call while the padded working set comfortably fits
# the default 32 MiB scoped VMEM (and v7x's 64 MiB physical VMEM).
_FUSED_MAX_N = 1024


# --------------------------------------------------------------------------
# Parameter preparation (one-time, outside the forward path)
# --------------------------------------------------------------------------

def prepare_params(params):
    """Pad weights/biases to lane-dense widths and cast weights to bf16."""
    W0, b0, W1, b1 = params
    F0_in, F0_out = W0.shape          # 1433, 140
    F1_in, F1_out = W1.shape          # 140, 7
    K0 = _round_up(F0_in, 128)        # 1536
    H = _round_up(F0_out, 128)        # 256
    O = _round_up(F1_out, 128)        # 128
    W0p = jnp.zeros((K0, H), jnp.bfloat16).at[:F0_in, :F0_out].set(
        W0.astype(jnp.bfloat16))
    b0p = jnp.zeros((1, H), jnp.float32).at[0, :F0_out].set(b0)
    W1p = jnp.zeros((H, O), jnp.bfloat16).at[:F1_in, :F1_out].set(
        W1.astype(jnp.bfloat16))
    b1p = jnp.zeros((1, O), jnp.float32).at[0, :F1_out].set(b1)
    return W0p, b0p, W1p, b1p


# --------------------------------------------------------------------------
# Kernels
# --------------------------------------------------------------------------

def fused_gcn_kernel(a_ref, x_ref, w0_ref, b0_ref, w1_ref, b1_ref, o_ref):
    """Whole 2-layer forward in one kernel (small-graph path, everything in VMEM).

    y = relu(A @ relu(A @ (X @ W0) + b0) @ W1 + b1), computed as
    XW0 = X@W0 ; H = relu(A@XW0 + b0) ; XW1 = H@W1 ; Y = relu(A@XW1 + b1).
    """
    a = a_ref[...]                                               # (Np, Np) bf16
    xw0 = jnp.dot(x_ref[...], w0_ref[...],
                  preferred_element_type=jnp.float32)            # (Np, H) f32
    h = jnp.maximum(
        jnp.dot(a, xw0.astype(jnp.bfloat16),
                preferred_element_type=jnp.float32) + b0_ref[...], 0.0)
    xw1 = jnp.dot(h.astype(jnp.bfloat16), w1_ref[...],
                  preferred_element_type=jnp.float32)            # (Np, O) f32
    y = jnp.maximum(
        jnp.dot(a, xw1.astype(jnp.bfloat16),
                preferred_element_type=jnp.float32) + b1_ref[...], 0.0)
    o_ref[...] = y.astype(o_ref.dtype)


def xw_kernel(x_ref, w_ref, o_ref):
    # (tile_m, K) @ (K, H) -> (tile_m, H)
    o_ref[...] = jnp.dot(x_ref[...], w_ref[...],
                         preferred_element_type=jnp.float32).astype(o_ref.dtype)


def agg_ft_kernel(a_ref, xw_ref, b_ref, w2_ref, o_ref):
    # Fused layer-1 aggregation + layer-2 feature transform:
    # o = relu(a @ xw + b) @ w2
    h = jnp.dot(a_ref[...], xw_ref[...],
                preferred_element_type=jnp.float32) + b_ref[...]
    h = jnp.maximum(h, 0.0).astype(jnp.bfloat16)
    o_ref[...] = jnp.dot(h, w2_ref[...],
                         preferred_element_type=jnp.float32).astype(o_ref.dtype)


def agg_kernel(a_ref, xw_ref, b_ref, o_ref):
    # o = relu(a @ xw + b)
    y = jnp.dot(a_ref[...], xw_ref[...],
                preferred_element_type=jnp.float32) + b_ref[...]
    o_ref[...] = jnp.maximum(y, 0.0).astype(o_ref.dtype)


# --------------------------------------------------------------------------
# Wrappers
# --------------------------------------------------------------------------

def _fused_forward(A_pad, X_pad, W0p, b0p, W1p, b1p):
    Np = A_pad.shape[0]
    K0 = X_pad.shape[1]
    H = W0p.shape[1]
    O = W1p.shape[1]
    cost = pl.CostEstimate(
        flops=2 * (Np * K0 * H + Np * Np * H + Np * H * O + Np * Np * O),
        transcendentals=0,
        bytes_accessed=2 * (Np * Np + Np * K0 + K0 * H + H * O)
        + 4 * (H + O + Np * O))
    return pl.pallas_call(
        fused_gcn_kernel,
        out_shape=jax.ShapeDtypeStruct((Np, O), jnp.float32),
        grid_spec=pltpu.PrefetchScalarGridSpec(
            num_scalar_prefetch=0,
            grid=(1,),
            in_specs=[
                pl.BlockSpec((Np, Np), lambda i: (0, 0)),   # A (resident)
                pl.BlockSpec((Np, K0), lambda i: (0, 0)),   # X (resident)
                pl.BlockSpec((K0, H), lambda i: (0, 0)),    # W0
                pl.BlockSpec((1, H), lambda i: (0, 0)),     # b0
                pl.BlockSpec((H, O), lambda i: (0, 0)),     # W1
                pl.BlockSpec((1, O), lambda i: (0, 0)),     # b1
            ],
            out_specs=pl.BlockSpec((Np, O), lambda i: (0, 0)),
        ),
        compiler_params=pltpu.CompilerParams(
            dimension_semantics=("arbitrary",)),
        cost_estimate=cost,
    )(A_pad, X_pad, W0p, b0p, W1p, b1p)


def _tiled_forward(A_pad, X_pad, W0p, b0p, W1p, b1p, tile_m):
    Np = A_pad.shape[0]
    K0 = X_pad.shape[1]
    H = W0p.shape[1]
    O = W1p.shape[1]
    grid = (Np // tile_m,)
    parallel = pltpu.CompilerParams(dimension_semantics=("parallel",))

    # Call 1: XW0 = X @ W0 (row-tiled; W0 resident).
    xw0 = pl.pallas_call(
        xw_kernel,
        out_shape=jax.ShapeDtypeStruct((Np, H), jnp.bfloat16),
        grid_spec=pltpu.PrefetchScalarGridSpec(
            num_scalar_prefetch=0, grid=grid,
            in_specs=[pl.BlockSpec((tile_m, K0), lambda i: (i, 0)),
                      pl.BlockSpec((K0, H), lambda i: (0, 0))],
            out_specs=pl.BlockSpec((tile_m, H), lambda i: (i, 0))),
        compiler_params=parallel,
        cost_estimate=pl.CostEstimate(
            flops=2 * Np * K0 * H, transcendentals=0,
            bytes_accessed=2 * (Np * K0 + K0 * H + Np * H)),
    )(X_pad, W0p)

    # Call 2: XW1 = relu(A @ XW0 + b0) @ W1 (row-tiled; XW0 / W1 resident).
    xw1 = pl.pallas_call(
        agg_ft_kernel,
        out_shape=jax.ShapeDtypeStruct((Np, O), jnp.bfloat16),
        grid_spec=pltpu.PrefetchScalarGridSpec(
            num_scalar_prefetch=0, grid=grid,
            in_specs=[pl.BlockSpec((tile_m, Np), lambda i: (i, 0)),
                      pl.BlockSpec((Np, H), lambda i: (0, 0)),
                      pl.BlockSpec((1, H), lambda i: (0, 0)),
                      pl.BlockSpec((H, O), lambda i: (0, 0))],
            out_specs=pl.BlockSpec((tile_m, O), lambda i: (i, 0))),
        compiler_params=parallel,
        cost_estimate=pl.CostEstimate(
            flops=2 * (Np * Np * H + Np * H * O), transcendentals=0,
            bytes_accessed=2 * (Np * Np + Np * H + H * O + Np * O) + 4 * H),
    )(A_pad, xw0, b0p, W1p)

    # Call 3: Y = relu(A @ XW1 + b1) (row-tiled; XW1 resident).
    y = pl.pallas_call(
        agg_kernel,
        out_shape=jax.ShapeDtypeStruct((Np, O), jnp.float32),
        grid_spec=pltpu.PrefetchScalarGridSpec(
            num_scalar_prefetch=0, grid=grid,
            in_specs=[pl.BlockSpec((tile_m, Np), lambda i: (i, 0)),
                      pl.BlockSpec((Np, O), lambda i: (0, 0)),
                      pl.BlockSpec((1, O), lambda i: (0, 0))],
            out_specs=pl.BlockSpec((tile_m, O), lambda i: (i, 0))),
        compiler_params=parallel,
        cost_estimate=pl.CostEstimate(
            flops=2 * Np * Np * O, transcendentals=0,
            bytes_accessed=2 * (Np * Np + Np * O) + 4 * (O + Np * O)),
    )(A_pad, xw1, b1p)
    return y


@functools.partial(jax.jit, static_argnames=("f_out", "force_tiled"))
def gcn_forward(A, X, W0p, b0p, W1p, b1p, *, f_out, force_tiled=False):
    """relu(A @ relu(A @ X @ W0 + b0) @ W1 + b1) with padded/bf16 params."""
    N = A.shape[0]
    F_in = X.shape[1]
    K0 = W0p.shape[0]

    use_fused = (not force_tiled) and (_round_up(N, 128) <= _FUSED_MAX_N)
    if use_fused:
        Np = _round_up(N, 128)
    else:
        tile_m = _pick_tile_m(N)
        Np = _round_up(N, tile_m)

    # Zero-pad A (rows and cols) and X (rows, feature cols) -> padded columns of
    # A are zero, so padded rows never contaminate real output rows; padded
    # output rows/cols are sliced off below.
    A_pad = jnp.zeros((Np, Np), jnp.bfloat16).at[:N, :N].set(
        A.astype(jnp.bfloat16))
    X_pad = jnp.zeros((Np, K0), jnp.bfloat16).at[:N, :F_in].set(
        X.astype(jnp.bfloat16))

    if use_fused:
        y = _fused_forward(A_pad, X_pad, W0p, b0p, W1p, b1p)
    else:
        y = _tiled_forward(A_pad, X_pad, W0p, b0p, W1p, b1p, tile_m)
    return y[:N, :f_out]


def init_params(key):
    # Mirrors torch.rand(in, out)/10 and torch.rand(out)/10.
    k0, k1, k2, k3 = jax.random.split(key, 4)
    W0 = jax.random.uniform(k0, (1433, 140), jnp.float32) / 10.0
    b0 = jax.random.uniform(k1, (140,), jnp.float32) / 10.0
    W1 = jax.random.uniform(k2, (140, 7), jnp.float32) / 10.0
    b1 = jax.random.uniform(k3, (7,), jnp.float32) / 10.0
    return (W0, b0, W1, b1)


def _make_graph(key_a, key_x, n, f_in):
    # Row-normalized random adjacency with self loops (typical GCN input).
    a_raw = (jax.random.uniform(key_a, (n, n), jnp.float32) < 0.05).astype(
        jnp.float32)
    a_raw = a_raw + jnp.eye(n, dtype=jnp.float32)
    a = a_raw / jnp.sum(a_raw, axis=1, keepdims=True)
    x = jax.random.uniform(key_x, (n, f_in), jnp.float32)
    return a, x


def _reference(A, X, params):
    W0, b0, W1, b1 = params
    h = jnp.maximum(A @ X @ W0 + b0, 0.0)
    return jnp.maximum(A @ h @ W1 + b1, 0.0)


if __name__ == "__main__":
    key = jax.random.PRNGKey(0)
    k_a, k_x, k_p = jax.random.split(key, 3)

    F_IN = 1433
    params = init_params(k_p)
    W0, b0, W1, b1 = params
    W0p, b0p, W1p, b1p = prepare_params(params)   # one-time padded/bf16 params
    F_OUT = W1.shape[1]

    # --- Small graph: single fully-fused pallas_call path ---------------------
    N = 128
    A, X = _make_graph(k_a, k_x, N, F_IN)
    out = gcn_forward(A, X, W0p, b0p, W1p, b1p, f_out=F_OUT)
    out = jax.block_until_ready(out)
    ref = _reference(A, X, params)
    assert out.shape == (N, F_OUT)
    assert jnp.allclose(out, ref, rtol=2e-2, atol=1e-2), float(
        jnp.max(jnp.abs(out - ref)))

    # --- Non-divisible N: exercise the padded, row-tiled multi-call path ------
    N2 = 200
    k_a2, k_x2 = jax.random.split(k_a)
    A2, X2 = _make_graph(k_a2, k_x2, N2, F_IN)
    out2 = jax.block_until_ready(
        gcn_forward(A2, X2, W0p, b0p, W1p, b1p, f_out=F_OUT, force_tiled=True))
    ref2 = _reference(A2, X2, params)
    assert out2.shape == (N2, F_OUT)
    assert jnp.allclose(out2, ref2, rtol=2e-2, atol=1e-2), float(
        jnp.max(jnp.abs(out2 - ref2)))

    print("KERNEL_OK")
</pallas_src>

<mosaic_0001>
module attributes {stable_mosaic.version = 11 : i64} {
  func.func @fused_gcn_kernel(%arg0: i32, %arg1: memref<128x128xbf16, #tpu.memory_space<vmem>>, %arg2: memref<128x1536xbf16, #tpu.memory_space<vmem>>, %arg3: memref<1536x256xbf16, #tpu.memory_space<vmem>>, %arg4: memref<1x256xf32, #tpu.memory_space<vmem>>, %arg5: memref<256x128xbf16, #tpu.memory_space<vmem>>, %arg6: memref<1x128xf32, #tpu.memory_space<vmem>>, %arg7: memref<128x128xf32, #tpu.memory_space<vmem>>) attributes {dimension_semantics = [#tpu.dimension_semantics<arbitrary>], iteration_bounds = array<i64: 1>, scalar_prefetch = 0 : i64, scratch_operands = 0 : i64, tpu.core_type = #tpu.core_type<tc>, window_params = [{pipeline_mode = #tpu.pipeline_mode<synchronous>, transform_indices = @transform_0, window_bounds = array<i64: 128, 128>}, {pipeline_mode = #tpu.pipeline_mode<synchronous>, transform_indices = @transform_1, window_bounds = array<i64: 128, 1536>}, {pipeline_mode = #tpu.pipeline_mode<synchronous>, transform_indices = @transform_2, window_bounds = array<i64: 1536, 256>}, {pipeline_mode = #tpu.pipeline_mode<synchronous>, transform_indices = @transform_3, window_bounds = array<i64: 1, 256>}, {pipeline_mode = #tpu.pipeline_mode<synchronous>, transform_indices = @transform_4, window_bounds = array<i64: 256, 128>}, {pipeline_mode = #tpu.pipeline_mode<synchronous>, transform_indices = @transform_5, window_bounds = array<i64: 1, 128>}, {pipeline_mode = #tpu.pipeline_mode<synchronous>, transform_indices = @transform_6, window_bounds = array<i64: 128, 128>}]} {
    %c0 = arith.constant 0 : index
    %c0_0 = arith.constant 0 : index
    %0 = vector.load %arg1[%c0, %c0_0] : memref<128x128xbf16, #tpu.memory_space<vmem>>, vector<128x128xbf16>
    %c0_1 = arith.constant 0 : index
    %c0_2 = arith.constant 0 : index
    %1 = vector.load %arg2[%c0_1, %c0_2] : memref<128x1536xbf16, #tpu.memory_space<vmem>>, vector<128x1536xbf16>
    %c0_3 = arith.constant 0 : index
    %c0_4 = arith.constant 0 : index
    %2 = vector.load %arg3[%c0_3, %c0_4] : memref<1536x256xbf16, #tpu.memory_space<vmem>>, vector<1536x256xbf16>
    %cst = arith.constant dense<0.000000e+00> : vector<128x256xf32>
    %3 = tpu.matmul %1, %2, %cst {dimension_numbers = #tpu.dot_dimension_numbers<[1], [0], [0], [1], [0, 0, 1, 1], [], []>} : vector<128x1536xbf16>, vector<1536x256xbf16>, vector<128x256xf32> -> vector<128x256xf32>
    %4 = arith.truncf %3 : vector<128x256xf32> to vector<128x256xbf16>
    %cst_5 = arith.constant dense<0.000000e+00> : vector<128x256xf32>
    %5 = tpu.matmul %0, %4, %cst_5 {dimension_numbers = #tpu.dot_dimension_numbers<[1], [0], [0], [1], [0, 0, 1, 1], [], []>} : vector<128x128xbf16>, vector<128x256xbf16>, vector<128x256xf32> -> vector<128x256xf32>
    %c0_6 = arith.constant 0 : index
    %c0_7 = arith.constant 0 : index
    %6 = vector.load %arg4[%c0_6, %c0_7] : memref<1x256xf32, #tpu.memory_space<vmem>>, vector<1x256xf32>
    %7 = vector.broadcast %6 : vector<1x256xf32> to vector<128x256xf32>
    %8 = arith.addf %5, %7 : vector<128x256xf32>
    %cst_8 = arith.constant 0.000000e+00 : f32
    %9 = vector.broadcast %cst_8 : f32 to vector<128x256xf32>
    %10 = arith.maximumf %8, %9 : vector<128x256xf32>
    %11 = arith.truncf %10 : vector<128x256xf32> to vector<128x256xbf16>
    %c0_9 = arith.constant 0 : index
    %c0_10 = arith.constant 0 : index
    %12 = vector.load %arg5[%c0_9, %c0_10] : memref<256x128xbf16, #tpu.memory_space<vmem>>, vector<256x128xbf16>
    %cst_11 = arith.constant dense<0.000000e+00> : vector<128x128xf32>
    %13 = tpu.matmul %11, %12, %cst_11 {dimension_numbers = #tpu.dot_dimension_numbers<[1], [0], [0], [1], [0, 0, 1, 1], [], []>} : vector<128x256xbf16>, vector<256x128xbf16>, vector<128x128xf32> -> vector<128x128xf32>
    %14 = arith.truncf %13 : vector<128x128xf32> to vector<128x128xbf16>
    %cst_12 = arith.constant dense<0.000000e+00> : vector<128x128xf32>
    %15 = tpu.matmul %0, %14, %cst_12 {dimension_numbers = #tpu.dot_dimension_numbers<[1], [0], [0], [1], [0, 0, 1, 1], [], []>} : vector<128x128xbf16>, vector<128x128xbf16>, vector<128x128xf32> -> vector<128x128xf32>
    %c0_13 = arith.constant 0 : index
    %c0_14 = arith.constant 0 : index
    %16 = vector.load %arg6[%c0_13, %c0_14] : memref<1x128xf32, #tpu.memory_space<vmem>>, vector<1x128xf32>
    %17 = vector.broadcast %16 : vector<1x128xf32> to vector<128x128xf32>
    %18 = arith.addf %15, %17 : vector<128x128xf32>
    %cst_15 = arith.constant 0.000000e+00 : f32
    %19 = vector.broadcast %cst_15 : f32 to vector<128x128xf32>
    %20 = arith.maximumf %18, %19 : vector<128x128xf32>
    %c0_16 = arith.constant 0 : index
    %c0_17 = arith.constant 0 : index
    %21 = vector.load %arg7[%c0_16, %c0_17] : memref<128x128xf32, #tpu.memory_space<vmem>>, vector<128x128xf32>
    tpu.vector_store %arg7[%c0_16, %c0_17], %20 {strides = array<i32>} : memref<128x128xf32, #tpu.memory_space<vmem>>, vector<128x128xf32>,
    return
  }
  func.func @transform_0(%arg0: i32) -> (i32, i32) {
    %c0_i32 = arith.constant 0 : i32
    %c0_i32_0 = arith.constant 0 : i32
    %c0_i32_1 = arith.constant 0 : i32
    return %c0_i32, %c0_i32_0 : i32, i32
  }
  func.func @transform_1(%arg0: i32) -> (i32, i32) {
    %c0_i32 = arith.constant 0 : i32
    %c0_i32_0 = arith.constant 0 : i32
    %c0_i32_1 = arith.constant 0 : i32
    return %c0_i32, %c0_i32_0 : i32, i32
  }
  func.func @transform_2(%arg0: i32) -> (i32, i32) {
    %c0_i32 = arith.constant 0 : i32
    %c0_i32_0 = arith.constant 0 : i32
    %c0_i32_1 = arith.constant 0 : i32
    return %c0_i32, %c0_i32_0 : i32, i32
  }
  func.func @transform_3(%arg0: i32) -> (i32, i32) {
    %c0_i32 = arith.constant 0 : i32
    %c0_i32_0 = arith.constant 0 : i32
    %c0_i32_1 = arith.constant 0 : i32
    return %c0_i32, %c0_i32_0 : i32, i32
  }
  func.func @transform_4(%arg0: i32) -> (i32, i32) {
    %c0_i32 = arith.constant 0 : i32
    %c0_i32_0 = arith.constant 0 : i32
    %c0_i32_1 = arith.constant 0 : i32
    return %c0_i32, %c0_i32_0 : i32, i32
  }
  func.func @transform_5(%arg0: i32) -> (i32, i32) {
    %c0_i32 = arith.constant 0 : i32
    %c0_i32_0 = arith.constant 0 : i32
    %c0_i32_1 = arith.constant 0 : i32
    return %c0_i32, %c0_i32_0 : i32, i32
  }
  func.func @transform_6(%arg0: i32) -> (i32, i32) {
    %c0_i32 = arith.constant 0 : i32
    %c0_i32_0 = arith.constant 0 : i32
    %c0_i32_1 = arith.constant 0 : i32
    return %c0_i32, %c0_i32_0 : i32, i32
  }
}

</mosaic_0001>

<bundles_post_ra>
// kernel: gcn_forward.1
= control target key start
LH: loop header
LB: loop body
LE: loop exit
PB: predicated region body
PF: predicated region fallthrough
CT: control target
= control target key end

     0   :  { %s7854_s2 = inlined_call_operand.vmem [shape: bf16[1536,256], index: 2, kind: input, shape index: {}]   ;;  %s7855_s1 = inlined_call_operand.vmem [shape: bf16[128,1536], index: 1, kind: input, shape index: {}]   ;;  %s7856_s0 = inlined_call_operand.vmem [shape: bf16[128,128], index: 0, kind: input, shape index: {}]   ;;  %s7857_s4 = inlined_call_operand.vmem [shape: bf16[256,128], index: 4, kind: input, shape index: {}]   ;;  %s7858_s3 = inlined_call_operand.vmem [shape: f32[1,256], index: 3, kind: input, shape index: {}]   ;;  %s7859_s5 = inlined_call_operand.vmem [shape: f32[1,128], index: 5, kind: input, shape index: {}]   ;;  %s7860_s6 = inlined_call_operand.vmem [shape: f32[128,128], index: 6, kind: output, shape index: {}]  }
   0x1   :  { %v3924_v0 = vld [vmem:[%s7854_s2 + $0x70] sm:$0xf]  ;;  %v4849_v1 = vld [vmem:[%s7854_s2 + $0x74] sm:$0xf0]  ;;  %v3916_v2 = vld [vmem:[%s7854_s2 + $0x60] sm:$0xf] }
   0x2   :  { %v3925_v3 = vor.u32 %v4849_v1, %v3924_v0  ;;  %v4847_v4 = vld [vmem:[%s7854_s2 + $0x64] sm:$0xf0]  ;;  %v3908_v6 = vld [vmem:[%s7854_s2 + $0x50] sm:$0xf]  ;;  %v4845_v7 = vld [vmem:[%s7854_s2 + $0x54] sm:$0xf0] }
   0x3   :  { %v3917_v5 = vor.u32 %v4847_v4, %v3916_v2  ;;  %v3909_v8 = vor.u32 %v4845_v7, %v3908_v6  ;;  %v3900_v9 = vld [vmem:[%s7854_s2 + $0x40] sm:$0xf]  ;;  %v4843_v10 = vld [vmem:[%s7854_s2 + $0x44] sm:$0xf0]  ;;  %v3892_v12 = vld [vmem:[%s7854_s2 + $0x30] sm:$0xf] }
   0x4   :  { %5042 = vmatpush.bf16.msra.mxu1 %v3925_v3  ;;  %5043 = vmatpush.bf16.msra.mxu2 %v3925_v3  ;;  %v3901_v11 = vor.u32 %v4843_v10, %v3900_v9  ;;  %v4841_v13 = vld [vmem:[%s7854_s2 + $0x34] sm:$0xf0]  ;;  %v3884_v15 = vld [vmem:[%s7854_s2 + $0x20] sm:$0xf]  ;;  %v4839_v16 = vld [vmem:[%s7854_s2 + $0x24] sm:$0xf0] }
   0x5   :  { %5044 = vmatpush.bf16.msra.mxu3 %v3925_v3  ;;  %1767 = vmatpush.bf16.msra.mxu0 %v3925_v3  ;;  %v3893_v14 = vor.u32 %v4841_v13, %v3892_v12  ;;  %v3885_v17 = vor.u32 %v4839_v16, %v3884_v15  ;;  %v3876_v18 = vld [vmem:[%s7854_s2 + $0x10] sm:$0xf]  ;;  %v4837_v19 = vld [vmem:[%s7854_s2 + $0x14] sm:$0xf0]  ;;  %v3868_v21 = vld [vmem:[%s7854_s2] sm:$0xf] }
   0x6   :  { %v3877_v20 = vor.u32 %v4837_v19, %v3876_v18  ;;  %v4835_v22 = vld [vmem:[%s7854_s2 + $0x4] sm:$0xf0]  ;;  %v3580_v23 = vld [vmem:[%s7855_s1 + $0xc0] sm:$0xf]  ;;  %v4768_v24 = vld [vmem:[%s7855_s1 + $0xec] sm:$0xf0] }
   0x7   :  { %v3988_v25 = vld [vmem:[%s7854_s2 + $0xf0] sm:$0xf]  ;;  %v4865_v26 = vld [vmem:[%s7854_s2 + $0xf4] sm:$0xf0]  ;;  %v3869_v31 = vor.u32 %v4835_v22, %v3868_v21  ;;  %v3676_v32 = vld [vmem:[%s7855_s1 + $0x180] sm:$0xf]  ;;  %v5201_v44 = vor.u32 %v4768_v24, %v3580_v23 }
   0x8   :  { %5045 = vmatpush.bf16.msra.mxu1 %v3917_v5  ;;  %5046 = vmatpush.bf16.msra.mxu2 %v3917_v5  ;;  %v4052_v27 = vld [vmem:[%s7854_s2 + $0x170] sm:$0xf]  ;;  %v4881_v28 = vld [vmem:[%s7854_s2 + $0x174] sm:$0xf0]  ;;  %v3772_v34 = vld [vmem:[%s7855_s1 + $0x240] sm:$0xf]  ;;  %v3989_v36 = vor.u32 %v4865_v26, %v3988_v25 }
   0x9   :  { %5047 = vmatpush.bf16.msra.mxu3 %v3917_v5  ;;  %1768 = vmatpush.bf16.msra.mxu0 %v3917_v5  ;;  %v4116_v29 = vld [vmem:[%s7854_s2 + $0x1f0] sm:$0xf]  ;;  %v4897_v30 = vld [vmem:[%s7854_s2 + $0x1f4] sm:$0xf0]  ;;  %v3980_v37 = vld [vmem:[%s7854_s2 + $0xe0] sm:$0xf]  ;;  %v4053_v39 = vor.u32 %v4881_v28, %v4052_v27 }
   0xa   :  { %v4792_v33 = vld [vmem:[%s7855_s1 + $0x1ac] sm:$0xf0]  ;;  %v4863_v38 = vld [vmem:[%s7854_s2 + $0xe4] sm:$0xf0]  ;;  %v4117_v40 = vor.u32 %v4897_v30, %v4116_v29  ;;  %v4044_v41 = vld [vmem:[%s7854_s2 + $0x160] sm:$0xf] }
   0xb   :  { %v4816_v35 = vld [vmem:[%s7855_s1 + $0x26c] sm:$0xf0]  ;;  %v4913_v43 = vld [vmem:[%s7854_s2 + $0x274] sm:$0xf0]  ;;  %v5203_v45 = vor.u32 %v4792_v33, %v3676_v32  ;;  %v4879_v46 = vld [vmem:[%s7854_s2 + $0x164] sm:$0xf0]  ;;  %v3981_v52 = vor.u32 %v4863_v38, %v3980_v37 }
   0xc   :  { %5048 = vmatpush.bf16.msra.mxu1 %v3909_v8  ;;  %5049 = vmatpush.bf16.msra.mxu2 %v3909_v8  ;;  %v4180_v42 = vld [vmem:[%s7854_s2 + $0x270] sm:$0xf]  ;;  %v4108_v47 = vld [vmem:[%s7854_s2 + $0x1e0] sm:$0xf]  ;;  %v4895_v48 = vld [vmem:[%s7854_s2 + $0x1e4] sm:$0xf0]  ;;  %v5214_v49 = vor.u32 %v4816_v35, %v3772_v34  ;;  %v4045_v56 = vor.u32 %v4879_v46, %v4044_v41 }
   0xd   :  { %5050 = vmatpush.bf16.msra.mxu3 %v3909_v8  ;;  %1769 = vmatpush.bf16.msra.mxu0 %v3909_v8  ;;  %v3484_v50 = vld [vmem:[%s7855_s1] sm:$0xf]  ;;  %v4744_v51 = vld [vmem:[%s7855_s1 + $0x2c] sm:$0xf0]  ;;  %v4861_v54 = vld [vmem:[%s7854_s2 + $0xd4] sm:$0xf0]  ;;  %v4181_v55 = vor.u32 %v4913_v43, %v4180_v42  ;;  %v4109_v57 = vor.u32 %v4895_v48, %v4108_v47 }
   0xe   :  { %v3972_v53 = vld [vmem:[%s7854_s2 + $0xd0] sm:$0xf]  ;;  %v4172_v59 = vld [vmem:[%s7854_s2 + $0x260] sm:$0xf]  ;;  %v4911_v60 = vld [vmem:[%s7854_s2 + $0x264] sm:$0xf0]  ;;  %v5248_v0 = vor.u32 %v4744_v51, %v3484_v50 }
   0xf   :  { %v4036_v58 = vld [vmem:[%s7854_s2 + $0x150] sm:$0xf]  ;;  %v4877_v61 = vld [vmem:[%s7854_s2 + $0x154] sm:$0xf0]  ;;  %v3973_v1 = vor.u32 %v4861_v54, %v3972_v53  ;;  %v3964_v2 = vld [vmem:[%s7854_s2 + $0xc0] sm:$0xf]  ;;  %v4173_v4 = vor.u32 %v4911_v60, %v4172_v59 }
  0x10   :  { %5051 = vmatpush.bf16.msra.mxu1 %v3901_v11  ;;  %5052 = vmatpush.bf16.msra.mxu2 %v3901_v11  ;;  %v4100_v62 = vld [vmem:[%s7854_s2 + $0x1d0] sm:$0xf]  ;;  %v4893_v63 = vld [vmem:[%s7854_s2 + $0x1d4] sm:$0xf0]  ;;  %v4859_v3 = vld [vmem:[%s7854_s2 + $0xc4] sm:$0xf0]  ;;  %v4037_v5 = vor.u32 %v4877_v61, %v4036_v58 }
  0x11   :  { %5053 = vmatpush.bf16.msra.mxu3 %v3901_v11  ;;  %1770 = vmatpush.bf16.msra.mxu0 %v3901_v11  ;;  %v4101_v6 = vor.u32 %v4893_v63, %v4100_v62  ;;  %v4028_v7 = vld [vmem:[%s7854_s2 + $0x140] sm:$0xf]  ;;  %v4164_v8 = vld [vmem:[%s7854_s2 + $0x250] sm:$0xf]  ;;  %v4909_v9 = vld [vmem:[%s7854_s2 + $0x254] sm:$0xf0]  ;;  %v3965_v13 = vor.u32 %v4859_v3, %v3964_v2 }
  0x12   :  { %v4875_v10 = vld [vmem:[%s7854_s2 + $0x144] sm:$0xf0]  ;;  %v4092_v11 = vld [vmem:[%s7854_s2 + $0x1c0] sm:$0xf]  ;;  %v4857_v15 = vld [vmem:[%s7854_s2 + $0xb4] sm:$0xf0]  ;;  %v4165_v16 = vor.u32 %v4909_v9, %v4164_v8 }
  0x13   :  { %v4891_v12 = vld [vmem:[%s7854_s2 + $0x1c4] sm:$0xf0]  ;;  %v3628_v19 = vld [vmem:[%s7855_s1 + $0x120] sm:$0xf]  ;;  %v4020_v21 = vld [vmem:[%s7854_s2 + $0x130] sm:$0xf] }
  0x14   :  { %5054 = vmatpush.bf16.msra.mxu1 %v3893_v14  ;;  %5055 = vmatpush.bf16.msra.mxu2 %v3893_v14  ;;  %v4093_v18 = vor.u32 %v4891_v12, %v4092_v11  ;;  %v4156_v22 = vld [vmem:[%s7854_s2 + $0x240] sm:$0xf]  ;;  %v4907_v23 = vld [vmem:[%s7854_s2 + $0x244] sm:$0xf0]  ;;  %v4873_v24 = vld [vmem:[%s7854_s2 + $0x134] sm:$0xf0] }
  0x15   :  { %5056 = vmatpush.bf16.msra.mxu3 %v3893_v14  ;;  %1771 = vmatpush.bf16.msra.mxu0 %v3893_v14  ;;  %v3956_v14 = vld [vmem:[%s7854_s2 + $0xb0] sm:$0xf]  ;;  %v4889_v26 = vld [vmem:[%s7854_s2 + $0x1b4] sm:$0xf0]  ;;  %v3724_v27 = vld [vmem:[%s7855_s1 + $0x1e0] sm:$0xf]  ;;  %v4157_v34 = vor.u32 %v4907_v23, %v4156_v22  ;;  %v4021_v35 = vor.u32 %v4873_v24, %v4020_v21 }
  0x16   :  { %v4084_v25 = vld [vmem:[%s7854_s2 + $0x1b0] sm:$0xf]  ;;  %v3820_v29 = vld [vmem:[%s7855_s1 + $0x2a0] sm:$0xf]  ;;  %v4855_v33 = vld [vmem:[%s7854_s2 + $0xa4] sm:$0xf0] }
  0x17   :  { %v4804_v28 = vld [vmem:[%s7855_s1 + $0x20c] sm:$0xf0]  ;;  %v3948_v32 = vld [vmem:[%s7854_s2 + $0xa0] sm:$0xf]  ;;  %v4871_v42 = vld [vmem:[%s7854_s2 + $0x124] sm:$0xf0] }
  0x18   :  { %5057 = vmatpush.bf16.msra.mxu1 %v3885_v17  ;;  %5058 = vmatpush.bf16.msra.mxu2 %v3885_v17  ;;  %v4828_v30 = vld [vmem:[%s7855_s1 + $0x2cc] sm:$0xf0]  ;;  %v4012_v37 = vld [vmem:[%s7854_s2 + $0x120] sm:$0xf]  ;;  %v5335_v41 = vor.u32 %v4804_v28, %v3724_v27  ;;  %v4887_v46 = vld [vmem:[%s7854_s2 + $0x1a4] sm:$0xf0]  ;;  %v3949_v51 = vor.u32 %v4855_v33, %v3948_v32 }
  0x19   :  { %5059 = vmatpush.bf16.msra.mxu3 %v3885_v17  ;;  %1772 = vmatpush.bf16.msra.mxu0 %v3885_v17  ;;  %v4029_v17 = vor.u32 %v4875_v10, %v4028_v7  ;;  %v4148_v38 = vld [vmem:[%s7854_s2 + $0x230] sm:$0xf]  ;;  %v4076_v43 = vld [vmem:[%s7854_s2 + $0x1a0] sm:$0xf]  ;;  %v5346_v47 = vor.u32 %v4828_v30, %v3820_v29  ;;  %v4853_v53 = vld [vmem:[%s7854_s2 + $0x94] sm:$0xf0] }
  0x1a   :  { %v3532_v48 = vld [vmem:[%s7855_s1 + $0x60] sm:$0xf]  ;;  %v4756_v50 = vld [vmem:[%s7855_s1 + $0x8c] sm:$0xf0]  ;;  %v4903_v59 = vld [vmem:[%s7854_s2 + $0x224] sm:$0xf0] }
  0x1b   :  { %v4140_v58 = vld [vmem:[%s7854_s2 + $0x220] sm:$0xf]  ;;  %v4869_v60 = vld [vmem:[%s7854_s2 + $0x114] sm:$0xf0]  ;;  %v4068_v61 = vld [vmem:[%s7854_s2 + $0x190] sm:$0xf]  ;;  %v5380_v63 = vor.u32 %v4756_v50, %v3532_v48 }
  0x1c   :  { %5060 = vmatpush.bf16.msra.mxu1 %v3877_v20  ;;  %5061 = vmatpush.bf16.msra.mxu2 %v3877_v20  ;;  %v4885_v62 = vld [vmem:[%s7854_s2 + $0x194] sm:$0xf0]  ;;  %v3932_v2 = vld [vmem:[%s7854_s2 + $0x80] sm:$0xf]  ;;  %v4851_v3 = vld [vmem:[%s7854_s2 + $0x84] sm:$0xf0] }
  0x1d   :  { %5062 = vmatpush.bf16.msra.mxu3 %v3877_v20  ;;  %1773 = vmatpush.bf16.msra.mxu0 %v3877_v20  ;;  %v4780_v20 = vld [vmem:[%s7855_s1 + $0x14c] sm:$0xf0]  ;;  %v3996_v7 = vld [vmem:[%s7854_s2 + $0x100] sm:$0xf]  ;;  %v4901_v9 = vld [vmem:[%s7854_s2 + $0x214] sm:$0xf0] }
  0x1e   :  { %v4132_v8 = vld [vmem:[%s7854_s2 + $0x210] sm:$0xf]  ;;  %v4867_v10 = vld [vmem:[%s7854_s2 + $0x104] sm:$0xf0]  ;;  %v4060_v11 = vld [vmem:[%s7854_s2 + $0x180] sm:$0xf] }
  0x1f   :  { %v4883_v12 = vld [vmem:[%s7854_s2 + $0x184] sm:$0xf0]  ;;  %v4745_v22 = vld [vmem:[%s7855_s1 + $0x34] sm:$0xf0]  ;;  %v4739_v23 = vld [vmem:[%s7855_s1 + $0xc] sm:$0xf] }
  0x20   :  { %5063 = vmatpush.bf16.msra.mxu1 %v3869_v31  ;;  %5064 = vmatpush.bf16.msra.mxu2 %v3869_v31  ;;  %v3492_v21 = vld [vmem:[%s7855_s1 + $0x8] sm:$0xf]  ;;  %v3494_v24 = vld [vmem:[%s7855_s1 + $0x38] sm:$0xf0]  ;;  %v3500_v29 = vld [vmem:[%s7855_s1 + $0x10] sm:$0xf] }
  0x21   :  { %5065 = vmatpush.bf16.msra.mxu3 %v3869_v31  ;;  %1774 = vmatpush.bf16.msra.mxu0 %v3869_v31  ;;  %v3957_v31 = vor.u32 %v4857_v15, %v3956_v14  ;;  %v4133_v14 = vor.u32 %v4901_v9, %v4132_v8  ;;  %v3997_v15 = vor.u32 %v4867_v10, %v3996_v7  ;;  %v4746_v30 = vld [vmem:[%s7855_s1 + $0x3c] sm:$0xf0]  ;;  %v4750_v32 = vld [vmem:[%s7855_s1 + $0x64] sm:$0xf]  ;;  %v3534_v33 = vld [vmem:[%s7855_s1 + $0x90] sm:$0xf0] }
  0x22   :  { %v5434_v27 = vor.u32 %v4745_v22, %v3492_v21  ;;  %v5436_v28 = vor.u32 %v4739_v23, %v3494_v24  ;;  %v4762_v50 = vld [vmem:[%s7855_s1 + $0xc4] sm:$0xf]  ;;  %v3644_v9 = vld [vmem:[%s7855_s1 + $0x130] sm:$0xf]  ;;  %v4782_v10 = vld [vmem:[%s7855_s1 + $0x15c] sm:$0xf0] }
  0x23   :  { %1785 = vmatmul.bf16.vlgmr.msra.gmra.mxu1 %v5201_v44  ;;  %1795 = vmatmul.bf16.vlgmr.msra.gmra.mxu2 %v5203_v45  ;;  %v3692_v21 = vld [vmem:[%s7855_s1 + $0x190] sm:$0xf]  ;;  %v4794_v22 = vld [vmem:[%s7855_s1 + $0x1bc] sm:$0xf0]  ;;  %v4929_v24 = vld [vmem:[%s7854_s2 + $0x2f4] sm:$0xf0] }
  0x24   :  { %1816 = vmatpush.bf16.msrb.mxu1 %v3989_v36  ;;  %1865 = vmatpush.bf16.msrb.mxu2 %v4053_v39  ;;  %v4085_v36 = vor.u32 %v4889_v26, %v4084_v25  ;;  %v4905_v39 = vld [vmem:[%s7854_s2 + $0x234] sm:$0xf0]  ;;  %v4244_v23 = vld [vmem:[%s7854_s2 + $0x2f0] sm:$0xf] }
  0x25   :  { %1914 = vmatpush.bf16.msrb.mxu3 %v4117_v40  ;;  %1963 = vmatpush.bf16.msrb.mxu0 %v4181_v55  ;;  %v5333_v40 = vor.u32 %v4780_v20, %v3628_v19  ;;  %v4149_v54 = vor.u32 %v4905_v39, %v4148_v38  ;;  %v4013_v55 = vor.u32 %v4871_v42, %v4012_v37  ;;  %v4738_v19 = vld [vmem:[%s7855_s1 + $0x4] sm:$0xf]  ;;  %v3486_v20 = vld [vmem:[%s7855_s1 + $0x30] sm:$0xf0]  ;;  %v3542_v37 = vld [vmem:[%s7855_s1 + $0x98] sm:$0xf0] }
  0x26   :  { %1805 = vmatmul.bf16.vlgmr.msra.gmra.mxu3 %v5214_v49  ;;  %1775 = vmatmul.bf16.vlgmr.msra.gmra.mxu0 %v5248_v0  ;;  %v5432_v26 = vor.u32 %v4738_v19, %v3486_v20  ;;  %v5468_v38 = vor.u32 %v4750_v32, %v3534_v33  ;;  %v4945_v32 = vld [vmem:[%s7854_s2 + $0x374] sm:$0xf0]  ;;  %v4372_v33 = vld [vmem:[%s7854_s2 + $0x3f0] sm:$0xf] }
  0x28   :  { %1817 = vmatpush.bf16.msrb.mxu1 %v3981_v52  ;;  %1866 = vmatpush.bf16.msrb.mxu2 %v4045_v56  ;;  %v3940_v52 = vld [vmem:[%s7854_s2 + $0x90] sm:$0xf]  ;;  %v4077_v56 = vor.u32 %v4887_v46, %v4076_v43  ;;  %v4758_v46 = vld [vmem:[%s7855_s1 + $0x9c] sm:$0xf0] }
  0x29   :  { %1915 = vmatpush.bf16.msrb.mxu3 %v4109_v57  ;;  %1964 = vmatpush.bf16.msrb.mxu0 %v4173_v4  ;;  %v4004_v57 = vld [vmem:[%s7854_s2 + $0x110] sm:$0xf]  ;;  %v4141_v4 = vor.u32 %v4903_v59, %v4140_v58 }
  0x2a   :  { %v3548_v43 = vld [vmem:[%s7855_s1 + $0x70] sm:$0xf] }
  0x2b   :  { %v5482_v48 = vor.u32 %v4758_v46, %v3548_v43  ;;  %v3596_v59 = vld [vmem:[%s7855_s1 + $0xd0] sm:$0xf]  ;;  %v4927_v43 = vld [vmem:[%s7854_s2 + $0x2e4] sm:$0xf0]  ;;  %v4300_v46 = vld [vmem:[%s7854_s2 + $0x360] sm:$0xf] }
  0x2c   :  { %1818 = vmatpush.bf16.msrb.mxu1 %v3973_v1  ;;  %1867 = vmatpush.bf16.msrb.mxu2 %v4037_v5  ;;  %v3941_v1 = vor.u32 %v4853_v53, %v3940_v52  ;;  %v4005_v5 = vor.u32 %v4869_v60, %v4004_v57  ;;  %v3588_v52 = vld [vmem:[%s7855_s1 + $0xc8] sm:$0xf]  ;;  %v4769_v53 = vld [vmem:[%s7855_s1 + $0xf4] sm:$0xf0]  ;;  %v4770_v60 = vld [vmem:[%s7855_s1 + $0xfc] sm:$0xf0] }
  0x2d   :  { %1916 = vmatpush.bf16.msrb.mxu3 %v4101_v6  ;;  %1965 = vmatpush.bf16.msrb.mxu0 %v4165_v16  ;;  %v4069_v6 = vor.u32 %v4885_v62, %v4068_v61  ;;  %v4061_v16 = vor.u32 %v4883_v12, %v4060_v11  ;;  %v5506_v57 = vor.u32 %v4769_v53, %v3588_v52  ;;  %v4774_v62 = vld [vmem:[%s7855_s1 + $0x124] sm:$0xf]  ;;  %v4364_v52 = vld [vmem:[%s7854_s2 + $0x3e0] sm:$0xf]  ;;  %v4959_v53 = vld [vmem:[%s7854_s2 + $0x3e4] sm:$0xf0] }
  0x2e   :  { %v5518_v61 = vor.u32 %v4770_v60, %v3596_v59  ;;  %v5554_v11 = vor.u32 %v4782_v10, %v3644_v9  ;;  %v4786_v12 = vld [vmem:[%s7855_s1 + $0x184] sm:$0xf]  ;;  %v4228_v59 = vld [vmem:[%s7854_s2 + $0x2d0] sm:$0xf]  ;;  %v4925_v60 = vld [vmem:[%s7854_s2 + $0x2d4] sm:$0xf0] }
  0x2f   :  { %v4798_v9 = vld [vmem:[%s7855_s1 + $0x1e4] sm:$0xf]  ;;  %v3726_v10 = vld [vmem:[%s7855_s1 + $0x210] sm:$0xf0] }
  0x30   :  { %1819 = vmatpush.bf16.msrb.mxu1 %v3965_v13  ;;  %1868 = vmatpush.bf16.msrb.mxu2 %v4029_v17  ;;  %v3933_v13 = vor.u32 %v4851_v3, %v3932_v2  ;;  %v4124_v17 = vld [vmem:[%s7854_s2 + $0x200] sm:$0xf]  ;;  %v3636_v2 = vld [vmem:[%s7855_s1 + $0x128] sm:$0xf]  ;;  %v4781_v3 = vld [vmem:[%s7855_s1 + $0x154] sm:$0xf0] }
  0x31   :  { %1917 = vmatpush.bf16.msrb.mxu3 %v4093_v18  ;;  %1966 = vmatpush.bf16.msrb.mxu0 %v4157_v34  ;;  %v4899_v18 = vld [vmem:[%s7854_s2 + $0x204] sm:$0xf0]  ;;  %v5542_v7 = vor.u32 %v4781_v3, %v3636_v2  ;;  %v4941_v2 = vld [vmem:[%s7854_s2 + $0x354] sm:$0xf0]  ;;  %v4356_v3 = vld [vmem:[%s7854_s2 + $0x3d0] sm:$0xf] }
  0x32   :  { %v4125_v25 = vor.u32 %v4899_v18, %v4124_v17  ;;  %v3540_v34 = vld [vmem:[%s7855_s1 + $0x68] sm:$0xf]  ;;  %v3686_v17 = vld [vmem:[%s7855_s1 + $0x1b8] sm:$0xf0] }
  0x33   :  { %1790 = vmatmul.bf16.gmra.mxu1 %v5333_v40  ;;  %1800 = vmatmul.bf16.gmra.mxu2 %v5335_v41 }
  0x34   :  { %1820 = vmatpush.bf16.msrb.mxu1 %v3957_v31  ;;  %1869 = vmatpush.bf16.msrb.mxu2 %v4021_v35  ;;  %v5446_v31 = vor.u32 %v4746_v30, %v3500_v29  ;;  %v4757_v35 = vld [vmem:[%s7855_s1 + $0x94] sm:$0xf0]  ;;  %v4245_v29 = vor.u32 %v4929_v24, %v4244_v23  ;;  %v4308_v30 = vld [vmem:[%s7854_s2 + $0x370] sm:$0xf]  ;;  %v4220_v24 = vld [vmem:[%s7854_s2 + $0x2c0] sm:$0xf] }
  0x35   :  { %1918 = vmatpush.bf16.msrb.mxu3 %v4085_v36  ;;  %1967 = vmatpush.bf16.msrb.mxu0 %v4149_v54  ;;  %v4751_v36 = vld [vmem:[%s7855_s1 + $0x6c] sm:$0xf]  ;;  %v5470_v39 = vor.u32 %v4757_v35, %v3540_v34  ;;  %v4309_v34 = vor.u32 %v4945_v32, %v4308_v30  ;;  %v4961_v35 = vld [vmem:[%s7854_s2 + $0x3f4] sm:$0xf0]  ;;  %v3740_v23 = vld [vmem:[%s7855_s1 + $0x1f0] sm:$0xf]  ;;  %v5684_v32 = vor.u32 %v4798_v9, %v3726_v10 }
  0x36   :  { %1810 = vmatmul.bf16.gmra.mxu3 %v5346_v47  ;;  %1780 = vmatmul.bf16.gmra.mxu0 %v5380_v63  ;;  %v5472_v42 = vor.u32 %v4751_v36, %v3542_v37  ;;  %v4763_v54 = vld [vmem:[%s7855_s1 + $0xcc] sm:$0xf]  ;;  %v4373_v36 = vor.u32 %v4961_v35, %v4372_v33  ;;  %v4236_v37 = vld [vmem:[%s7854_s2 + $0x2e0] sm:$0xf]  ;;  %v4939_v35 = vld [vmem:[%s7854_s2 + $0x344] sm:$0xf0] }
  0x37   :  { %v4284_v30 = vld [vmem:[%s7854_s2 + $0x340] sm:$0xf]  ;;  %7924 = vst [vmem:[#allocation6_spill] sm:$0xff] %v5684_v32  ;;  %v4420_v9 = vld [vmem:[%s7854_s2 + $0x450] sm:$0xf] }
  0x38   :  { %1821 = vmatpush.bf16.msrb.mxu1 %v3949_v51  ;;  %1870 = vmatpush.bf16.msrb.mxu2 %v4013_v55  ;;  %v3582_v51 = vld [vmem:[%s7855_s1 + $0xf0] sm:$0xf0]  ;;  %v3590_v55 = vld [vmem:[%s7855_s1 + $0xf8] sm:$0xf0] }
  0x39   :  { %1919 = vmatpush.bf16.msrb.mxu3 %v4077_v56  ;;  %1968 = vmatpush.bf16.msrb.mxu0 %v4141_v4  ;;  %v5504_v56 = vor.u32 %v4762_v50, %v3582_v51  ;;  %v5508_v58 = vor.u32 %v4763_v54, %v3590_v55  ;;  %v4775_v4 = vld [vmem:[%s7855_s1 + $0x12c] sm:$0xf]  ;;  %v4237_v50 = vor.u32 %v4927_v43, %v4236_v37  ;;  %v4943_v51 = vld [vmem:[%s7854_s2 + $0x364] sm:$0xf0] }
  0x3a   :  { %v4301_v54 = vor.u32 %v4943_v51, %v4300_v46  ;;  %v4365_v55 = vor.u32 %v4959_v53, %v4364_v52  ;;  %v4955_v37 = vld [vmem:[%s7854_s2 + $0x3c4] sm:$0xf0]  ;;  %v4806_v46 = vld [vmem:[%s7855_s1 + $0x21c] sm:$0xf0] }
  0x3b   :  { %v4428_v51 = vld [vmem:[%s7854_s2 + $0x460] sm:$0xf]  ;;  %v4975_v52 = vld [vmem:[%s7854_s2 + $0x464] sm:$0xf0] }
  0x3c   :  { %1822 = vmatpush.bf16.msrb.mxu1 %v3941_v1  ;;  %1871 = vmatpush.bf16.msrb.mxu2 %v4005_v5  ;;  %v3630_v1 = vld [vmem:[%s7855_s1 + $0x150] sm:$0xf0]  ;;  %v3638_v5 = vld [vmem:[%s7855_s1 + $0x158] sm:$0xf0] }
  0x3d   :  { %1920 = vmatpush.bf16.msrb.mxu3 %v4069_v6  ;;  %1969 = vmatpush.bf16.msrb.mxu0 %v4133_v14  ;;  %v5540_v6 = vor.u32 %v4774_v62, %v3630_v1  ;;  %v5544_v8 = vor.u32 %v4775_v4, %v3638_v5  ;;  %v3684_v14 = vld [vmem:[%s7855_s1 + $0x188] sm:$0xf]  ;;  %v4292_v62 = vld [vmem:[%s7854_s2 + $0x350] sm:$0xf]  ;;  %v4229_v1 = vor.u32 %v4925_v60, %v4228_v59  ;;  %v4957_v4 = vld [vmem:[%s7854_s2 + $0x3d4] sm:$0xf0] }
  0x3e   :  { %v4293_v5 = vor.u32 %v4941_v2, %v4292_v62  ;;  %v5713_v59 = vor.u32 %v4806_v46, %v3740_v23  ;;  %v4921_v60 = vld [vmem:[%s7854_s2 + $0x2b4] sm:$0xf0]  ;;  %v4276_v62 = vld [vmem:[%s7854_s2 + $0x330] sm:$0xf]  ;;  %v4951_v23 = vld [vmem:[%s7854_s2 + $0x3a4] sm:$0xf0] }
  0x3f   :  { %v4260_v46 = vld [vmem:[%s7854_s2 + $0x310] sm:$0xf] }
  0x40   :  { %1823 = vmatpush.bf16.msrb.mxu1 %v3933_v13  ;;  %1872 = vmatpush.bf16.msrb.mxu2 %v3997_v15  ;;  %v3678_v13 = vld [vmem:[%s7855_s1 + $0x1b0] sm:$0xf0]  ;;  %v4793_v15 = vld [vmem:[%s7855_s1 + $0x1b4] sm:$0xf0]  ;;  %7927 = vst [vmem:[#allocation9_spill] sm:$0xff] %v5713_v59 }
  0x41   :  { %1921 = vmatpush.bf16.msrb.mxu3 %v4061_v16  ;;  %1970 = vmatpush.bf16.msrb.mxu0 %v4125_v25  ;;  %v4787_v16 = vld [vmem:[%s7855_s1 + $0x18c] sm:$0xf]  ;;  %v5576_v18 = vor.u32 %v4786_v12, %v3678_v13  ;;  %v5578_v19 = vor.u32 %v4793_v15, %v3684_v14  ;;  %v5596_v25 = vor.u32 %v4794_v22, %v3692_v21  ;;  %v3732_v12 = vld [vmem:[%s7855_s1 + $0x1e8] sm:$0xf]  ;;  %v4805_v14 = vld [vmem:[%s7855_s1 + $0x214] sm:$0xf0] }
  0x42   :  { %v5580_v20 = vor.u32 %v4787_v16, %v3686_v17  ;;  %v4357_v13 = vor.u32 %v4957_v4, %v4356_v3  ;;  %v4436_v15 = vld [vmem:[%s7854_s2 + $0x470] sm:$0xf]  ;;  %v4977_v16 = vld [vmem:[%s7854_s2 + $0x474] sm:$0xf0]  ;;  %v4799_v17 = vld [vmem:[%s7855_s1 + $0x1ec] sm:$0xf]  ;;  %v5686_v33 = vor.u32 %v4805_v14, %v3732_v12 }
  0x43   :  { %1824 = vmatmul.bf16.vlgmr.msrb.gmra.mxu1 %v5432_v26  ;;  %1873 = vmatmul.bf16.vlgmr.msrb.gmra.mxu2 %v5434_v27  ;;  %7920 = vst [vmem:[#allocation2_spill] sm:$0xff] %v5576_v18  ;;  %v3734_v21 = vld [vmem:[%s7855_s1 + $0x218] sm:$0xf0]  ;;  %v4437_v22 = vor.u32 %v4977_v16, %v4436_v15  ;;  %v4340_v4 = vld [vmem:[%s7854_s2 + $0x3b0] sm:$0xf] }
  0x44   :  { %7921 = vst [vmem:[#allocation3_spill] sm:$0xff] %v5578_v19  ;;  %2012 = vmatpush.bf16.msra.mxu1 %v4245_v29  ;;  %2061 = vmatpush.bf16.msra.mxu2 %v4309_v34  ;;  %v4923_v29 = vld [vmem:[%s7854_s2 + $0x2c4] sm:$0xf0]  ;;  %v5697_v43 = vor.u32 %v4799_v17, %v3734_v21  ;;  %v4973_v12 = vld [vmem:[%s7854_s2 + $0x454] sm:$0xf0] }
  0x45   :  { %7922 = vst [vmem:[#allocation4_spill] sm:$0xff] %v5580_v20  ;;  %2110 = vmatpush.bf16.msra.mxu3 %v4373_v36  ;;  %2159 = vmatpush.bf16.msra.mxu0 %v4437_v22  ;;  %v4221_v34 = vor.u32 %v4923_v29, %v4220_v24  ;;  %v4348_v36 = vld [vmem:[%s7854_s2 + $0x3c0] sm:$0xf]  ;;  %v4919_v15 = vld [vmem:[%s7854_s2 + $0x2a4] sm:$0xf0] }
  0x46   :  { %1922 = vmatmul.bf16.vlgmr.msrb.gmra.mxu3 %v5436_v28  ;;  %1971 = vmatmul.bf16.vlgmr.msrb.gmra.mxu0 %v5446_v31  ;;  %7923 = vst [vmem:[#allocation5_spill] sm:$0xff] %v5596_v25  ;;  %v4349_v53 = vor.u32 %v4955_v37, %v4348_v36  ;;  %v4204_v14 = vld [vmem:[%s7854_s2 + $0x2a0] sm:$0xf]  ;;  %v4935_v21 = vld [vmem:[%s7854_s2 + $0x324] sm:$0xf0] }
  0x47   :  { %7925 = vst [vmem:[#allocation7_spill] sm:$0xff] %v5686_v33  ;;  %v4268_v16 = vld [vmem:[%s7854_s2 + $0x320] sm:$0xf]  ;;  %v4205_v17 = vor.u32 %v4919_v15, %v4204_v14  ;;  %v4917_v37 = vld [vmem:[%s7854_s2 + $0x294] sm:$0xf0] }
  0x48   :  { %2013 = vmatpush.bf16.msra.mxu1 %v4237_v50  ;;  %2062 = vmatpush.bf16.msra.mxu2 %v4301_v54  ;;  %7926 = vst [vmem:[#allocation8_spill] sm:$0xff] %v5697_v43  ;;  %v4285_v50 = vor.u32 %v4939_v35, %v4284_v30  ;;  %v4429_v54 = vor.u32 %v4975_v52, %v4428_v51  ;;  %v4332_v22 = vld [vmem:[%s7854_s2 + $0x3a0] sm:$0xf]  ;;  %v4971_v30 = vld [vmem:[%s7854_s2 + $0x444] sm:$0xf0] }
  0x49   :  { %2111 = vmatpush.bf16.msra.mxu3 %v4365_v55  ;;  %v4212_v55 = vld [vmem:[%s7854_s2 + $0x2b0] sm:$0xf]  ;;  %v4269_v24 = vor.u32 %v4935_v21, %v4268_v16  ;;  %v4412_v29 = vld [vmem:[%s7854_s2 + $0x440] sm:$0xf]  ;;  %v4333_v35 = vor.u32 %v4951_v23, %v4332_v22  ;;  %v4915_v14 = vld [vmem:[%s7854_s2 + $0x284] sm:$0xf0] }
  0x4a   :  { %2160 = vmatpush.bf16.msra.mxu0 %v4429_v54  ;;  %v4213_v2 = vor.u32 %v4921_v60, %v4212_v55  ;;  %v4413_v36 = vor.u32 %v4971_v30, %v4412_v29  ;;  %v4949_v54 = vld [vmem:[%s7854_s2 + $0x394] sm:$0xf0]  ;;  %v4810_v55 = vld [vmem:[%s7855_s1 + $0x244] sm:$0xf]  ;;  %v3774_v60 = vld [vmem:[%s7855_s1 + $0x270] sm:$0xf0] }
  0x4b   :  { %v4252_v15 = vld [vmem:[%s7854_s2 + $0x300] sm:$0xf]  ;;  %v5816_v16 = vor.u32 %v4810_v55, %v3774_v60  ;;  %v4931_v22 = vld [vmem:[%s7854_s2 + $0x304] sm:$0xf0] }
  0x4c   :  { %2014 = vmatpush.bf16.msra.mxu1 %v4229_v1  ;;  %2063 = vmatpush.bf16.msra.mxu2 %v4293_v5  ;;  %v4937_v1 = vld [vmem:[%s7854_s2 + $0x334] sm:$0xf0]  ;;  %v4316_v23 = vld [vmem:[%s7854_s2 + $0x380] sm:$0xf] }
  0x4d   :  { %2112 = vmatpush.bf16.msra.mxu3 %v4357_v13  ;;  %v4277_v3 = vor.u32 %v4937_v1, %v4276_v62  ;;  %v4953_v5 = vld [vmem:[%s7854_s2 + $0x3b4] sm:$0xf0]  ;;  %v4421_v13 = vor.u32 %v4973_v12, %v4420_v9  ;;  %v3780_v62 = vld [vmem:[%s7855_s1 + $0x248] sm:$0xf]  ;;  %v3788_v12 = vld [vmem:[%s7855_s1 + $0x250] sm:$0xf] }
  0x4e   :  { %v4341_v10 = vor.u32 %v4953_v5, %v4340_v4  ;;  %v4817_v1 = vld [vmem:[%s7855_s1 + $0x274] sm:$0xf0]  ;;  %v4811_v4 = vld [vmem:[%s7855_s1 + $0x24c] sm:$0xf]  ;;  %v3782_v5 = vld [vmem:[%s7855_s1 + $0x278] sm:$0xf0] }
  0x4f   :  { %2161 = vmatpush.bf16.msra.mxu0 %v4421_v13  ;;  %v4188_v13 = vld [vmem:[%s7854_s2 + $0x280] sm:$0xf]  ;;  %7928 = vst [vmem:[#allocation10_spill] sm:$0xff] %v5816_v16  ;;  %v5831_v30 = vor.u32 %v4811_v4, %v3782_v5  ;;  %v4822_v5 = vld [vmem:[%s7855_s1 + $0x2a4] sm:$0xf] }
  0x50   :  { %2015 = vmatpush.bf16.msra.mxu1 %v4221_v34  ;;  %2064 = vmatpush.bf16.msra.mxu2 %v4285_v50  ;;  %v4196_v34 = vld [vmem:[%s7854_s2 + $0x290] sm:$0xf]  ;;  %v4933_v50 = vld [vmem:[%s7854_s2 + $0x314] sm:$0xf0]  ;;  %v4189_v21 = vor.u32 %v4915_v14, %v4188_v13  ;;  %v4823_v14 = vld [vmem:[%s7855_s1 + $0x2ac] sm:$0xf] }
  0x51   :  { %2113 = vmatpush.bf16.msra.mxu3 %v4349_v53  ;;  %v4197_v51 = vor.u32 %v4917_v37, %v4196_v34  ;;  %v4261_v52 = vor.u32 %v4933_v50, %v4260_v46  ;;  %v4324_v53 = vld [vmem:[%s7854_s2 + $0x390] sm:$0xf]  ;;  %7930 = vst [vmem:[#allocation12_spill] sm:$0xff] %v5831_v30  ;;  %v4818_v34 = vld [vmem:[%s7855_s1 + $0x27c] sm:$0xf0] }
  0x52   :  { %v4325_v9 = vor.u32 %v4949_v54, %v4324_v53  ;;  %v4967_v37 = vld [vmem:[%s7854_s2 + $0x424] sm:$0xf0]  ;;  %v4388_v53 = vld [vmem:[%s7854_s2 + $0x410] sm:$0xf]  ;;  %v4965_v54 = vld [vmem:[%s7854_s2 + $0x414] sm:$0xf0] }
  0x53   :  { %1829 = vmatmul.bf16.gmra.mxu1 %v5468_v38  ;;  %1878 = vmatmul.bf16.gmra.mxu2 %v5470_v39  ;;  %v4389_v55 = vor.u32 %v4965_v54, %v4388_v53  ;;  %v4829_v13 = vld [vmem:[%s7855_s1 + $0x2d4] sm:$0xf0] }
  0x54   :  { %2016 = vmatpush.bf16.msra.mxu1 %v4213_v2  ;;  %2065 = vmatpush.bf16.msra.mxu2 %v4277_v3  ;;  %v4404_v2 = vld [vmem:[%s7854_s2 + $0x430] sm:$0xf]  ;;  %v4969_v3 = vld [vmem:[%s7854_s2 + $0x434] sm:$0xf0] }
  0x55   :  { %2114 = vmatpush.bf16.msra.mxu3 %v4341_v10  ;;  %2162 = vmatpush.bf16.msra.mxu0 %v4413_v36  ;;  %v4405_v10 = vor.u32 %v4969_v3, %v4404_v2  ;;  %v4396_v36 = vld [vmem:[%s7854_s2 + $0x420] sm:$0xf]  ;;  %v4963_v3 = vld [vmem:[%s7854_s2 + $0x404] sm:$0xf0] }
  0x56   :  { %1927 = vmatmul.bf16.gmra.mxu3 %v5472_v42  ;;  %1976 = vmatmul.bf16.gmra.mxu0 %v5482_v48  ;;  %v4397_v50 = vor.u32 %v4967_v37, %v4396_v36  ;;  %v4380_v2 = vld [vmem:[%s7854_s2 + $0x400] sm:$0xf]  ;;  %v3836_v36 = vld [vmem:[%s7855_s1 + $0x2b0] sm:$0xf] }
  0x57   :  { %v4381_v4 = vor.u32 %v4963_v3, %v4380_v2  ;;  %v4830_v37 = vld [vmem:[%s7855_s1 + $0x2dc] sm:$0xf0]  ;;  %v4740_v2 = vld [vmem:[%s7855_s1 + $0x14] sm:$0xf] }
  0x58   :  { %2017 = vmatpush.bf16.msra.mxu1 %v4205_v17  ;;  %2066 = vmatpush.bf16.msra.mxu2 %v4269_v24  ;;  %v5818_v17 = vor.u32 %v4817_v1, %v3780_v62  ;;  %v4947_v24 = vld [vmem:[%s7854_s2 + $0x384] sm:$0xf0] }
  0x59   :  { %2115 = vmatpush.bf16.msra.mxu3 %v4333_v35  ;;  %2163 = vmatpush.bf16.msra.mxu0 %v4405_v10  ;;  %v4253_v35 = vor.u32 %v4931_v22, %v4252_v15  ;;  %v4317_v46 = vor.u32 %v4947_v24, %v4316_v23  ;;  %v3822_v10 = vld [vmem:[%s7855_s1 + $0x2d0] sm:$0xf0]  ;;  %v3830_v15 = vld [vmem:[%s7855_s1 + $0x2d8] sm:$0xf0] }
  0x5a   :  { %7929 = vst [vmem:[#allocation11_spill] sm:$0xff] %v5818_v17  ;;  %v5888_v23 = vor.u32 %v4822_v5, %v3822_v10  ;;  %v3508_v5 = vld [vmem:[%s7855_s1 + $0x18] sm:$0xf]  ;;  %v4747_v10 = vld [vmem:[%s7855_s1 + $0x44] sm:$0xf0] }
  0x5c   :  { %2018 = vmatpush.bf16.msra.mxu1 %v4197_v51  ;;  %2067 = vmatpush.bf16.msra.mxu2 %v4261_v52  ;;  %v5844_v51 = vor.u32 %v4818_v34, %v3788_v12  ;;  %v3828_v12 = vld [vmem:[%s7855_s1 + $0x2a8] sm:$0xf]  ;;  %7932 = vst [vmem:[#allocation14_spill] sm:$0xff] %v5888_v23 }
  0x5d   :  { %2116 = vmatpush.bf16.msra.mxu3 %v4325_v9  ;;  %2164 = vmatpush.bf16.msra.mxu0 %v4397_v50  ;;  %v5890_v24 = vor.u32 %v4829_v13, %v3828_v12  ;;  %v4741_v12 = vld [vmem:[%s7855_s1 + $0x1c] sm:$0xf]  ;;  %v3510_v13 = vld [vmem:[%s7855_s1 + $0x48] sm:$0xf0] }
  0x5e   :  { %7931 = vst [vmem:[#allocation13_spill] sm:$0xff] %v5844_v51 }
  0x5f   :  { %7933 = vst [vmem:[#allocation15_spill] sm:$0xff] %v5890_v24 }
  0x60   :  { %2019 = vmatpush.bf16.msra.mxu1 %v4189_v21  ;;  %2068 = vmatpush.bf16.msra.mxu2 %v4253_v35  ;;  %v5894_v35 = vor.u32 %v4823_v14, %v3830_v15 }
  0x61   :  { %2117 = vmatpush.bf16.msra.mxu3 %v4317_v46  ;;  %2165 = vmatpush.bf16.msra.mxu0 %v4389_v55  ;;  %v5904_v46 = vor.u32 %v4830_v37, %v3836_v36  ;;  %v5938_v37 = vor.u32 %v4747_v10, %v3508_v5 }
  0x62   :  { %7934 = vst [vmem:[#allocation16_spill] sm:$0xff] %v5894_v35 }
  0x63   :  { %1834 = vmatmul.bf16.gmra.mxu1 %v5504_v56  ;;  %1883 = vmatmul.bf16.gmra.mxu2 %v5506_v57  ;;  %7935 = vst [vmem:[#allocation17_spill] sm:$0xff] %v5904_v46 }
  0x64   :  { %7937 = vst [vmem:[#allocation19_spill] sm:$0xff] %v5938_v37 }
  0x65   :  { %2166 = vmatpush.bf16.msra.mxu0 %v4381_v4  ;;  %v3502_v4 = vld [vmem:[%s7855_s1 + $0x40] sm:$0xf0] }
  0x66   :  { %1932 = vmatmul.bf16.gmra.mxu3 %v5508_v58  ;;  %1981 = vmatmul.bf16.gmra.mxu0 %v5518_v61  ;;  %v5936_v36 = vor.u32 %v4740_v2, %v3502_v4 }
  0x68   :  { %7936 = vst [vmem:[#allocation18_spill] sm:$0xff] %v5936_v36 }
  0x73   :  { %1839 = vmatmul.bf16.gmra.mxu1 %v5540_v6  ;;  %1888 = vmatmul.bf16.gmra.mxu2 %v5542_v7 }
  0x76   :  { %1937 = vmatmul.bf16.gmra.mxu3 %v5544_v8  ;;  %1986 = vmatmul.bf16.gmra.mxu0 %v5554_v11 }
  0x83   :  { %1844 = vmatmul.bf16.gmra.mxu1 %v5576_v18  ;;  %1893 = vmatmul.bf16.gmra.mxu2 %v5578_v19  ;;  %v5019_v19 = vld [vmem:[%s7854_s2 + $0x5c4] sm:$0xf0] }
  0x86   :  { %1942 = vmatmul.bf16.gmra.mxu3 %v5580_v20  ;;  %1991 = vmatmul.bf16.gmra.mxu0 %v5596_v25 }
  0x93   :  { %1849 = vmatmul.bf16.gmra.mxu1 %v5684_v32  ;;  %1898 = vmatmul.bf16.gmra.mxu2 %v5686_v33 }
  0x96   :  { %1947 = vmatmul.bf16.gmra.mxu3 %v5697_v43  ;;  %1996 = vmatmul.bf16.gmra.mxu0 %v5713_v59 }
  0xa0   :  { %v5829_v29 = vpop.f32.mrf.mxu1 }
  0xa3   :  { %1854 = vmatmul.bf16.gmra.mxu1 %v5816_v16  ;;  %1903 = vmatmul.bf16.gmra.mxu2 %v5818_v17  ;;  %v1776_v52 = vpop.f32.mrf.mxu0 }
  0xa6   :  { %1952 = vmatmul.bf16.gmra.mxu3 %v5831_v30  ;;  %v5853_v60 = vpop.f32.mrf.mxu2  ;;  %2001 = vmatmul.bf16.gmra.mxu0 %v5844_v51 }
  0xa8   :  { %v5858_v1 = vpop.f32.mrf.mxu1 }
  0xa9   :  { %v5855_v62 = vpop.f32.mrf.mxu3 }
  0xab   :  { %v1778_v9 = vpop.f32.mrf.mxu0 }
  0xae   :  { %v5884_v21 = vpop.f32.mrf.mxu2 }
  0xb0   :  { %v5892_v34 = vpop.f32.mrf.mxu1 }
  0xb1   :  { %v5886_v22 = vpop.f32.mrf.mxu3 }
  0xb3   :  { %1859 = vmatmul.bf16.gmra.mxu1 %v5888_v23  ;;  %1908 = vmatmul.bf16.gmra.mxu2 %v5890_v24  ;;  %v1781_v50 = vpop.f32.mrf.mxu0  ;;  %v3516_v24 = vld [vmem:[%s7855_s1 + $0x20] sm:$0xf]  ;;  %v4748_v23 = vld [vmem:[%s7855_s1 + $0x4c] sm:$0xf0] }
  0xb4   :  { %v5950_v2 = vor.u32 %v4748_v23, %v3516_v24  ;;  %v3550_v23 = vld [vmem:[%s7855_s1 + $0xa0] sm:$0xf0]  ;;  %v4759_v24 = vld [vmem:[%s7855_s1 + $0xa4] sm:$0xf0] }
  0xb6   :  { %1957 = vmatmul.bf16.gmra.mxu3 %v5894_v35  ;;  %v5907_v53 = vpop.f32.mrf.mxu2  ;;  %2006 = vmatmul.bf16.gmra.mxu0 %v5904_v46  ;;  %v5940_v35 = vor.u32 %v4741_v12, %v3510_v13  ;;  %7939 = vst [vmem:[#allocation21_spill] sm:$0xff] %v5950_v2 }
  0xb8   :  { %v5912_v55 = vpop.f32.mrf.mxu1  ;;  %7938 = vst [vmem:[#allocation20_spill] sm:$0xff] %v5940_v35 }
  0xb9   :  { %v5909_v54 = vpop.f32.mrf.mxu3 }
  0xbb   :  { %v1783_v3 = vpop.f32.mrf.mxu0 }
  0xbe   :  { %v5932_v14 = vpop.f32.mrf.mxu2 }
  0xc0   :  { %v1825_v46 = vpop.f32.mrf.mxu1 }
  0xc1   :  { %v5934_v15 = vpop.f32.mrf.mxu3  ;;  %v1826_v51 = vadd.f32 %v1825_v46, %v1776_v52  ;;  %v4752_v52 = vld [vmem:[%s7855_s1 + $0x74] sm:$0xf] }
  0xc3   :  { %2020 = vmatmul.bf16.vlgmr.msra.gmra.mxu1 %v5936_v36  ;;  %2069 = vmatmul.bf16.vlgmr.msra.gmra.mxu2 %v5938_v37  ;;  %v1972_v4 = vpop.f32.mrf.mxu0  ;;  %v3564_v37 = vld [vmem:[%s7855_s1 + $0x80] sm:$0xf]  ;;  %v4760_v36 = vld [vmem:[%s7855_s1 + $0xac] sm:$0xf0] }
  0xc6   :  { %2118 = vmatmul.bf16.vlgmr.msra.gmra.mxu3 %v5940_v35  ;;  %v1874_v5 = vpop.f32.mrf.mxu2  ;;  %2167 = vmatmul.bf16.vlgmr.msra.gmra.mxu0 %v5950_v2 }
  0xc7   :  { %v1875_v10 = vadd.f32 %v1874_v5, %v1826_v51  ;;  %v3556_v51 = vld [vmem:[%s7855_s1 + $0x78] sm:$0xf] }
  0xc8   :  { %v1827_v13 = vpop.f32.mrf.mxu1 }
  0xc9   :  { %v1923_v12 = vpop.f32.mrf.mxu3  ;;  %v1828_v17 = vadd.f32 %v1827_v13, %v1778_v9  ;;  %v3558_v9 = vld [vmem:[%s7855_s1 + $0xa8] sm:$0xf0]  ;;  %v5976_v13 = vor.u32 %v4759_v24, %v3556_v51 }
  0xca   :  { %v1924_v30 = vadd.f32 %v1923_v12, %v1875_v10  ;;  %v5974_v12 = vor.u32 %v4752_v52, %v3550_v23 }
  0xcb   :  { %v1974_v46 = vpop.f32.mrf.mxu0  ;;  %7941 = vst [vmem:[#allocation23_spill] sm:$0xff] %v5976_v13 }
  0xcc   :  { %v5954_v16 = vadd.f32 %v1972_v4, %v1924_v30  ;;  %v4753_v30 = vld [vmem:[%s7855_s1 + $0x7c] sm:$0xf]  ;;  %7940 = vst [vmem:[#allocation22_spill] sm:$0xff] %v5974_v12 }
  0xcd   :  { %v5978_v35 = vor.u32 %v4753_v30, %v3558_v9 }
  0xce   :  { %v1876_v4 = vpop.f32.mrf.mxu2 }
  0xcf   :  { %v1877_v5 = vadd.f32 %v1876_v4, %v1828_v17  ;;  %7942 = vst [vmem:[#allocation24_spill] sm:$0xff] %v5978_v35  ;;  %v5990_v17 = vor.u32 %v4760_v36, %v3564_v37  ;;  %v3598_v36 = vld [vmem:[%s7855_s1 + $0x100] sm:$0xf0]  ;;  %v4771_v37 = vld [vmem:[%s7855_s1 + $0x104] sm:$0xf0] }
  0xd0   :  { %v1830_v2 = vpop.f32.mrf.mxu1 }
  0xd1   :  { %v1925_v10 = vpop.f32.mrf.mxu3  ;;  %v1831_v43 = vadd.f32 %v1830_v2, %v1781_v50  ;;  %7943 = vst [vmem:[#allocation25_spill] sm:$0xff] %v5990_v17 }
  0xd2   :  { %v1926_v59 = vadd.f32 %v1925_v10, %v1877_v5 }
  0xd3   :  { %2025 = vmatmul.bf16.gmra.mxu1 %v5974_v12  ;;  %2074 = vmatmul.bf16.gmra.mxu2 %v5976_v13  ;;  %v1977_v52 = vpop.f32.mrf.mxu0 }
  0xd4   :  { %v5986_v33 = vadd.f32 %v1974_v46, %v1926_v59  ;;  %v4764_v59 = vld [vmem:[%s7855_s1 + $0xd4] sm:$0xf]  ;;  %v3606_v46 = vld [vmem:[%s7855_s1 + $0x108] sm:$0xf0] }
  0xd6   :  { %2123 = vmatmul.bf16.gmra.mxu3 %v5978_v35  ;;  %v1879_v23 = vpop.f32.mrf.mxu2  ;;  %2172 = vmatmul.bf16.gmra.mxu0 %v5990_v17  ;;  %v4772_v17 = vld [vmem:[%s7855_s1 + $0x10c] sm:$0xf0] }
  0xd7   :  { %v1880_v51 = vadd.f32 %v1879_v23, %v1831_v43  ;;  %v3604_v43 = vld [vmem:[%s7855_s1 + $0xd8] sm:$0xf]  ;;  %v6014_v23 = vor.u32 %v4764_v59, %v3598_v36 }
  0xd8   :  { %v1832_v30 = vpop.f32.mrf.mxu1 }
  0xd9   :  { %v1928_v24 = vpop.f32.mrf.mxu3  ;;  %v1833_v4 = vadd.f32 %v1832_v30, %v1783_v3  ;;  %v4765_v3 = vld [vmem:[%s7855_s1 + $0xdc] sm:$0xf]  ;;  %7944 = vst [vmem:[#allocation26_spill] sm:$0xff] %v6014_v23 }
  0xda   :  { %v1929_v9 = vadd.f32 %v1928_v24, %v1880_v51  ;;  %v6016_v51 = vor.u32 %v4771_v37, %v3604_v43  ;;  %v6018_v30 = vor.u32 %v4765_v3, %v3606_v46 }
  0xdb   :  { %v1979_v2 = vpop.f32.mrf.mxu0 }
  0xdc   :  { %v5994_v50 = vadd.f32 %v1977_v52, %v1929_v9  ;;  %7945 = vst [vmem:[#allocation27_spill] sm:$0xff] %v6016_v51  ;;  %v3612_v9 = vld [vmem:[%s7855_s1 + $0xe0] sm:$0xf] }
  0xdd   :  { %7946 = vst [vmem:[#allocation28_spill] sm:$0xff] %v6018_v30  ;;  %v6031_v59 = vor.u32 %v4772_v17, %v3612_v9 }
  0xde   :  { %v1881_v5 = vpop.f32.mrf.mxu2 }
  0xdf   :  { %v1882_v10 = vadd.f32 %v1881_v5, %v1833_v4  ;;  %7947 = vst [vmem:[#allocation29_spill] sm:$0xff] %v6031_v59 }
  0xe0   :  { %v1835_v24 = vpop.f32.mrf.mxu1 }
  0xe1   :  { %v1930_v52 = vpop.f32.mrf.mxu3  ;;  %v1836_v13 = vadd.f32 %v1835_v24, %v5829_v29  ;;  %v3654_v24 = vld [vmem:[%s7855_s1 + $0x168] sm:$0xf0] }
  0xe2   :  { %v1931_v35 = vadd.f32 %v1930_v52, %v1882_v10  ;;  %v3646_v10 = vld [vmem:[%s7855_s1 + $0x160] sm:$0xf0]  ;;  %v4783_v52 = vld [vmem:[%s7855_s1 + $0x164] sm:$0xf0] }
  0xe3   :  { %2030 = vmatmul.bf16.gmra.mxu1 %v6014_v23  ;;  %2079 = vmatmul.bf16.gmra.mxu2 %v6016_v51  ;;  %v1982_v36 = vpop.f32.mrf.mxu0 }
  0xe4   :  { %v6027_v4 = vadd.f32 %v1979_v2, %v1931_v35  ;;  %v4776_v2 = vld [vmem:[%s7855_s1 + $0x134] sm:$0xf] }
  0xe6   :  { %2128 = vmatmul.bf16.gmra.mxu3 %v6018_v30  ;;  %v1884_v43 = vpop.f32.mrf.mxu2  ;;  %2177 = vmatmul.bf16.gmra.mxu0 %v6031_v59  ;;  %v3660_v59 = vld [vmem:[%s7855_s1 + $0x140] sm:$0xf]  ;;  %v4784_v30 = vld [vmem:[%s7855_s1 + $0x16c] sm:$0xf0] }
  0xe7   :  { %v1885_v37 = vadd.f32 %v1884_v43, %v1836_v13  ;;  %v3652_v13 = vld [vmem:[%s7855_s1 + $0x138] sm:$0xf] }
  0xe8   :  { %v1837_v46 = vpop.f32.mrf.mxu1 }
  0xe9   :  { %v1933_v3 = vpop.f32.mrf.mxu3  ;;  %v1838_v29 = vadd.f32 %v1837_v46, %v5858_v1  ;;  %v4777_v1 = vld [vmem:[%s7855_s1 + $0x13c] sm:$0xf] }
  0xea   :  { %v1934_v5 = vadd.f32 %v1933_v3, %v1885_v37  ;;  %v6056_v37 = vor.u32 %v4776_v2, %v3646_v10  ;;  %v6058_v3 = vor.u32 %v4783_v52, %v3652_v13  ;;  %v6073_v2 = vor.u32 %v4784_v30, %v3660_v59  ;;  %v3694_v59 = vld [vmem:[%s7855_s1 + $0x1c0] sm:$0xf0] }
  0xeb   :  { %v1984_v17 = vpop.f32.mrf.mxu0 }
  0xec   :  { %v6036_v35 = vadd.f32 %v1982_v36, %v1934_v5  ;;  %7948 = vst [vmem:[#allocation30_spill] sm:$0xff] %v6056_v37  ;;  %v6060_v5 = vor.u32 %v4777_v1, %v3654_v24 }
  0xed   :  { %7949 = vst [vmem:[#allocation31_spill] sm:$0xff] %v6058_v3 }
  0xee   :  { %v1886_v9 = vpop.f32.mrf.mxu2  ;;  %7950 = vst [vmem:[#allocation32_spill] sm:$0xff] %v6060_v5 }
  0xef   :  { %v1887_v36 = vadd.f32 %v1886_v9, %v1838_v29  ;;  %7951 = vst [vmem:[#allocation33_spill] sm:$0xff] %v6073_v2 }
  0xf0   :  { %v1840_v46 = vpop.f32.mrf.mxu1 }
  0xf1   :  { %v1935_v43 = vpop.f32.mrf.mxu3  ;;  %v1841_v23 = vadd.f32 %v1840_v46, %v5892_v34 }
  0xf2   :  { %v1936_v51 = vadd.f32 %v1935_v43, %v1887_v36  ;;  %v4795_v36 = vld [vmem:[%s7855_s1 + $0x1c4] sm:$0xf0]  ;;  %v3702_v43 = vld [vmem:[%s7855_s1 + $0x1c8] sm:$0xf0] }
  0xf3   :  { %2035 = vmatmul.bf16.gmra.mxu1 %v6056_v37  ;;  %2084 = vmatmul.bf16.gmra.mxu2 %v6058_v3  ;;  %v1987_v10 = vpop.f32.mrf.mxu0 }
  0xf4   :  { %v6069_v29 = vadd.f32 %v1984_v17, %v1936_v51  ;;  %v4788_v17 = vld [vmem:[%s7855_s1 + $0x194] sm:$0xf] }
  0xf6   :  { %2133 = vmatmul.bf16.gmra.mxu3 %v6060_v5  ;;  %v1889_v13 = vpop.f32.mrf.mxu2  ;;  %2182 = vmatmul.bf16.gmra.mxu0 %v6073_v2  ;;  %v3708_v2 = vld [vmem:[%s7855_s1 + $0x1a0] sm:$0xf]  ;;  %v4796_v5 = vld [vmem:[%s7855_s1 + $0x1cc] sm:$0xf0] }
  0xf7   :  { %v1890_v52 = vadd.f32 %v1889_v13, %v1841_v23  ;;  %v3700_v23 = vld [vmem:[%s7855_s1 + $0x198] sm:$0xf] }
  0xf8   :  { %v1842_v24 = vpop.f32.mrf.mxu1 }
  0xf9   :  { %v1938_v1 = vpop.f32.mrf.mxu3  ;;  %v1843_v34 = vadd.f32 %v1842_v24, %v5912_v55  ;;  %v4789_v55 = vld [vmem:[%s7855_s1 + $0x19c] sm:$0xf] }
  0xfa   :  { %v1939_v9 = vadd.f32 %v1938_v1, %v1890_v52  ;;  %v6098_v52 = vor.u32 %v4788_v17, %v3694_v59  ;;  %v6100_v1 = vor.u32 %v4795_v36, %v3700_v23  ;;  %v4500_v17 = vld [vmem:[%s7854_s2 + $0x4f0] sm:$0xf]  ;;  %v4993_v59 = vld [vmem:[%s7854_s2 + $0x4f4] sm:$0xf0] }
  0xfb   :  { %v1989_v30 = vpop.f32.mrf.mxu0  ;;  %v4564_v23 = vld [vmem:[%s7854_s2 + $0x570] sm:$0xf]  ;;  %v5025_v36 = vld [vmem:[%s7854_s2 + $0x5f4] sm:$0xf0] }
  0xfc   :  { %v6078_v51 = vadd.f32 %v1987_v10, %v1939_v9  ;;  %7952 = vst [vmem:[#allocation34_spill] sm:$0xff] %v6098_v52  ;;  %v6102_v9 = vor.u32 %v4789_v55, %v3702_v43 }
  0xfd   :  { %7953 = vst [vmem:[#allocation35_spill] sm:$0xff] %v6100_v1 }
  0xfe   :  { %v1891_v46 = vpop.f32.mrf.mxu2  ;;  %7954 = vst [vmem:[#allocation36_spill] sm:$0xff] %v6102_v9 }
  0xff   :  { %v1892_v10 = vadd.f32 %v1891_v46, %v1843_v34  ;;  %v6114_v34 = vor.u32 %v4796_v5, %v3708_v2  ;;  %v5009_v5 = vld [vmem:[%s7854_s2 + $0x574] sm:$0xf0]  ;;  %v4628_v2 = vld [vmem:[%s7854_s2 + $0x5f0] sm:$0xf] }
 0x100   :  { %v1845_v24 = vpop.f32.mrf.mxu1  ;;  %v4565_v43 = vor.u32 %v5009_v5, %v4564_v23  ;;  %v4629_v46 = vor.u32 %v5025_v36, %v4628_v2  ;;  %v4620_v23 = vld [vmem:[%s7854_s2 + $0x5e0] sm:$0xf] }
 0x101   :  { %v1940_v13 = vpop.f32.mrf.mxu3  ;;  %7955 = vst [vmem:[#allocation37_spill] sm:$0xff] %v6114_v34  ;;  %v1846_v55 = vadd.f32 %v1845_v24, %v5853_v60  ;;  %v5007_v24 = vld [vmem:[%s7854_s2 + $0x564] sm:$0xf0] }
 0x102   :  { %v1941_v3 = vadd.f32 %v1940_v13, %v1892_v10  ;;  %v4492_v13 = vld [vmem:[%s7854_s2 + $0x4e0] sm:$0xf]  ;;  %2257 = vmatpush.bf16.msrb.mxu2 %v4565_v43  ;;  %2306 = vmatpush.bf16.msrb.mxu3 %v4629_v46  ;;  %v4800_v43 = vld [vmem:[%s7855_s1 + $0x1f4] sm:$0xf]  ;;  %v4989_v46 = vld [vmem:[%s7854_s2 + $0x4d4] sm:$0xf0] }
 0x103   :  { %2040 = vmatmul.bf16.gmra.mxu1 %v6098_v52  ;;  %2089 = vmatmul.bf16.gmra.mxu2 %v6100_v1  ;;  %v3750_v52 = vld [vmem:[%s7855_s1 + $0x228] sm:$0xf0] }
 0x104   :  { %v6110_v37 = vadd.f32 %v1989_v30, %v1941_v3  ;;  %v1992_v3 = vpop.f32.mrf.mxu0  ;;  %v4501_v30 = vor.u32 %v4993_v59, %v4500_v17  ;;  %v4991_v17 = vld [vmem:[%s7854_s2 + $0x4e4] sm:$0xf0]  ;;  %v4556_v59 = vld [vmem:[%s7854_s2 + $0x560] sm:$0xf] }
 0x105   :  { %v4493_v60 = vor.u32 %v4991_v17, %v4492_v13  ;;  %v4557_v2 = vor.u32 %v5007_v24, %v4556_v59  ;;  %v4484_v13 = vld [vmem:[%s7854_s2 + $0x4d0] sm:$0xf]  ;;  %v5005_v59 = vld [vmem:[%s7854_s2 + $0x554] sm:$0xf0] }
 0x106   :  { %2138 = vmatmul.bf16.gmra.mxu3 %v6102_v9  ;;  %v1894_v10 = vpop.f32.mrf.mxu2  ;;  %2208 = vmatpush.bf16.msrb.mxu1 %v4501_v30  ;;  %v5023_v30 = vld [vmem:[%s7854_s2 + $0x5e4] sm:$0xf0]  ;;  %v4485_v17 = vor.u32 %v4989_v46, %v4484_v13  ;;  %v5021_v24 = vld [vmem:[%s7854_s2 + $0x5d4] sm:$0xf0]  ;;  %v4848_v13 = vld [vmem:[%s7854_s2 + $0x74] sm:$0xf] }
 0x107   :  { %v1895_v9 = vadd.f32 %v1894_v10, %v1846_v55  ;;  %2187 = vmatmul.bf16.gmra.mxu0 %v6114_v34  ;;  %v4621_v36 = vor.u32 %v5023_v30, %v4620_v23  ;;  %v3742_v10 = vld [vmem:[%s7855_s1 + $0x220] sm:$0xf0]  ;;  %2258 = vmatpush.bf16.msrb.mxu2 %v4557_v2  ;;  %v4807_v30 = vld [vmem:[%s7855_s1 + $0x224] sm:$0xf0]  ;;  %v4801_v34 = vld [vmem:[%s7855_s1 + $0x1fc] sm:$0xf] }
 0x108   :  { %v1847_v5 = vpop.f32.mrf.mxu1  ;;  %v6212_v25 = vor.u32 %v4800_v43, %v3742_v10  ;;  %v4808_v43 = vld [vmem:[%s7855_s1 + $0x22c] sm:$0xf0] }
 0x109   :  { %v1943_v1 = vpop.f32.mrf.mxu3  ;;  %2307 = vmatpush.bf16.msrb.mxu3 %v4621_v36  ;;  %v1848_v46 = vadd.f32 %v1847_v5, %v5884_v21  ;;  %v3926_v36 = vld [vmem:[%s7854_s2 + $0x78] sm:$0xf0]  ;;  %v4476_v21 = vld [vmem:[%s7854_s2 + $0x4c0] sm:$0xf]  ;;  %v4987_v5 = vld [vmem:[%s7854_s2 + $0x4c4] sm:$0xf0] }
 0x10a   :  { %v1944_v55 = vadd.f32 %v1943_v1, %v1895_v9  ;;  %2209 = vmatpush.bf16.msrb.mxu1 %v4493_v60  ;;  %v4548_v1 = vld [vmem:[%s7854_s2 + $0x550] sm:$0xf]  ;;  %7956 = vst [vmem:[#allocation38_spill] sm:$0xff] %v6212_v25 }
 0x10b   :  { %v4612_v60 = vld [vmem:[%s7854_s2 + $0x5d0] sm:$0xf]  ;;  %v4549_v2 = vor.u32 %v5005_v59, %v4548_v1  ;;  %v3756_v59 = vld [vmem:[%s7855_s1 + $0x200] sm:$0xf] }
 0x10c   :  { %v6170_v9 = vadd.f32 %v1992_v3, %v1944_v55  ;;  %v1994_v23 = vpop.f32.mrf.mxu0  ;;  %v3748_v3 = vld [vmem:[%s7855_s1 + $0x1f8] sm:$0xf]  ;;  %v4613_v55 = vor.u32 %v5021_v24, %v4612_v60  ;;  %v3929_v60 = vor.u32 %v4848_v13, %v3926_v36  ;;  %v4540_v24 = vld [vmem:[%s7854_s2 + $0x540] sm:$0xf]  ;;  %v5003_v13 = vld [vmem:[%s7854_s2 + $0x544] sm:$0xf0] }
 0x10d   :  { %v6214_v20 = vor.u32 %v4807_v30, %v3748_v3  ;;  %2259 = vmatpush.bf16.msrb.mxu2 %v4549_v2  ;;  %v4604_v36 = vld [vmem:[%s7854_s2 + $0x5c0] sm:$0xf]  ;;  %v4541_v10 = vor.u32 %v5003_v13, %v4540_v24  ;;  %v4846_v3 = vld [vmem:[%s7854_s2 + $0x64] sm:$0xf]  ;;  %v3918_v30 = vld [vmem:[%s7854_s2 + $0x68] sm:$0xf0] }
 0x10e   :  { %v1896_v1 = vpop.f32.mrf.mxu2  ;;  %2210 = vmatpush.bf16.msrb.mxu1 %v4485_v17  ;;  %v4477_v17 = vor.u32 %v4987_v5, %v4476_v21  ;;  %2308 = vmatpush.bf16.msrb.mxu3 %v4613_v55  ;;  %v4605_v21 = vor.u32 %v5019_v19, %v4604_v36  ;;  %v3921_v5 = vor.u32 %v4846_v3, %v3918_v30  ;;  %v4468_v55 = vld [vmem:[%s7854_s2 + $0x4b0] sm:$0xf]  ;;  %v5017_v24 = vld [vmem:[%s7854_s2 + $0x5b4] sm:$0xf0] }
 0x10f   :  { %v1897_v12 = vadd.f32 %v1896_v1, %v1848_v46  ;;  %7957 = vst [vmem:[#allocation39_spill] sm:$0xff] %v6214_v20  ;;  %v6225_v1 = vor.u32 %v4801_v34, %v3750_v52  ;;  %2355 = vmatpush.bf16.msrb.mxu0 %v3929_v60  ;;  %v6240_v34 = vor.u32 %v4808_v43, %v3756_v59  ;;  %v4985_v60 = vld [vmem:[%s7854_s2 + $0x4b4] sm:$0xf0]  ;;  %v4532_v19 = vld [vmem:[%s7854_s2 + $0x530] sm:$0xf] }
 0x110   :  { %v1850_v46 = vpop.f32.mrf.mxu1  ;;  %v4596_v59 = vld [vmem:[%s7854_s2 + $0x5b0] sm:$0xf]  ;;  %v4844_v43 = vld [vmem:[%s7854_s2 + $0x54] sm:$0xf] }
 0x111   :  { %v1945_v32 = vpop.f32.mrf.mxu3  ;;  %7958 = vst [vmem:[#allocation40_spill] sm:$0xff] %v6225_v1  ;;  %2260 = vmatpush.bf16.msrb.mxu2 %v4541_v10  ;;  %v4597_v36 = vor.u32 %v5017_v24, %v4596_v59  ;;  %v3910_v10 = vld [vmem:[%s7854_s2 + $0x58] sm:$0xf0]  ;;  %v4842_v24 = vld [vmem:[%s7854_s2 + $0x44] sm:$0xf] }
 0x112   :  { %v1946_v2 = vadd.f32 %v1945_v32, %v1897_v12  ;;  %2211 = vmatpush.bf16.msrb.mxu1 %v4477_v17  ;;  %7959 = vst [vmem:[#allocation41_spill] sm:$0xff] %v6240_v34  ;;  %v4469_v12 = vor.u32 %v4985_v60, %v4468_v55  ;;  %v1851_v17 = vadd.f32 %v1850_v46, %v5907_v53  ;;  %v4983_v53 = vld [vmem:[%s7854_s2 + $0x4a4] sm:$0xf0]  ;;  %v4524_v46 = vld [vmem:[%s7854_s2 + $0x520] sm:$0xf] }
 0x113   :  { %2045 = vmatmul.bf16.gmra.mxu1 %v6212_v25  ;;  %2094 = vmatmul.bf16.gmra.mxu2 %v6214_v20  ;;  %v3913_v30 = vor.u32 %v4844_v43, %v3910_v10  ;;  %v4999_v60 = vld [vmem:[%s7854_s2 + $0x524] sm:$0xf0] }
 0x114   :  { %v6236_v52 = vadd.f32 %v1994_v23, %v1946_v2  ;;  %v1997_v32 = vpop.f32.mrf.mxu0  ;;  %v5001_v23 = vld [vmem:[%s7854_s2 + $0x534] sm:$0xf0]  ;;  %2309 = vmatpush.bf16.msrb.mxu3 %v4605_v21  ;;  %2356 = vmatpush.bf16.msrb.mxu0 %v3921_v5  ;;  %v4460_v2 = vld [vmem:[%s7854_s2 + $0x4a0] sm:$0xf]  ;;  %v4525_v59 = vor.u32 %v4999_v60, %v4524_v46  ;;  %v5011_v25 = vld [vmem:[%s7854_s2 + $0x584] sm:$0xf0] }
 0x115   :  { %v4533_v13 = vor.u32 %v5001_v23, %v4532_v19  ;;  %v4461_v55 = vor.u32 %v4983_v53, %v4460_v2  ;;  %v4588_v19 = vld [vmem:[%s7854_s2 + $0x5a0] sm:$0xf]  ;;  %v4812_v2 = vld [vmem:[%s7855_s1 + $0x254] sm:$0xf]  ;;  %v4452_v53 = vld [vmem:[%s7854_s2 + $0x490] sm:$0xf] }
 0x116   :  { %2143 = vmatmul.bf16.gmra.mxu3 %v6225_v1  ;;  %v1899_v3 = vpop.f32.mrf.mxu2  ;;  %2212 = vmatpush.bf16.msrb.mxu1 %v4469_v12  ;;  %v5015_v12 = vld [vmem:[%s7854_s2 + $0x5a4] sm:$0xf0]  ;;  %v5013_v60 = vld [vmem:[%s7854_s2 + $0x594] sm:$0xf0] }
 0x117   :  { %v1900_v21 = vadd.f32 %v1899_v3, %v1851_v17  ;;  %2192 = vmatmul.bf16.gmra.mxu0 %v6240_v34  ;;  %2261 = vmatpush.bf16.msrb.mxu2 %v4533_v13  ;;  %v3902_v17 = vld [vmem:[%s7854_s2 + $0x48] sm:$0xf0]  ;;  %v4589_v10 = vor.u32 %v5015_v12, %v4588_v19  ;;  %v3790_v13 = vld [vmem:[%s7855_s1 + $0x280] sm:$0xf0]  ;;  %v3796_v12 = vld [vmem:[%s7855_s1 + $0x258] sm:$0xf] }
 0x118   :  { %v1852_v23 = vpop.f32.mrf.mxu1  ;;  %2310 = vmatpush.bf16.msrb.mxu3 %v4597_v36  ;;  %2357 = vmatpush.bf16.msrb.mxu0 %v3913_v30  ;;  %v3905_v3 = vor.u32 %v4842_v24, %v3902_v17  ;;  %v4981_v36 = vld [vmem:[%s7854_s2 + $0x494] sm:$0xf0]  ;;  %v4516_v30 = vld [vmem:[%s7854_s2 + $0x510] sm:$0xf]  ;;  %v4840_v17 = vld [vmem:[%s7854_s2 + $0x34] sm:$0xf]  ;;  %v6350_v1 = vor.u32 %v4812_v2, %v3790_v13 }
 0x119   :  { %v1948_v5 = vpop.f32.mrf.mxu3  ;;  %v4820_v2 = vld [vmem:[%s7855_s1 + $0x28c] sm:$0xf0] }
 0x11a   :  { %v1949_v43 = vadd.f32 %v1948_v5, %v1900_v21  ;;  %2213 = vmatpush.bf16.msrb.mxu1 %v4461_v55  ;;  %v4453_v21 = vor.u32 %v4981_v36, %v4452_v53  ;;  %v4997_v5 = vld [vmem:[%s7854_s2 + $0x514] sm:$0xf0]  ;;  %v4580_v55 = vld [vmem:[%s7854_s2 + $0x590] sm:$0xf]  ;;  %v4813_v53 = vld [vmem:[%s7855_s1 + $0x25c] sm:$0xf] }
 0x11b   :  { %2262 = vmatpush.bf16.msrb.mxu2 %v4525_v59  ;;  %v4517_v24 = vor.u32 %v4997_v5, %v4516_v30  ;;  %v3798_v36 = vld [vmem:[%s7855_s1 + $0x288] sm:$0xf0]  ;;  %v4581_v34 = vor.u32 %v5013_v60, %v4580_v55  ;;  %v3894_v59 = vld [vmem:[%s7854_s2 + $0x38] sm:$0xf0]  ;;  %v4444_v5 = vld [vmem:[%s7854_s2 + $0x480] sm:$0xf] }
 0x11c   :  { %v6308_v46 = vadd.f32 %v1997_v32, %v1949_v43  ;;  %v1999_v19 = vpop.f32.mrf.mxu0  ;;  %v4819_v32 = vld [vmem:[%s7855_s1 + $0x284] sm:$0xf0]  ;;  %v1853_v43 = vadd.f32 %v1852_v23, %v5932_v14  ;;  %2311 = vmatpush.bf16.msrb.mxu3 %v4589_v10  ;;  %2358 = vmatpush.bf16.msrb.mxu0 %v3905_v3  ;;  %v3804_v14 = vld [vmem:[%s7855_s1 + $0x260] sm:$0xf]  ;;  %v3897_v23 = vor.u32 %v4840_v17, %v3894_v59 }
 0x11d   :  { %v4979_v10 = vld [vmem:[%s7854_s2 + $0x484] sm:$0xf0]  ;;  %v4508_v3 = vld [vmem:[%s7854_s2 + $0x500] sm:$0xf]  ;;  %v6352_v20 = vor.u32 %v4819_v32, %v3796_v12  ;;  %v4838_v12 = vld [vmem:[%s7854_s2 + $0x24] sm:$0xf] }
 0x11e   :  { %v1901_v30 = vpop.f32.mrf.mxu2  ;;  %2214 = vmatpush.bf16.msrb.mxu1 %v4453_v21  ;;  %v4445_v21 = vor.u32 %v4979_v10, %v4444_v5  ;;  %v4995_v17 = vld [vmem:[%s7854_s2 + $0x504] sm:$0xf0]  ;;  %v4572_v59 = vld [vmem:[%s7854_s2 + $0x580] sm:$0xf]  ;;  %v3886_v32 = vld [vmem:[%s7854_s2 + $0x28] sm:$0xf0] }
 0x11f   :  { %v1902_v55 = vadd.f32 %v1901_v30, %v1853_v43  ;;  %v6363_v43 = vor.u32 %v4813_v53, %v3798_v36  ;;  %2263 = vmatpush.bf16.msrb.mxu2 %v4517_v24  ;;  %v4509_v13 = vor.u32 %v4995_v17, %v4508_v3  ;;  %v4573_v5 = vor.u32 %v5011_v25, %v4572_v59  ;;  %v3878_v25 = vld [vmem:[%s7854_s2 + $0x18] sm:$0xf0]  ;;  %v3870_v17 = vld [vmem:[%s7854_s2 + $0x8] sm:$0xf0] }
 0x120   :  { %v1855_v18 = vpop.f32.mrf.mxu1  ;;  %2312 = vmatpush.bf16.msrb.mxu3 %v4581_v34  ;;  %2359 = vmatpush.bf16.msrb.mxu0 %v3897_v23  ;;  %v3889_v53 = vor.u32 %v4838_v12, %v3886_v32  ;;  %v6378_v24 = vor.u32 %v4820_v2, %v3804_v14  ;;  %v4836_v34 = vld [vmem:[%s7854_s2 + $0x14] sm:$0xf]  ;;  %v3838_v12 = vld [vmem:[%s7855_s1 + $0x2e0] sm:$0xf0]  ;;  %v3844_v32 = vld [vmem:[%s7855_s1 + $0x2b8] sm:$0xf] }
 0x121   :  { %v1950_v60 = vpop.f32.mrf.mxu3  ;;  %v3881_v23 = vor.u32 %v4836_v34, %v3878_v25  ;;  %v4824_v2 = vld [vmem:[%s7855_s1 + $0x2b4] sm:$0xf] }
 0x122   :  { %v1951_v30 = vadd.f32 %v1950_v60, %v1902_v55  ;;  %2215 = vmatpush.bf16.msrb.mxu1 %v4445_v21  ;;  %v4834_v21 = vld [vmem:[%s7854_s2 + $0x4] sm:$0xf] }
 0x123   :  { %2050 = vmatmul.bf16.gmra.mxu1 %v6350_v1  ;;  %2099 = vmatmul.bf16.gmra.mxu2 %v6352_v20 }
 0x124   :  { %v6374_v36 = vadd.f32 %v1999_v19, %v1951_v30  ;;  %v2002_v10 = vpop.f32.mrf.mxu0  ;;  %2264 = vmatpush.bf16.msrb.mxu2 %v4509_v13  ;;  %v1856_v19 = vadd.f32 %v1855_v18, %v5855_v62  ;;  %2313 = vmatpush.bf16.msrb.mxu3 %v4573_v5  ;;  %v3873_v18 = vor.u32 %v4834_v21, %v3870_v17  ;;  %v4831_v30 = vld [vmem:[%s7855_s1 + $0x2e4] sm:$0xf0] }
 0x125   :  { %2360 = vmatpush.bf16.msrb.mxu0 %v3889_v53  ;;  %v4825_v53 = vld [vmem:[%s7855_s1 + $0x2bc] sm:$0xf] }
 0x126   :  { %2148 = vmatmul.bf16.gmra.mxu3 %v6363_v43  ;;  %v1904_v3 = vpop.f32.mrf.mxu2 }
 0x127   :  { %v1905_v14 = vadd.f32 %v1904_v3, %v1856_v19  ;;  %2197 = vmatmul.bf16.gmra.mxu0 %v6378_v24  ;;  %v6418_v3 = vor.u32 %v4831_v30, %v3844_v32 }
 0x128   :  { %v1857_v60 = vpop.f32.mrf.mxu1 }
 0x129   :  { %v1953_v55 = vpop.f32.mrf.mxu3  ;;  %2361 = vmatpush.bf16.msrb.mxu0 %v3881_v23  ;;  %v1858_v5 = vadd.f32 %v1857_v60, %v5886_v22  ;;  %v6416_v23 = vor.u32 %v4824_v2, %v3838_v12  ;;  %v3852_v22 = vld [vmem:[%s7855_s1 + $0x2c0] sm:$0xf]  ;;  %v4832_v60 = vld [vmem:[%s7855_s1 + $0x2ec] sm:$0xf0] }
 0x12a   :  { %v1954_v59 = vadd.f32 %v1953_v55, %v1905_v14 }
 0x12c   :  { %v6395_v62 = vadd.f32 %v2002_v10, %v1954_v59  ;;  %v2004_v13 = vpop.f32.mrf.mxu0  ;;  %v3846_v10 = vld [vmem:[%s7855_s1 + $0x2e8] sm:$0xf0]  ;;  %v6432_v59 = vor.u32 %v4832_v60, %v3852_v22  ;;  %v3526_v60 = vld [vmem:[%s7855_s1 + $0x58] sm:$0xf0] }
 0x12d   :  { %2362 = vmatpush.bf16.msrb.mxu0 %v3873_v18  ;;  %v6420_v55 = vor.u32 %v4825_v53, %v3846_v10  ;;  %v4742_v10 = vld [vmem:[%s7855_s1 + $0x24] sm:$0xf]  ;;  %v4743_v22 = vld [vmem:[%s7855_s1 + $0x2c] sm:$0xf] }
 0x12e   :  { %v1906_v34 = vpop.f32.mrf.mxu2  ;;  %7960 = vst [vmem:[#allocation42_spill] sm:$0xff] %v6432_v59 }
 0x12f   :  { %v1907_v25 = vadd.f32 %v1906_v34, %v1858_v5 }
 0x130   :  { %v1860_v14 = vpop.f32.mrf.mxu1 }
 0x131   :  { %v1955_v19 = vpop.f32.mrf.mxu3  ;;  %v1861_v2 = vadd.f32 %v1860_v14, %v5909_v54  ;;  %v3524_v54 = vld [vmem:[%s7855_s1 + $0x28] sm:$0xf] }
 0x132   :  { %v1956_v21 = vadd.f32 %v1955_v19, %v1907_v25  ;;  %v3518_v25 = vld [vmem:[%s7855_s1 + $0x50] sm:$0xf0]  ;;  %v4749_v19 = vld [vmem:[%s7855_s1 + $0x54] sm:$0xf0] }
 0x133   :  { %2055 = vmatmul.bf16.gmra.mxu1 %v6416_v23  ;;  %2104 = vmatmul.bf16.gmra.mxu2 %v6418_v3 }
 0x134   :  { %v6428_v17 = vadd.f32 %v2004_v13, %v1956_v21  ;;  %v2007_v18 = vpop.f32.mrf.mxu0 }
 0x136   :  { %2153 = vmatmul.bf16.gmra.mxu3 %v6420_v55  ;;  %v1909_v12 = vpop.f32.mrf.mxu2 }
 0x137   :  { %v1910_v32 = vadd.f32 %v1909_v12, %v1861_v2  ;;  %2202 = vmatmul.bf16.gmra.mxu0 %v6432_v59  ;;  %v6458_v12 = vor.u32 %v4742_v10, %v3518_v25 }
 0x138   :  { %v1862_v5 = vpop.f32.mrf.mxu1 }
 0x139   :  { %v1958_v30 = vpop.f32.mrf.mxu3  ;;  %v1863_v14 = vadd.f32 %v1862_v5, %v5934_v15  ;;  %7961 = vst [vmem:[#allocation43_spill] sm:$0xff] %v6458_v12 }
 0x13a   :  { %v1959_v53 = vadd.f32 %v1958_v30, %v1910_v32  ;;  %v6460_v32 = vor.u32 %v4749_v19, %v3524_v54 }
 0x13c   :  { %v6437_v13 = vadd.f32 %v2007_v18, %v1959_v53  ;;  %v2009_v34 = vpop.f32.mrf.mxu0  ;;  %7962 = vst [vmem:[#allocation44_spill] sm:$0xff] %v6460_v32  ;;  %v6462_v53 = vor.u32 %v4743_v22, %v3526_v60 }
 0x13e   :  { %v1911_v21 = vpop.f32.mrf.mxu2  ;;  %7963 = vst [vmem:[#allocation45_spill] sm:$0xff] %v6462_v53 }
 0x13f   :  { %v1912_v18 = vadd.f32 %v1911_v21, %v1863_v14 }
 0x140   :  { %v2021_v30 = vpop.f32.mrf.mxu1 }
 0x141   :  { %v1960_v2 = vpop.f32.mrf.mxu3  ;;  %v2022_v15 = vadd.f32 %v2021_v30, %v5954_v16  ;;  %v4754_v16 = vld [vmem:[%s7855_s1 + $0x84] sm:$0xf] }
 0x142   :  { %v1961_v59 = vadd.f32 %v1960_v2, %v1912_v18  ;;  %v3572_v18 = vld [vmem:[%s7855_s1 + $0x88] sm:$0xf]  ;;  %v3574_v2 = vld [vmem:[%s7855_s1 + $0xb8] sm:$0xf0] }
 0x143   :  { %2216 = vmatmul.bf16.vlgmr.msrb.gmra.mxu1 %v6458_v12  ;;  %2265 = vmatmul.bf16.vlgmr.msrb.gmra.mxu2 %v6460_v32 }
 0x144   :  { %v6465_v5 = vadd.f32 %v2009_v34, %v1961_v59  ;;  %v2168_v14 = vpop.f32.mrf.mxu0  ;;  %v3566_v34 = vld [vmem:[%s7855_s1 + $0xb0] sm:$0xf0] }
 0x146   :  { %2314 = vmatmul.bf16.vlgmr.msrb.gmra.mxu3 %v6462_v53  ;;  %v2070_v21 = vpop.f32.mrf.mxu2 }
 0x147   :  { %v2071_v10 = vadd.f32 %v2070_v21, %v2022_v15  ;;  %2363 = vmatmul.bf16.vlgmr.msrb.gmra.mxu0 %v5248_v0  ;;  %v4761_v0 = vld [vmem:[%s7855_s1 + $0xb4] sm:$0xf0]  ;;  %v6492_v21 = vor.u32 %v4754_v16, %v3566_v34 }
 0x148   :  { %v2023_v54 = vpop.f32.mrf.mxu1 }
 0x149   :  { %v2119_v25 = vpop.f32.mrf.mxu3  ;;  %v2024_v22 = vadd.f32 %v2023_v54, %v5986_v33  ;;  %v4755_v33 = vld [vmem:[%s7855_s1 + $0x8c] sm:$0xf]  ;;  %7964 = vst [vmem:[#allocation46_spill] sm:$0xff] %v6492_v21 }
 0x14a   :  { %v2120_v19 = vadd.f32 %v2119_v25, %v2071_v10  ;;  %v6494_v10 = vor.u32 %v4761_v0, %v3572_v18  ;;  %v6496_v54 = vor.u32 %v4755_v33, %v3574_v2 }
 0x14c   :  { %v6472_v60 = vadd.f32 %v2168_v14, %v2120_v19  ;;  %v2170_v59 = vpop.f32.mrf.mxu0  ;;  %7965 = vst [vmem:[#allocation47_spill] sm:$0xff] %v6494_v10 }
 0x14d   :  { %7966 = vst [vmem:[#allocation48_spill] sm:$0xff] %v6496_v54 }
 0x14e   :  { %v2072_v30 = vpop.f32.mrf.mxu2 }
 0x14f   :  { %v2073_v15 = vadd.f32 %v2072_v30, %v2024_v22 }
 0x150   :  { %v2026_v25 = vpop.f32.mrf.mxu1 }
 0x151   :  { %v2121_v14 = vpop.f32.mrf.mxu3  ;;  %v2027_v53 = vadd.f32 %v2026_v25, %v5994_v50  ;;  %v4766_v50 = vld [vmem:[%s7855_s1 + $0xe4] sm:$0xf] }
 0x152   :  { %v2122_v19 = vadd.f32 %v2121_v14, %v2073_v15  ;;  %v3614_v15 = vld [vmem:[%s7855_s1 + $0x110] sm:$0xf0]  ;;  %v3622_v14 = vld [vmem:[%s7855_s1 + $0x118] sm:$0xf0] }
 0x153   :  { %2221 = vmatmul.bf16.gmra.mxu1 %v6492_v21  ;;  %2270 = vmatmul.bf16.gmra.mxu2 %v6494_v10 }
 0x154   :  { %v6499_v32 = vadd.f32 %v2170_v59, %v2122_v19  ;;  %v2173_v22 = vpop.f32.mrf.mxu0 }
 0x156   :  { %2319 = vmatmul.bf16.gmra.mxu3 %v6496_v54  ;;  %v2075_v30 = vpop.f32.mrf.mxu2 }
 0x157   :  { %v2076_v16 = vadd.f32 %v2075_v30, %v2027_v53  ;;  %2368 = vmatmul.bf16.gmra.mxu0 %v5380_v63  ;;  %v3620_v53 = vld [vmem:[%s7855_s1 + $0xe8] sm:$0xf]  ;;  %v4773_v63 = vld [vmem:[%s7855_s1 + $0x114] sm:$0xf0]  ;;  %v6526_v30 = vor.u32 %v4766_v50, %v3614_v15 }
 0x158   :  { %v2028_v18 = vpop.f32.mrf.mxu1 }
 0x159   :  { %v2124_v34 = vpop.f32.mrf.mxu3  ;;  %v2029_v33 = vadd.f32 %v2028_v18, %v6027_v4  ;;  %v4767_v4 = vld [vmem:[%s7855_s1 + $0xec] sm:$0xf]  ;;  %7967 = vst [vmem:[#allocation49_spill] sm:$0xff] %v6526_v30 }
 0x15a   :  { %v2125_v0 = vadd.f32 %v2124_v34, %v2076_v16  ;;  %v6528_v16 = vor.u32 %v4773_v63, %v3620_v53  ;;  %v6530_v18 = vor.u32 %v4767_v4, %v3622_v14 }
 0x15c   :  { %v6506_v2 = vadd.f32 %v2173_v22, %v2125_v0  ;;  %v2175_v59 = vpop.f32.mrf.mxu0  ;;  %7968 = vst [vmem:[#allocation50_spill] sm:$0xff] %v6528_v16 }
 0x15d   :  { %7969 = vst [vmem:[#allocation51_spill] sm:$0xff] %v6530_v18 }
 0x15e   :  { %v2077_v25 = vpop.f32.mrf.mxu2 }
 0x15f   :  { %v2078_v19 = vadd.f32 %v2077_v25, %v2029_v33 }
 0x160   :  { %v2031_v34 = vpop.f32.mrf.mxu1 }
 0x161   :  { %v2126_v22 = vpop.f32.mrf.mxu3  ;;  %v2032_v54 = vadd.f32 %v2031_v34, %v6036_v35  ;;  %v4778_v35 = vld [vmem:[%s7855_s1 + $0x144] sm:$0xf] }
 0x162   :  { %v2127_v0 = vadd.f32 %v2126_v22, %v2078_v19  ;;  %v3662_v19 = vld [vmem:[%s7855_s1 + $0x170] sm:$0xf0]  ;;  %v3670_v22 = vld [vmem:[%s7855_s1 + $0x178] sm:$0xf0] }
 0x163   :  { %2226 = vmatmul.bf16.gmra.mxu1 %v6526_v30  ;;  %2275 = vmatmul.bf16.gmra.mxu2 %v6528_v16 }
 0x164   :  { %v6533_v10 = vadd.f32 %v2175_v59, %v2127_v0  ;;  %v2178_v33 = vpop.f32.mrf.mxu0 }
 0x166   :  { %2324 = vmatmul.bf16.gmra.mxu3 %v6530_v18  ;;  %v2080_v25 = vpop.f32.mrf.mxu2 }
 0x167   :  { %v2081_v50 = vadd.f32 %v2080_v25, %v2032_v54  ;;  %2373 = vmatmul.bf16.gmra.mxu0 %v5201_v44  ;;  %v3668_v54 = vld [vmem:[%s7855_s1 + $0x148] sm:$0xf]  ;;  %v4785_v44 = vld [vmem:[%s7855_s1 + $0x174] sm:$0xf0]  ;;  %v6560_v25 = vor.u32 %v4778_v35, %v3662_v19 }
 0x168   :  { %v2033_v53 = vpop.f32.mrf.mxu1 }
 0x169   :  { %v2129_v15 = vpop.f32.mrf.mxu3  ;;  %v2034_v4 = vadd.f32 %v2033_v53, %v6069_v29  ;;  %v4779_v29 = vld [vmem:[%s7855_s1 + $0x14c] sm:$0xf]  ;;  %7970 = vst [vmem:[#allocation52_spill] sm:$0xff] %v6560_v25 }
 0x16a   :  { %v2130_v63 = vadd.f32 %v2129_v15, %v2081_v50  ;;  %v6562_v50 = vor.u32 %v4785_v44, %v3668_v54  ;;  %v6564_v53 = vor.u32 %v4779_v29, %v3670_v22 }
 0x16c   :  { %v6540_v14 = vadd.f32 %v2178_v33, %v2130_v63  ;;  %v2180_v59 = vpop.f32.mrf.mxu0  ;;  %7971 = vst [vmem:[#allocation53_spill] sm:$0xff] %v6562_v50 }
 0x16d   :  { %7972 = vst [vmem:[#allocation54_spill] sm:$0xff] %v6564_v53 }
 0x16e   :  { %v2082_v34 = vpop.f32.mrf.mxu2 }
 0x16f   :  { %v2083_v0 = vadd.f32 %v2082_v34, %v2034_v4 }
 0x170   :  { %v2036_v15 = vpop.f32.mrf.mxu1 }
 0x171   :  { %v2131_v33 = vpop.f32.mrf.mxu3  ;;  %v2037_v18 = vadd.f32 %v2036_v15, %v6078_v51  ;;  %v4790_v51 = vld [vmem:[%s7855_s1 + $0x1a4] sm:$0xf] }
 0x172   :  { %v2132_v63 = vadd.f32 %v2131_v33, %v2083_v0  ;;  %v3710_v0 = vld [vmem:[%s7855_s1 + $0x1d0] sm:$0xf0]  ;;  %v3718_v33 = vld [vmem:[%s7855_s1 + $0x1d8] sm:$0xf0] }
 0x173   :  { %2231 = vmatmul.bf16.gmra.mxu1 %v6560_v25  ;;  %2280 = vmatmul.bf16.gmra.mxu2 %v6562_v50 }
 0x174   :  { %v6567_v16 = vadd.f32 %v2180_v59, %v2132_v63  ;;  %v2183_v4 = vpop.f32.mrf.mxu0 }
 0x176   :  { %2329 = vmatmul.bf16.gmra.mxu3 %v6564_v53  ;;  %v2085_v34 = vpop.f32.mrf.mxu2 }
 0x177   :  { %v2086_v35 = vadd.f32 %v2085_v34, %v2037_v18  ;;  %2378 = vmatmul.bf16.gmra.mxu0 %v5333_v40  ;;  %v3716_v18 = vld [vmem:[%s7855_s1 + $0x1a8] sm:$0xf]  ;;  %v4797_v40 = vld [vmem:[%s7855_s1 + $0x1d4] sm:$0xf0]  ;;  %v6594_v34 = vor.u32 %v4790_v51, %v3710_v0  ;;  %v3990_v51 = vld [vmem:[%s7854_s2 + $0xf8] sm:$0xf0] }
 0x178   :  { %v2038_v54 = vpop.f32.mrf.mxu1  ;;  %v4880_v0 = vld [vmem:[%s7854_s2 + $0x174] sm:$0xf] }
 0x179   :  { %v2134_v19 = vpop.f32.mrf.mxu3  ;;  %v2039_v29 = vadd.f32 %v2038_v54, %v6110_v37  ;;  %v4791_v37 = vld [vmem:[%s7855_s1 + $0x1ac] sm:$0xf]  ;;  %7973 = vst [vmem:[#allocation55_spill] sm:$0xff] %v6594_v34 }
 0x17a   :  { %v2135_v44 = vadd.f32 %v2134_v19, %v2086_v35  ;;  %v6596_v35 = vor.u32 %v4797_v40, %v3716_v18  ;;  %v6598_v54 = vor.u32 %v4791_v37, %v3718_v33  ;;  %v4054_v18 = vld [vmem:[%s7854_s2 + $0x178] sm:$0xf0]  ;;  %v4896_v40 = vld [vmem:[%s7854_s2 + $0x1f4] sm:$0xf] }
 0x17b   :  { %v4118_v37 = vld [vmem:[%s7854_s2 + $0x1f8] sm:$0xf0]  ;;  %v4057_v33 = vor.u32 %v4880_v0, %v4054_v18  ;;  %v4894_v18 = vld [vmem:[%s7854_s2 + $0x1e4] sm:$0xf] }
 0x17c   :  { %v6574_v22 = vadd.f32 %v2183_v4, %v2135_v44  ;;  %v2185_v59 = vpop.f32.mrf.mxu0  ;;  %7974 = vst [vmem:[#allocation56_spill] sm:$0xff] %v6596_v35 }
 0x17d   :  { %7975 = vst [vmem:[#allocation57_spill] sm:$0xff] %v6598_v54  ;;  %2453 = vmatpush.bf16.msra.mxu2 %v4057_v33  ;;  %v4802_v33 = vld [vmem:[%s7855_s1 + $0x204] sm:$0xf] }
 0x17e   :  { %v2087_v15 = vpop.f32.mrf.mxu2 }
 0x17f   :  { %v2088_v63 = vadd.f32 %v2087_v15, %v2039_v29  ;;  %v4864_v29 = vld [vmem:[%s7854_s2 + $0xf4] sm:$0xf]  ;;  %v4121_v15 = vor.u32 %v4896_v40, %v4118_v37  ;;  %v4110_v40 = vld [vmem:[%s7854_s2 + $0x1e8] sm:$0xf0] }
 0x180   :  { %v2041_v19 = vpop.f32.mrf.mxu1 }
 0x181   :  { %v2136_v4 = vpop.f32.mrf.mxu3  ;;  %v2042_v53 = vadd.f32 %v2041_v19, %v6170_v9  ;;  %v3982_v19 = vld [vmem:[%s7854_s2 + $0xe8] sm:$0xf0]  ;;  %2502 = vmatpush.bf16.msra.mxu3 %v4121_v15  ;;  %v4860_v15 = vld [vmem:[%s7854_s2 + $0xd4] sm:$0xf] }
 0x182   :  { %v2137_v44 = vadd.f32 %v2136_v4, %v2088_v63  ;;  %v4862_v4 = vld [vmem:[%s7854_s2 + $0xe4] sm:$0xf] }
 0x183   :  { %2236 = vmatmul.bf16.gmra.mxu1 %v6594_v34  ;;  %2285 = vmatmul.bf16.gmra.mxu2 %v6596_v35  ;;  %v3985_v0 = vor.u32 %v4862_v4, %v3982_v19  ;;  %v3758_v4 = vld [vmem:[%s7855_s1 + $0x230] sm:$0xf0]  ;;  %v3764_v19 = vld [vmem:[%s7855_s1 + $0x208] sm:$0xf]  ;;  %v3766_v35 = vld [vmem:[%s7855_s1 + $0x238] sm:$0xf0] }
 0x184   :  { %v6601_v50 = vadd.f32 %v2185_v59, %v2137_v44  ;;  %v2188_v9 = vpop.f32.mrf.mxu0  ;;  %v3993_v59 = vor.u32 %v4864_v29, %v3990_v51  ;;  %v4878_v44 = vld [vmem:[%s7854_s2 + $0x164] sm:$0xf] }
 0x186   :  { %2334 = vmatmul.bf16.gmra.mxu3 %v6598_v54  ;;  %v2090_v63 = vpop.f32.mrf.mxu2  ;;  %2404 = vmatpush.bf16.msra.mxu1 %v3993_v59  ;;  %v4046_v59 = vld [vmem:[%s7854_s2 + $0x168] sm:$0xf0] }
 0x187   :  { %v2091_v29 = vadd.f32 %v2090_v63, %v2042_v53  ;;  %2383 = vmatmul.bf16.gmra.mxu0 %v5203_v45  ;;  %v4049_v53 = vor.u32 %v4878_v44, %v4046_v59  ;;  %v4113_v63 = vor.u32 %v4894_v18, %v4110_v40  ;;  %v4876_v44 = vld [vmem:[%s7854_s2 + $0x154] sm:$0xf]  ;;  %v4102_v18 = vld [vmem:[%s7854_s2 + $0x1d8] sm:$0xf0] }
 0x188   :  { %v2043_v37 = vpop.f32.mrf.mxu1  ;;  %v4892_v59 = vld [vmem:[%s7854_s2 + $0x1d4] sm:$0xf] }
 0x189   :  { %v2139_v51 = vpop.f32.mrf.mxu3  ;;  %v2044_v45 = vadd.f32 %v2043_v37, %v6236_v52  ;;  %v3974_v52 = vld [vmem:[%s7854_s2 + $0xd8] sm:$0xf0]  ;;  %2454 = vmatpush.bf16.msra.mxu2 %v4049_v53  ;;  %2503 = vmatpush.bf16.msra.mxu3 %v4113_v63  ;;  %v4105_v37 = vor.u32 %v4892_v59, %v4102_v18  ;;  %v4912_v53 = vld [vmem:[%s7854_s2 + $0x274] sm:$0xf]  ;;  %v3966_v59 = vld [vmem:[%s7854_s2 + $0xc8] sm:$0xf0] }
 0x18a   :  { %v2140_v54 = vadd.f32 %v2139_v51, %v2091_v29  ;;  %2405 = vmatpush.bf16.msra.mxu1 %v3985_v0  ;;  %v3977_v51 = vor.u32 %v4860_v15, %v3974_v52  ;;  %v4038_v0 = vld [vmem:[%s7854_s2 + $0x158] sm:$0xf0]  ;;  %v4803_v52 = vld [vmem:[%s7855_s1 + $0x20c] sm:$0xf]  ;;  %v4874_v18 = vld [vmem:[%s7854_s2 + $0x144] sm:$0xf] }
 0x18b   :  { %v4182_v15 = vld [vmem:[%s7854_s2 + $0x278] sm:$0xf0] }
 0x18c   :  { %v6662_v29 = vadd.f32 %v2188_v9, %v2140_v54  ;;  %v2190_v40 = vpop.f32.mrf.mxu0  ;;  %v4809_v54 = vld [vmem:[%s7855_s1 + $0x234] sm:$0xf0]  ;;  %v4041_v9 = vor.u32 %v4876_v44, %v4038_v0  ;;  %v4185_v34 = vor.u32 %v4912_v53, %v4182_v15  ;;  %v6688_v44 = vor.u32 %v4802_v33, %v3758_v4  ;;  %v4858_v0 = vld [vmem:[%s7854_s2 + $0xc4] sm:$0xf]  ;;  %v4030_v4 = vld [vmem:[%s7854_s2 + $0x148] sm:$0xf0] }
 0x18d   :  { %v6699_v21 = vor.u32 %v4809_v54, %v3764_v19  ;;  %v3969_v33 = vor.u32 %v4858_v0, %v3966_v59  ;;  %v4094_v53 = vld [vmem:[%s7854_s2 + $0x1c8] sm:$0xf0]  ;;  %2504 = vmatpush.bf16.msra.mxu3 %v4105_v37  ;;  %v4033_v19 = vor.u32 %v4874_v18, %v4030_v4  ;;  %v3958_v37 = vld [vmem:[%s7854_s2 + $0xb8] sm:$0xf0] }
 0x18e   :  { %v2092_v63 = vpop.f32.mrf.mxu2  ;;  %7976 = vst [vmem:[#allocation58_spill] sm:$0xff] %v6688_v44  ;;  %2406 = vmatpush.bf16.msra.mxu1 %v3977_v51  ;;  %2455 = vmatpush.bf16.msra.mxu2 %v4041_v9  ;;  %v4890_v51 = vld [vmem:[%s7854_s2 + $0x1c4] sm:$0xf]  ;;  %v4174_v54 = vld [vmem:[%s7854_s2 + $0x268] sm:$0xf0] }
 0x18f   :  { %v2093_v25 = vadd.f32 %v2092_v63, %v2044_v45  ;;  %7977 = vst [vmem:[#allocation59_spill] sm:$0xff] %v6699_v21  ;;  %2551 = vmatpush.bf16.msra.mxu0 %v4185_v34  ;;  %v6710_v45 = vor.u32 %v4803_v52, %v3766_v35  ;;  %v4910_v34 = vld [vmem:[%s7854_s2 + $0x264] sm:$0xf]  ;;  %v4097_v0 = vor.u32 %v4890_v51, %v4094_v53  ;;  %v4856_v35 = vld [vmem:[%s7854_s2 + $0xb4] sm:$0xf] }
 0x190   :  { %v2046_v15 = vpop.f32.mrf.mxu1  ;;  %v4177_v59 = vor.u32 %v4910_v34, %v4174_v54  ;;  %v4888_v52 = vld [vmem:[%s7854_s2 + $0x1b4] sm:$0xf]  ;;  %v4086_v18 = vld [vmem:[%s7854_s2 + $0x1b8] sm:$0xf0]  ;;  %v4854_v34 = vld [vmem:[%s7854_s2 + $0xa4] sm:$0xf] }
 0x191   :  { %v2141_v30 = vpop.f32.mrf.mxu3  ;;  %7978 = vst [vmem:[#allocation60_spill] sm:$0xff] %v6710_v45  ;;  %v2047_v63 = vadd.f32 %v2046_v15, %v6308_v46  ;;  %v4872_v46 = vld [vmem:[%s7854_s2 + $0x134] sm:$0xf]  ;;  %2505 = vmatpush.bf16.msra.mxu3 %v4097_v0  ;;  %v4089_v4 = vor.u32 %v4888_v52, %v4086_v18  ;;  %v4166_v53 = vld [vmem:[%s7854_s2 + $0x258] sm:$0xf0] }
 0x192   :  { %v2142_v9 = vadd.f32 %v2141_v30, %v2093_v25  ;;  %2407 = vmatpush.bf16.msra.mxu1 %v3969_v33  ;;  %2456 = vmatpush.bf16.msra.mxu2 %v4033_v19  ;;  %v3961_v25 = vor.u32 %v4856_v35, %v3958_v37  ;;  %v4908_v51 = vld [vmem:[%s7854_s2 + $0x254] sm:$0xf]  ;;  %v3950_v54 = vld [vmem:[%s7854_s2 + $0xa8] sm:$0xf0] }
 0x193   :  { %2241 = vmatmul.bf16.gmra.mxu1 %v6688_v44  ;;  %2290 = vmatmul.bf16.gmra.mxu2 %v6699_v21  ;;  %v4169_v19 = vor.u32 %v4908_v51, %v4166_v53  ;;  %v3953_v35 = vor.u32 %v4854_v34, %v3950_v54  ;;  %v4014_v37 = vld [vmem:[%s7854_s2 + $0x128] sm:$0xf0]  ;;  %v3806_v34 = vld [vmem:[%s7855_s1 + $0x290] sm:$0xf0]  ;;  %v3812_v54 = vld [vmem:[%s7855_s1 + $0x268] sm:$0xf] }
 0x194   :  { %v6719_v12 = vadd.f32 %v2190_v40, %v2142_v9  ;;  %v2193_v30 = vpop.f32.mrf.mxu0  ;;  %v4022_v40 = vld [vmem:[%s7854_s2 + $0x138] sm:$0xf0]  ;;  %2552 = vmatpush.bf16.msra.mxu0 %v4177_v59  ;;  %v4870_v9 = vld [vmem:[%s7854_s2 + $0x124] sm:$0xf]  ;;  %v4158_v18 = vld [vmem:[%s7854_s2 + $0x248] sm:$0xf0] }
 0x195   :  { %v4025_v33 = vor.u32 %v4872_v46, %v4022_v40  ;;  %v4886_v46 = vld [vmem:[%s7854_s2 + $0x1a4] sm:$0xf]  ;;  %v4017_v52 = vor.u32 %v4870_v9, %v4014_v37  ;;  %2506 = vmatpush.bf16.msra.mxu3 %v4089_v4  ;;  %v3942_v4 = vld [vmem:[%s7854_s2 + $0x98] sm:$0xf0] }
 0x196   :  { %2339 = vmatmul.bf16.gmra.mxu3 %v6710_v45  ;;  %v2095_v15 = vpop.f32.mrf.mxu2  ;;  %2408 = vmatpush.bf16.msra.mxu1 %v3961_v25  ;;  %v4078_v25 = vld [vmem:[%s7854_s2 + $0x1a8] sm:$0xf0]  ;;  %v4070_v37 = vld [vmem:[%s7854_s2 + $0x198] sm:$0xf0]  ;;  %v4866_v45 = vld [vmem:[%s7854_s2 + $0x104] sm:$0xf] }
 0x197   :  { %v2096_v0 = vadd.f32 %v2095_v15, %v2047_v63  ;;  %2388 = vmatmul.bf16.gmra.mxu0 %v5335_v41  ;;  %2457 = vmatpush.bf16.msra.mxu2 %v4025_v33  ;;  %v4081_v63 = vor.u32 %v4886_v46, %v4078_v25  ;;  %v4906_v41 = vld [vmem:[%s7854_s2 + $0x244] sm:$0xf]  ;;  %v4821_v25 = vld [vmem:[%s7855_s1 + $0x294] sm:$0xf0] }
 0x198   :  { %v2048_v40 = vpop.f32.mrf.mxu1  ;;  %2553 = vmatpush.bf16.msra.mxu0 %v4169_v19  ;;  %v4161_v15 = vor.u32 %v4906_v41, %v4158_v18  ;;  %v4814_v33 = vld [vmem:[%s7855_s1 + $0x264] sm:$0xf]  ;;  %v4868_v19 = vld [vmem:[%s7854_s2 + $0x114] sm:$0xf]  ;;  %v4150_v41 = vld [vmem:[%s7854_s2 + $0x238] sm:$0xf0] }
 0x199   :  { %v2144_v59 = vpop.f32.mrf.mxu3  ;;  %v2049_v53 = vadd.f32 %v2048_v40, %v6374_v36  ;;  %v4852_v36 = vld [vmem:[%s7854_s2 + $0x94] sm:$0xf]  ;;  %v4815_v18 = vld [vmem:[%s7855_s1 + $0x26c] sm:$0xf]  ;;  %2507 = vmatpush.bf16.msra.mxu3 %v4081_v63  ;;  %v6827_v63 = vor.u32 %v4814_v33, %v3806_v34 }
 0x19a   :  { %v2145_v51 = vadd.f32 %v2144_v59, %v2096_v0  ;;  %2409 = vmatpush.bf16.msra.mxu1 %v3953_v35  ;;  %v3945_v0 = vor.u32 %v4852_v36, %v3942_v4  ;;  %v4006_v59 = vld [vmem:[%s7854_s2 + $0x118] sm:$0xf0]  ;;  %v4884_v35 = vld [vmem:[%s7854_s2 + $0x194] sm:$0xf] }
 0x19b   :  { %2458 = vmatpush.bf16.msra.mxu2 %v4017_v52  ;;  %v4904_v40 = vld [vmem:[%s7854_s2 + $0x234] sm:$0xf]  ;;  %v4073_v52 = vor.u32 %v4884_v35, %v4070_v37  ;;  %v4882_v37 = vld [vmem:[%s7854_s2 + $0x184] sm:$0xf] }
 0x19c   :  { %v6792_v9 = vadd.f32 %v2193_v30, %v2145_v51  ;;  %v2195_v46 = vpop.f32.mrf.mxu0  ;;  %v4009_v30 = vor.u32 %v4868_v19, %v4006_v59  ;;  %v3814_v51 = vld [vmem:[%s7855_s1 + $0x298] sm:$0xf0]  ;;  %2554 = vmatpush.bf16.msra.mxu0 %v4161_v15  ;;  %v4153_v36 = vor.u32 %v4904_v40, %v4150_v41  ;;  %v4850_v19 = vld [vmem:[%s7854_s2 + $0x84] sm:$0xf]  ;;  %v3934_v59 = vld [vmem:[%s7854_s2 + $0x88] sm:$0xf0]  ;;  %v6829_v15 = vor.u32 %v4821_v25, %v3812_v54 }
 0x19d   :  { %v3937_v35 = vor.u32 %v4850_v19, %v3934_v59  ;;  %v4062_v40 = vld [vmem:[%s7854_s2 + $0x188] sm:$0xf0]  ;;  %v4902_v54 = vld [vmem:[%s7854_s2 + $0x224] sm:$0xf]  ;;  %2508 = vmatpush.bf16.msra.mxu3 %v4073_v52 }
 0x19e   :  { %v2097_v4 = vpop.f32.mrf.mxu2  ;;  %2410 = vmatpush.bf16.msra.mxu1 %v3945_v0  ;;  %v3998_v0 = vld [vmem:[%s7854_s2 + $0x108] sm:$0xf0]  ;;  %v4065_v34 = vor.u32 %v4882_v37, %v4062_v40 }
 0x19f   :  { %v2098_v21 = vadd.f32 %v2097_v4, %v2049_v53  ;;  %v6840_v53 = vor.u32 %v4815_v18, %v3814_v51  ;;  %2459 = vmatpush.bf16.msra.mxu2 %v4009_v30  ;;  %v4001_v33 = vor.u32 %v4866_v45, %v3998_v0  ;;  %v4142_v25 = vld [vmem:[%s7854_s2 + $0x228] sm:$0xf0] }
 0x1a0   :  { %v2051_v41 = vpop.f32.mrf.mxu1  ;;  %2555 = vmatpush.bf16.msra.mxu0 %v4153_v36  ;;  %v4145_v59 = vor.u32 %v4902_v54, %v4142_v25  ;;  %v4898_v36 = vld [vmem:[%s7854_s2 + $0x204] sm:$0xf]  ;;  %v3860_v54 = vld [vmem:[%s7855_s1 + $0x2c8] sm:$0xf]  ;;  %v4827_v25 = vld [vmem:[%s7855_s1 + $0x2cc] sm:$0xf] }
 0x1a1   :  { %v2146_v44 = vpop.f32.mrf.mxu3  ;;  %v2052_v19 = vadd.f32 %v2051_v41, %v6395_v62  ;;  %v4134_v62 = vld [vmem:[%s7854_s2 + $0x218] sm:$0xf0]  ;;  %2509 = vmatpush.bf16.msra.mxu3 %v4065_v34  ;;  %v3854_v34 = vld [vmem:[%s7855_s1 + $0x2f0] sm:$0xf0] }
 0x1a2   :  { %v2147_v4 = vadd.f32 %v2146_v44, %v2098_v21  ;;  %2411 = vmatpush.bf16.msra.mxu1 %v3937_v35  ;;  %v4900_v21 = vld [vmem:[%s7854_s2 + $0x214] sm:$0xf]  ;;  %v4126_v35 = vld [vmem:[%s7854_s2 + $0x208] sm:$0xf0] }
 0x1a3   :  { %2246 = vmatmul.bf16.gmra.mxu1 %v6827_v63  ;;  %2295 = vmatmul.bf16.gmra.mxu2 %v6829_v15  ;;  %v4137_v44 = vor.u32 %v4900_v21, %v4134_v62  ;;  %v4129_v40 = vor.u32 %v4898_v36, %v4126_v35 }
 0x1a4   :  { %v6849_v18 = vadd.f32 %v2195_v46, %v2147_v4  ;;  %v2198_v45 = vpop.f32.mrf.mxu0  ;;  %2460 = vmatpush.bf16.msra.mxu2 %v4001_v33  ;;  %2556 = vmatpush.bf16.msra.mxu0 %v4145_v59  ;;  %v3862_v4 = vld [vmem:[%s7855_s1 + $0x2f8] sm:$0xf0] }
 0x1a6   :  { %2344 = vmatmul.bf16.gmra.mxu3 %v6840_v53  ;;  %v2100_v46 = vpop.f32.mrf.mxu2 }
 0x1a7   :  { %v2101_v30 = vadd.f32 %v2100_v46, %v2052_v19  ;;  %2393 = vmatmul.bf16.gmra.mxu0 %v5214_v49  ;;  %v4826_v49 = vld [vmem:[%s7855_s1 + $0x2c4] sm:$0xf]  ;;  %v6892_v46 = vor.u32 %v4827_v25, %v3862_v4 }
 0x1a8   :  { %v2053_v52 = vpop.f32.mrf.mxu1  ;;  %2557 = vmatpush.bf16.msra.mxu0 %v4137_v44  ;;  %v6888_v21 = vor.u32 %v4826_v49, %v3854_v34 }
 0x1a9   :  { %v2149_v51 = vpop.f32.mrf.mxu3  ;;  %v2054_v37 = vadd.f32 %v2053_v52, %v6428_v17  ;;  %v4833_v17 = vld [vmem:[%s7855_s1 + $0x2f4] sm:$0xf0] }
 0x1aa   :  { %v2150_v0 = vadd.f32 %v2149_v51, %v2101_v30  ;;  %v6890_v62 = vor.u32 %v4833_v17, %v3860_v54 }
 0x1ac   :  { %v6868_v41 = vadd.f32 %v2198_v45, %v2150_v0  ;;  %v2200_v33 = vpop.f32.mrf.mxu0  ;;  %2558 = vmatpush.bf16.msra.mxu0 %v4129_v40 }
 0x1ae   :  { %v2102_v19 = vpop.f32.mrf.mxu2 }
 0x1af   :  { %v2103_v59 = vadd.f32 %v2102_v19, %v2054_v37 }
 0x1b0   :  { %v2056_v44 = vpop.f32.mrf.mxu1 }
 0x1b1   :  { %v2151_v45 = vpop.f32.mrf.mxu3  ;;  %v2057_v51 = vadd.f32 %v2056_v44, %v6437_v13 }
 0x1b2   :  { %v2152_v30 = vadd.f32 %v2151_v45, %v2103_v59 }
 0x1b3   :  { %2251 = vmatmul.bf16.gmra.mxu1 %v6888_v21  ;;  %2300 = vmatmul.bf16.gmra.mxu2 %v6890_v62 }
 0x1b4   :  { %v6895_v52 = vadd.f32 %v2200_v33, %v2152_v30  ;;  %v2203_v36 = vpop.f32.mrf.mxu0 }
 0x1b6   :  { %2349 = vmatmul.bf16.gmra.mxu3 %v6892_v46  ;;  %v2105_v35 = vpop.f32.mrf.mxu2 }
 0x1b7   :  { %v2106_v0 = vadd.f32 %v2105_v35, %v2057_v51  ;;  %2398 = vmatmul.bf16.gmra.mxu0 %v5346_v47 }
 0x1b8   :  { %v2058_v40 = vpop.f32.mrf.mxu1 }
 0x1b9   :  { %v2154_v37 = vpop.f32.mrf.mxu3  ;;  %v2059_v34 = vadd.f32 %v2058_v40, %v6465_v5 }
 0x1ba   :  { %v2155_v49 = vadd.f32 %v2154_v37, %v2106_v0 }
 0x1bc   :  { %v6902_v54 = vadd.f32 %v2203_v36, %v2155_v49  ;;  %v2205_v13 = vpop.f32.mrf.mxu0 }
 0x1be   :  { %v2107_v33 = vpop.f32.mrf.mxu2 }
 0x1bf   :  { %v2108_v17 = vadd.f32 %v2107_v33, %v2059_v34 }
 0x1c0   :  { %v2217_v4 = vpop.f32.mrf.mxu1 }
 0x1c1   :  { %v2156_v25 = vpop.f32.mrf.mxu3  ;;  %v2218_v59 = vadd.f32 %v2217_v4, %v6472_v60 }
 0x1c2   :  { %v2157_v19 = vadd.f32 %v2156_v25, %v2108_v17 }
 0x1c3   :  { %2412 = vmatmul.bf16.vlgmr.msra.gmra.mxu1 %v5432_v26  ;;  %2461 = vmatmul.bf16.vlgmr.msra.gmra.mxu2 %v5434_v27 }
 0x1c4   :  { %v6905_v45 = vadd.f32 %v2205_v13, %v2157_v19  ;;  %v6910_v47 = vpop.f32.mrf.mxu0 }
 0x1c6   :  { %2510 = vmatmul.bf16.vlgmr.msra.gmra.mxu3 %v5436_v28  ;;  %v2266_v5 = vpop.f32.mrf.mxu2 }
 0x1c7   :  { %v2267_v44 = vadd.f32 %v2266_v5, %v2218_v59  ;;  %2559 = vmatmul.bf16.vlgmr.msra.gmra.mxu0 %v5446_v31 }
 0x1c8   :  { %v2219_v51 = vpop.f32.mrf.mxu1 }
 0x1c9   :  { %v2315_v30 = vpop.f32.mrf.mxu3  ;;  %v2220_v60 = vadd.f32 %v2219_v51, %v6499_v32 }
 0x1ca   :  { %v6913_v36 = vadd.f32 %v2315_v30, %v2267_v44 }
 0x1cc   :  { %v6916_v35 = vpop.f32.mrf.mxu0 }
 0x1ce   :  { %v2268_v0 = vpop.f32.mrf.mxu2 }
 0x1cf   :  { %v2269_v26 = vadd.f32 %v2268_v0, %v2220_v60 }
 0x1d0   :  { %v2222_v27 = vpop.f32.mrf.mxu1 }
 0x1d1   :  { %v2317_v37 = vpop.f32.mrf.mxu3  ;;  %v2223_v28 = vadd.f32 %v2222_v27, %v6506_v2 }
 0x1d2   :  { %v6918_v40 = vadd.f32 %v2317_v37, %v2269_v26 }
 0x1d3   :  { %2417 = vmatmul.bf16.gmra.mxu1 %v5468_v38  ;;  %2466 = vmatmul.bf16.gmra.mxu2 %v5470_v39 }
 0x1d4   :  { %v6926_v31 = vpop.f32.mrf.mxu0 }
 0x1d6   :  { %2515 = vmatmul.bf16.gmra.mxu3 %v5472_v42  ;;  %v2271_v32 = vpop.f32.mrf.mxu2 }
 0x1d7   :  { %v2272_v34 = vadd.f32 %v2271_v32, %v2223_v28  ;;  %2564 = vmatmul.bf16.gmra.mxu0 %v5482_v48 }
 0x1d8   :  { %v2224_v33 = vpop.f32.mrf.mxu1 }
 0x1d9   :  { %v2320_v13 = vpop.f32.mrf.mxu3  ;;  %v2225_v2 = vadd.f32 %v2224_v33, %v6533_v10 }
 0x1da   :  { %v6929_v17 = vadd.f32 %v2320_v13, %v2272_v34 }
 0x1dc   :  { %v6932_v25 = vpop.f32.mrf.mxu0 }
 0x1de   :  { %v2273_v4 = vpop.f32.mrf.mxu2 }
 0x1df   :  { %v2274_v38 = vadd.f32 %v2273_v4, %v2225_v2 }
 0x1e0   :  { %v2227_v39 = vpop.f32.mrf.mxu1 }
 0x1e1   :  { %v2322_v19 = vpop.f32.mrf.mxu3  ;;  %v2228_v42 = vadd.f32 %v2227_v39, %v6540_v14  ;;  %v4928_v39 = vld [vmem:[%s7854_s2 + $0x2f4] sm:$0xf] }
 0x1e2   :  { %v6934_v59 = vadd.f32 %v2322_v19, %v2274_v38 }
 0x1e3   :  { %2422 = vmatmul.bf16.gmra.mxu1 %v5504_v56  ;;  %2471 = vmatmul.bf16.gmra.mxu2 %v5506_v57 }
 0x1e4   :  { %v6942_v48 = vpop.f32.mrf.mxu0 }
 0x1e6   :  { %2520 = vmatmul.bf16.gmra.mxu3 %v5508_v58  ;;  %v2276_v10 = vpop.f32.mrf.mxu2 }
 0x1e7   :  { %v2277_v44 = vadd.f32 %v2276_v10, %v2228_v42  ;;  %2569 = vmatmul.bf16.gmra.mxu0 %v5518_v61  ;;  %v7979_v10 = vld [vmem:[#allocation2_spill] sm:$0xff] }
 0x1e8   :  { %v2229_v51 = vpop.f32.mrf.mxu1 }
 0x1e9   :  { %v2325_v30 = vpop.f32.mrf.mxu3  ;;  %v2230_v14 = vadd.f32 %v2229_v51, %v6567_v16  ;;  %v4960_v51 = vld [vmem:[%s7854_s2 + $0x3f4] sm:$0xf] }
 0x1ea   :  { %v6945_v60 = vadd.f32 %v2325_v30, %v2277_v44  ;;  %v7980_v44 = vld [vmem:[#allocation3_spill] sm:$0xff]  ;;  %v4310_v30 = vld [vmem:[%s7854_s2 + $0x378] sm:$0xf0] }
 0x1ec   :  { %v6948_v0 = vpop.f32.mrf.mxu0 }
 0x1ee   :  { %v2278_v26 = vpop.f32.mrf.mxu2 }
 0x1ef   :  { %v2279_v56 = vadd.f32 %v2278_v26, %v2230_v14  ;;  %v4374_v14 = vld [vmem:[%s7854_s2 + $0x3f8] sm:$0xf0]  ;;  %v7981_v26 = vld [vmem:[#allocation4_spill] sm:$0xff] }
 0x1f0   :  { %v2232_v57 = vpop.f32.mrf.mxu1 }
 0x1f1   :  { %v2327_v37 = vpop.f32.mrf.mxu3  ;;  %v2233_v58 = vadd.f32 %v2232_v57, %v6574_v22  ;;  %v4377_v57 = vor.u32 %v4960_v51, %v4374_v14  ;;  %v4924_v51 = vld [vmem:[%s7854_s2 + $0x2d4] sm:$0xf]  ;;  %v4230_v14 = vld [vmem:[%s7854_s2 + $0x2d8] sm:$0xf0] }
 0x1f2   :  { %v6950_v27 = vadd.f32 %v2327_v37, %v2279_v56 }
 0x1f3   :  { %2427 = vmatmul.bf16.gmra.mxu1 %v5540_v6  ;;  %2476 = vmatmul.bf16.gmra.mxu2 %v5542_v7 }
 0x1f4   :  { %v2947_v28 = vpack.c.bf16 %v6950_v27, %v6945_v60  ;;  %v6958_v61 = vpop.f32.mrf.mxu0  ;;  %2698 = vmatpush.bf16.msrb.mxu3 %v4377_v57  ;;  %v4294_v57 = vld [vmem:[%s7854_s2 + $0x358] sm:$0xf0]  ;;  %v8005_v27 = vld [vmem:[#allocation26_spill] sm:$0xff] }
 0x1f6   :  { %2525 = vmatmul.bf16.gmra.mxu3 %v5544_v8  ;;  %v2281_v16 = vpop.f32.mrf.mxu2 }
 0x1f7   :  { %v2282_v32 = vadd.f32 %v2281_v16, %v2233_v58  ;;  %2574 = vmatmul.bf16.gmra.mxu0 %v5554_v11  ;;  %v4246_v11 = vld [vmem:[%s7854_s2 + $0x2f8] sm:$0xf0]  ;;  %v4926_v16 = vld [vmem:[%s7854_s2 + $0x2e4] sm:$0xf] }
 0x1f8   :  { %v2234_v13 = vpop.f32.mrf.mxu1 }
 0x1f9   :  { %v2330_v34 = vpop.f32.mrf.mxu3  ;;  %v2235_v22 = vadd.f32 %v2234_v13, %v6601_v50  ;;  %v4944_v50 = vld [vmem:[%s7854_s2 + $0x374] sm:$0xf] }
 0x1fa   :  { %v6961_v33 = vadd.f32 %v2330_v34, %v2282_v32  ;;  %v4313_v37 = vor.u32 %v4944_v50, %v4310_v30  ;;  %v4238_v32 = vld [vmem:[%s7854_s2 + $0x2e8] sm:$0xf0]  ;;  %v4942_v34 = vld [vmem:[%s7854_s2 + $0x364] sm:$0xf] }
 0x1fc   :  { %v6964_v2 = vpop.f32.mrf.mxu0  ;;  %2649 = vmatpush.bf16.msrb.mxu2 %v4313_v37  ;;  %v4233_v37 = vor.u32 %v4924_v51, %v4230_v14  ;;  %v4350_v51 = vld [vmem:[%s7854_s2 + $0x3c8] sm:$0xf0] }
 0x1fe   :  { %v2283_v4 = vpop.f32.mrf.mxu2 }
 0x1ff   :  { %v2284_v6 = vadd.f32 %v2283_v4, %v2235_v22  ;;  %v7982_v4 = vld [vmem:[#allocation5_spill] sm:$0xff] }
 0x200   :  { %v2237_v7 = vpop.f32.mrf.mxu1 }
 0x201   :  { %v2332_v38 = vpop.f32.mrf.mxu3  ;;  %v2238_v8 = vadd.f32 %v2237_v7, %v6662_v29  ;;  %v4249_v29 = vor.u32 %v4928_v39, %v4246_v11  ;;  %v4958_v7 = vld [vmem:[%s7854_s2 + $0x3e4] sm:$0xf]  ;;  %v4366_v39 = vld [vmem:[%s7854_s2 + $0x3e8] sm:$0xf0] }
 0x202   :  { %v6966_v19 = vadd.f32 %v2332_v38, %v2284_v6  ;;  %v4241_v6 = vor.u32 %v4926_v16, %v4238_v32  ;;  %v4302_v38 = vld [vmem:[%s7854_s2 + $0x368] sm:$0xf0]  ;;  %v4358_v16 = vld [vmem:[%s7854_s2 + $0x3d8] sm:$0xf0] }
 0x203   :  { %2432 = vmatmul.bf16.gmra.mxu1 %v7979_v10  ;;  %2481 = vmatmul.bf16.gmra.mxu2 %v7980_v44  ;;  %v4305_v50 = vor.u32 %v4942_v34, %v4302_v38  ;;  %v4369_v10 = vor.u32 %v4958_v7, %v4366_v39  ;;  %v4438_v44 = vld [vmem:[%s7854_s2 + $0x478] sm:$0xf0]  ;;  %v4922_v39 = vld [vmem:[%s7854_s2 + $0x2c4] sm:$0xf] }
 0x204   :  { %v2949_v42 = vpack.c.bf16 %v6966_v19, %v6961_v33  ;;  %v6992_v56 = vpop.f32.mrf.mxu0  ;;  %2600 = vmatpush.bf16.msrb.mxu1 %v4249_v29  ;;  %v8003_v33 = vpack.c.bf16 %v6934_v59, %v6929_v17 }
 0x205   :  { %2650 = vmatpush.bf16.msrb.mxu2 %v4305_v50  ;;  %2699 = vmatpush.bf16.msrb.mxu3 %v4369_v10  ;;  %v4222_v50 = vld [vmem:[%s7854_s2 + $0x2c8] sm:$0xf0]  ;;  %v4938_v10 = vld [vmem:[%s7854_s2 + $0x344] sm:$0xf] }
 0x206   :  { %2530 = vmatmul.bf16.gmra.mxu3 %v7981_v26  ;;  %v2286_v58 = vpop.f32.mrf.mxu2  ;;  %v4940_v26 = vld [vmem:[%s7854_s2 + $0x354] sm:$0xf] }
 0x207   :  { %v2287_v13 = vadd.f32 %v2286_v58, %v2238_v8  ;;  %2579 = vmatmul.bf16.gmra.mxu0 %v7982_v4  ;;  %v4976_v8 = vld [vmem:[%s7854_s2 + $0x474] sm:$0xf]  ;;  %v4297_v32 = vor.u32 %v4940_v26, %v4294_v57 }
 0x208   :  { %v2239_v11 = vpop.f32.mrf.mxu1  ;;  %2601 = vmatpush.bf16.msrb.mxu1 %v4241_v6  ;;  %v4441_v30 = vor.u32 %v4976_v8, %v4438_v44  ;;  %v4956_v58 = vld [vmem:[%s7854_s2 + $0x3d4] sm:$0xf] }
 0x209   :  { %v2335_v22 = vpop.f32.mrf.mxu3  ;;  %v4361_v34 = vor.u32 %v4956_v58, %v4358_v16  ;;  %v2240_v38 = vadd.f32 %v2239_v11, %v6719_v12  ;;  %2651 = vmatpush.bf16.msrb.mxu2 %v4297_v32  ;;  %v4225_v12 = vor.u32 %v4922_v39, %v4222_v50  ;;  %v4286_v11 = vld [vmem:[%s7854_s2 + $0x348] sm:$0xf0]  ;;  %v4972_v57 = vld [vmem:[%s7854_s2 + $0x454] sm:$0xf]  ;;  %v4422_v58 = vld [vmem:[%s7854_s2 + $0x458] sm:$0xf0] }
 0x20a   :  { %v7019_v29 = vadd.f32 %v2335_v22, %v2287_v13  ;;  %2747 = vmatpush.bf16.msrb.mxu0 %v4441_v30  ;;  %v4974_v13 = vld [vmem:[%s7854_s2 + $0x464] sm:$0xf]  ;;  %v4430_v22 = vld [vmem:[%s7854_s2 + $0x468] sm:$0xf0]  ;;  %v4289_v26 = vor.u32 %v4938_v10, %v4286_v11  ;;  %v4425_v32 = vor.u32 %v4972_v57, %v4422_v58  ;;  %v4278_v50 = vld [vmem:[%s7854_s2 + $0x338] sm:$0xf0] }
 0x20b   :  { %v4433_v6 = vor.u32 %v4974_v13, %v4430_v22  ;;  %2700 = vmatpush.bf16.msrb.mxu3 %v4361_v34  ;;  %v4954_v30 = vld [vmem:[%s7854_s2 + $0x3c4] sm:$0xf]  ;;  %v4920_v34 = vld [vmem:[%s7854_s2 + $0x2b4] sm:$0xf]  ;;  %v4214_v13 = vld [vmem:[%s7854_s2 + $0x2b8] sm:$0xf0] }
 0x20c   :  { %v7045_v4 = vpop.f32.mrf.mxu0  ;;  %2602 = vmatpush.bf16.msrb.mxu1 %v4233_v37  ;;  %v4353_v37 = vor.u32 %v4954_v30, %v4350_v51  ;;  %v4936_v22 = vld [vmem:[%s7854_s2 + $0x334] sm:$0xf]  ;;  %v4217_v39 = vor.u32 %v4920_v34, %v4214_v13  ;;  %v4970_v51 = vld [vmem:[%s7854_s2 + $0x444] sm:$0xf] }
 0x20d   :  { %2652 = vmatpush.bf16.msrb.mxu2 %v4289_v26  ;;  %v4952_v10 = vld [vmem:[%s7854_s2 + $0x3b4] sm:$0xf]  ;;  %v4281_v11 = vor.u32 %v4936_v22, %v4278_v50  ;;  %v4414_v26 = vld [vmem:[%s7854_s2 + $0x448] sm:$0xf0]  ;;  %v4918_v58 = vld [vmem:[%s7854_s2 + $0x2a4] sm:$0xf] }
 0x20e   :  { %v2288_v7 = vpop.f32.mrf.mxu2  ;;  %2748 = vmatpush.bf16.msrb.mxu0 %v4433_v6  ;;  %v4934_v34 = vld [vmem:[%s7854_s2 + $0x324] sm:$0xf]  ;;  %v7986_v22 = vld [vmem:[#allocation9_spill] sm:$0xff]  ;;  %v4334_v50 = vld [vmem:[%s7854_s2 + $0x3a8] sm:$0xf0] }
 0x20f   :  { %v2289_v8 = vadd.f32 %v2288_v7, %v2240_v38  ;;  %2701 = vmatpush.bf16.msrb.mxu3 %v4353_v37  ;;  %v7983_v38 = vld [vmem:[#allocation6_spill] sm:$0xff]  ;;  %v7984_v7 = vld [vmem:[#allocation7_spill] sm:$0xff]  ;;  %v4417_v37 = vor.u32 %v4970_v51, %v4414_v26  ;;  %v4916_v26 = vld [vmem:[%s7854_s2 + $0x294] sm:$0xf] }
 0x210   :  { %v2242_v14 = vpop.f32.mrf.mxu1  ;;  %2603 = vmatpush.bf16.msrb.mxu1 %v4225_v12 }
 0x211   :  { %v2337_v44 = vpop.f32.mrf.mxu3  ;;  %2653 = vmatpush.bf16.msrb.mxu2 %v4281_v11  ;;  %v4968_v11 = vld [vmem:[%s7854_s2 + $0x434] sm:$0xf] }
 0x212   :  { %v7072_v16 = vadd.f32 %v2337_v44, %v2289_v8  ;;  %v4342_v8 = vld [vmem:[%s7854_s2 + $0x3b8] sm:$0xf0]  ;;  %v7985_v44 = vld [vmem:[#allocation8_spill] sm:$0xff]  ;;  %2749 = vmatpush.bf16.msrb.mxu0 %v4425_v32  ;;  %v4206_v32 = vld [vmem:[%s7854_s2 + $0x2a8] sm:$0xf0] }
 0x213   :  { %2437 = vmatmul.bf16.gmra.mxu1 %v7983_v38  ;;  %2486 = vmatmul.bf16.gmra.mxu2 %v7984_v7  ;;  %v4345_v30 = vor.u32 %v4952_v10, %v4342_v8  ;;  %v4209_v38 = vor.u32 %v4918_v58, %v4206_v32  ;;  %v4270_v7 = vld [vmem:[%s7854_s2 + $0x328] sm:$0xf0]  ;;  %v4932_v58 = vld [vmem:[%s7854_s2 + $0x314] sm:$0xf] }
 0x214   :  { %v2951_v6 = vpack.c.bf16 %v7072_v16, %v7019_v29  ;;  %v7097_v12 = vpop.f32.mrf.mxu0  ;;  %2604 = vmatpush.bf16.msrb.mxu1 %v4217_v39  ;;  %v4950_v39 = vld [vmem:[%s7854_s2 + $0x3a4] sm:$0xf]  ;;  %v4273_v8 = vor.u32 %v4934_v34, %v4270_v7  ;;  %v4262_v34 = vld [vmem:[%s7854_s2 + $0x318] sm:$0xf0]  ;;  %v2243_v7 = vadd.f32 %v2242_v14, %v6792_v9  ;;  %v4190_v14 = vld [vmem:[%s7854_s2 + $0x288] sm:$0xf0] }
 0x215   :  { %2702 = vmatpush.bf16.msrb.mxu3 %v4345_v30  ;;  %v4406_v30 = vld [vmem:[%s7854_s2 + $0x438] sm:$0xf0]  ;;  %v4914_v9 = vld [vmem:[%s7854_s2 + $0x284] sm:$0xf] }
 0x216   :  { %2535 = vmatmul.bf16.gmra.mxu3 %v7985_v44  ;;  %v2291_v57 = vpop.f32.mrf.mxu2  ;;  %2750 = vmatpush.bf16.msrb.mxu0 %v4417_v37  ;;  %v4337_v44 = vor.u32 %v4950_v39, %v4334_v50  ;;  %v4409_v51 = vor.u32 %v4968_v11, %v4406_v30  ;;  %v4198_v37 = vld [vmem:[%s7854_s2 + $0x298] sm:$0xf0]  ;;  %v4265_v39 = vor.u32 %v4932_v58, %v4262_v34 }
 0x217   :  { %2584 = vmatmul.bf16.gmra.mxu0 %v7986_v22  ;;  %2654 = vmatpush.bf16.msrb.mxu2 %v4273_v8  ;;  %v4201_v32 = vor.u32 %v4916_v26, %v4198_v37  ;;  %v4948_v22 = vld [vmem:[%s7854_s2 + $0x394] sm:$0xf]  ;;  %v4966_v8 = vld [vmem:[%s7854_s2 + $0x424] sm:$0xf]  ;;  %v2292_v26 = vadd.f32 %v2291_v57, %v2243_v7  ;;  %v4193_v34 = vor.u32 %v4914_v9, %v4190_v14  ;;  %v8002_v29 = vld [vmem:[#allocation25_spill] sm:$0xff] }
 0x218   :  { %v2244_v10 = vpop.f32.mrf.mxu1  ;;  %2605 = vmatpush.bf16.msrb.mxu1 %v4209_v38  ;;  %v4326_v38 = vld [vmem:[%s7854_s2 + $0x398] sm:$0xf0]  ;;  %v7987_v14 = vld [vmem:[#allocation10_spill] sm:$0xff] }
 0x219   :  { %v2340_v13 = vpop.f32.mrf.mxu3  ;;  %2703 = vmatpush.bf16.msrb.mxu3 %v4337_v44  ;;  %v4329_v50 = vor.u32 %v4948_v22, %v4326_v38  ;;  %v4398_v44 = vld [vmem:[%s7854_s2 + $0x428] sm:$0xf0]  ;;  %v2245_v37 = vadd.f32 %v2244_v10, %v6849_v18  ;;  %v4946_v10 = vld [vmem:[%s7854_s2 + $0x384] sm:$0xf] }
 0x21a   :  { %2751 = vmatpush.bf16.msrb.mxu0 %v4409_v51  ;;  %v4401_v30 = vor.u32 %v4966_v8, %v4398_v44  ;;  %v4930_v51 = vld [vmem:[%s7854_s2 + $0x304] sm:$0xf]  ;;  %v4254_v18 = vld [vmem:[%s7854_s2 + $0x308] sm:$0xf0] }
 0x21b   :  { %2655 = vmatpush.bf16.msrb.mxu2 %v4265_v39  ;;  %v4257_v38 = vor.u32 %v4930_v51, %v4254_v18  ;;  %v4390_v39 = vld [vmem:[%s7854_s2 + $0x418] sm:$0xf0] }
 0x21c   :  { %v7155_v11 = vpop.f32.mrf.mxu0  ;;  %2606 = vmatpush.bf16.msrb.mxu1 %v4201_v32  ;;  %v4318_v32 = vld [vmem:[%s7854_s2 + $0x388] sm:$0xf0]  ;;  %v7990_v18 = vld [vmem:[#allocation13_spill] sm:$0xff] }
 0x21d   :  { %2704 = vmatpush.bf16.msrb.mxu3 %v4329_v50  ;;  %v4321_v7 = vor.u32 %v4946_v10, %v4318_v32  ;;  %v7182_v50 = vadd.f32 %v2340_v13, %v2292_v26  ;;  %v7988_v13 = vld [vmem:[#allocation11_spill] sm:$0xff]  ;;  %v7989_v26 = vld [vmem:[#allocation12_spill] sm:$0xff] }
 0x21e   :  { %v2293_v49 = vpop.f32.mrf.mxu2  ;;  %2752 = vmatpush.bf16.msrb.mxu0 %v4401_v30  ;;  %v4962_v30 = vld [vmem:[%s7854_s2 + $0x404] sm:$0xf] }
 0x21f   :  { %v2294_v58 = vadd.f32 %v2293_v49, %v2245_v37  ;;  %v4964_v49 = vld [vmem:[%s7854_s2 + $0x414] sm:$0xf]  ;;  %2656 = vmatpush.bf16.msrb.mxu2 %v4257_v38  ;;  %v4382_v37 = vld [vmem:[%s7854_s2 + $0x408] sm:$0xf0] }
 0x220   :  { %v2247_v22 = vpop.f32.mrf.mxu1  ;;  %2607 = vmatpush.bf16.msrb.mxu1 %v4193_v34  ;;  %v4393_v44 = vor.u32 %v4964_v49, %v4390_v39 }
 0x221   :  { %v2342_v57 = vpop.f32.mrf.mxu3  ;;  %2705 = vmatpush.bf16.msrb.mxu3 %v4321_v7  ;;  %v2248_v32 = vadd.f32 %v2247_v22, %v6868_v41 }
 0x222   :  { %v7184_v8 = vadd.f32 %v2342_v57, %v2294_v58  ;;  %2753 = vmatpush.bf16.msrb.mxu0 %v4393_v44  ;;  %v4385_v58 = vor.u32 %v4962_v30, %v4382_v37  ;;  %v7991_v37 = vld [vmem:[#allocation14_spill] sm:$0xff] }
 0x223   :  { %2442 = vmatmul.bf16.gmra.mxu1 %v7987_v14  ;;  %2491 = vmatmul.bf16.gmra.mxu2 %v7988_v13 }
 0x224   :  { %v2953_v9 = vpack.c.bf16 %v7184_v8, %v7182_v50  ;;  %v7197_v51 = vpop.f32.mrf.mxu0 }
 0x226   :  { %2540 = vmatmul.bf16.gmra.mxu3 %v7989_v26  ;;  %v2296_v57 = vpop.f32.mrf.mxu2  ;;  %2754 = vmatpush.bf16.msrb.mxu0 %v4385_v58  ;;  %v7992_v26 = vld [vmem:[#allocation15_spill] sm:$0xff] }
 0x227   :  { %2589 = vmatmul.bf16.gmra.mxu0 %v7990_v18  ;;  %v2297_v7 = vadd.f32 %v2296_v57, %v2248_v32  ;;  %v7993_v18 = vld [vmem:[#allocation16_spill] sm:$0xff]  ;;  %v7994_v57 = vld [vmem:[#allocation17_spill] sm:$0xff] }
 0x228   :  { %v2249_v10 = vpop.f32.mrf.mxu1 }
 0x229   :  { %v2345_v34 = vpop.f32.mrf.mxu3  ;;  %v2250_v49 = vadd.f32 %v2249_v10, %v6895_v52 }
 0x22a   :  { %v2346_v13 = vadd.f32 %v2345_v34, %v2297_v7 }
 0x22c   :  { %v7201_v38 = vpop.f32.mrf.mxu0 }
 0x22e   :  { %v2298_v39 = vpop.f32.mrf.mxu2 }
 0x22f   :  { %v2299_v50 = vadd.f32 %v2298_v39, %v2250_v49 }
 0x230   :  { %v2252_v14 = vpop.f32.mrf.mxu1 }
 0x231   :  { %v2347_v8 = vpop.f32.mrf.mxu3  ;;  %v2253_v10 = vadd.f32 %v2252_v14, %v6902_v54 }
 0x232   :  { %v2348_v44 = vadd.f32 %v2347_v8, %v2299_v50 }
 0x233   :  { %2447 = vmatmul.bf16.gmra.mxu1 %v7991_v37  ;;  %2496 = vmatmul.bf16.gmra.mxu2 %v7992_v26  ;;  %v7995_v26 = vld [vmem:[#allocation18_spill] sm:$0xff] }
 0x234   :  { %v2955_v30 = vpack.c.bf16 %v2348_v44, %v2346_v13  ;;  %v7207_v58 = vpop.f32.mrf.mxu0 }
 0x236   :  { %2545 = vmatmul.bf16.gmra.mxu3 %v7993_v18  ;;  %v2301_v41 = vpop.f32.mrf.mxu2  ;;  %v7996_v18 = vld [vmem:[#allocation19_spill] sm:$0xff] }
 0x237   :  { %2594 = vmatmul.bf16.gmra.mxu0 %v7994_v57  ;;  %v2302_v34 = vadd.f32 %v2301_v41, %v2253_v10  ;;  %v7997_v57 = vld [vmem:[#allocation20_spill] sm:$0xff] }
 0x238   :  { %v2254_v52 = vpop.f32.mrf.mxu1 }
 0x239   :  { %v2350_v22 = vpop.f32.mrf.mxu3  ;;  %v2255_v7 = vadd.f32 %v2254_v52, %v6905_v45  ;;  %v7998_v52 = vld [vmem:[#allocation21_spill] sm:$0xff] }
 0x23a   :  { %v2351_v13 = vadd.f32 %v2350_v22, %v2302_v34 }
 0x23c   :  { %v7211_v32 = vpop.f32.mrf.mxu0 }
 0x23e   :  { %v2303_v49 = vpop.f32.mrf.mxu2 }
 0x23f   :  { %v2304_v39 = vadd.f32 %v2303_v49, %v2255_v7 }
 0x240   :  { %v2413_v8 = vpop.f32.mrf.mxu1 }
 0x241   :  { %v2352_v50 = vpop.f32.mrf.mxu3  ;;  %v2414_v54 = vadd.f32 %v2413_v8, %v6910_v47 }
 0x242   :  { %v2353_v44 = vadd.f32 %v2352_v50, %v2304_v39 }
 0x243   :  { %2608 = vmatmul.bf16.vlgmr.msrb.gmra.mxu1 %v7995_v26  ;;  %2657 = vmatmul.bf16.vlgmr.msrb.gmra.mxu2 %v7996_v18 }
 0x244   :  { %v2957_v37 = vpack.c.bf16 %v2353_v44, %v2351_v13  ;;  %v2560_v5 = vpop.f32.mrf.mxu0 }
 0x246   :  { %2706 = vmatmul.bf16.vlgmr.msrb.gmra.mxu3 %v7997_v57  ;;  %3013 = vmatpush.bf16.msra.mxu0 %v2957_v37  ;;  %v2462_v14 = vpop.f32.mrf.mxu2  ;;  %v7999_v37 = vld [vmem:[#allocation22_spill] sm:$0xff] }
 0x247   :  { %v2463_v41 = vadd.f32 %v2462_v14, %v2414_v54  ;;  %2755 = vmatmul.bf16.vlgmr.msrb.gmra.mxu0 %v7998_v52 }
 0x248   :  { %v2415_v10 = vpop.f32.mrf.mxu1 }
 0x249   :  { %v2511_v45 = vpop.f32.mrf.mxu3  ;;  %v2416_v49 = vadd.f32 %v2415_v10, %v6916_v35  ;;  %v8004_v10 = vpack.c.bf16 %v6918_v40, %v6913_v36 }
 0x24a   :  { %v2512_v7 = vadd.f32 %v2511_v45, %v2463_v41  ;;  %3014 = vmatpush.bf16.msra.mxu0 %v2955_v30  ;;  %v8000_v30 = vld [vmem:[#allocation23_spill] sm:$0xff] }
 0x24c   :  { %v7219_v22 = vadd.f32 %v2560_v5, %v2512_v7  ;;  %v2562_v34 = vpop.f32.mrf.mxu0  ;;  %v8001_v5 = vld [vmem:[#allocation24_spill] sm:$0xff] }
 0x24e   :  { %3015 = vmatpush.bf16.msra.mxu0 %v2953_v9  ;;  %v2464_v39 = vpop.f32.mrf.mxu2 }
 0x24f   :  { %v2465_v50 = vadd.f32 %v2464_v39, %v2416_v49  ;;  %v8008_v39 = vld [vmem:[#allocation29_spill] sm:$0xff] }
 0x250   :  { %v2418_v44 = vpop.f32.mrf.mxu1 }
 0x251   :  { %v2513_v13 = vpop.f32.mrf.mxu3  ;;  %v2419_v35 = vadd.f32 %v2418_v44, %v6926_v31 }
 0x252   :  { %v2514_v47 = vadd.f32 %v2513_v13, %v2465_v50  ;;  %3016 = vmatpush.bf16.msra.mxu0 %v2951_v6 }
 0x253   :  { %2613 = vmatmul.bf16.gmra.mxu1 %v7999_v37  ;;  %2662 = vmatmul.bf16.gmra.mxu2 %v8000_v30 }
 0x254   :  { %v7225_v8 = vadd.f32 %v2562_v34, %v2514_v47  ;;  %v2565_v26 = vpop.f32.mrf.mxu0 }
 0x256   :  { %2711 = vmatmul.bf16.gmra.mxu3 %v8001_v5  ;;  %3017 = vmatpush.bf16.msra.mxu0 %v2949_v42  ;;  %v2467_v9 = vpop.f32.mrf.mxu2 }
 0x257   :  { %v2468_v18 = vadd.f32 %v2467_v9, %v2419_v35  ;;  %2760 = vmatmul.bf16.gmra.mxu0 %v8002_v29  ;;  %v8010_v9 = vld [vmem:[#allocation31_spill] sm:$0xff] }
 0x258   :  { %v2420_v16 = vpop.f32.mrf.mxu1 }
 0x259   :  { %v2516_v57 = vpop.f32.mrf.mxu3  ;;  %v2421_v31 = vadd.f32 %v2420_v16, %v6932_v25  ;;  %v8007_v25 = vld [vmem:[#allocation28_spill] sm:$0xff] }
 0x25a   :  { %v2517_v6 = vadd.f32 %v2516_v57, %v2468_v18  ;;  %3018 = vmatpush.bf16.msra.mxu0 %v2947_v28  ;;  %v8006_v28 = vld [vmem:[#allocation27_spill] sm:$0xff]  ;;  %v8011_v18 = vld [vmem:[#allocation32_spill] sm:$0xff] }
 0x25c   :  { %v7238_v54 = vadd.f32 %v2565_v26, %v2517_v6  ;;  %v2567_v14 = vpop.f32.mrf.mxu0 }
 0x25e   :  { %3019 = vmatpush.bf16.msra.mxu0 %v8003_v33  ;;  %v2469_v19 = vpop.f32.mrf.mxu2 }
 0x25f   :  { %v2470_v42 = vadd.f32 %v2469_v19, %v2421_v31 }
 0x260   :  { %v2423_v45 = vpop.f32.mrf.mxu1 }
 0x261   :  { %v2518_v41 = vpop.f32.mrf.mxu3  ;;  %v2424_v17 = vadd.f32 %v2423_v45, %v6942_v48  ;;  %v8009_v48 = vld [vmem:[#allocation30_spill] sm:$0xff] }
 0x262   :  { %v2519_v52 = vadd.f32 %v2518_v41, %v2470_v42  ;;  %3020 = vmatpush.bf16.msra.mxu0 %v8004_v10 }
 0x263   :  { %2618 = vmatmul.bf16.gmra.mxu1 %v8005_v27  ;;  %2667 = vmatmul.bf16.gmra.mxu2 %v8006_v28 }
 0x264   :  { %v7247_v60 = vadd.f32 %v2567_v14, %v2519_v52  ;;  %v2570_v7 = vpop.f32.mrf.mxu0 }
 0x266   :  { %2716 = vmatmul.bf16.gmra.mxu3 %v8007_v25  ;;  %v2472_v59 = vpop.f32.mrf.mxu2  ;;  %v4502_v25 = vld [vmem:[%s7854_s2 + $0x4f8] sm:$0xf0] }
 0x267   :  { %v2473_v34 = vadd.f32 %v2472_v59, %v2424_v17  ;;  %2765 = vmatmul.bf16.gmra.mxu0 %v8008_v39  ;;  %v8014_v59 = vld [vmem:[#allocation35_spill] sm:$0xff]  ;;  %v5024_v39 = vld [vmem:[%s7854_s2 + $0x5f4] sm:$0xf] }
 0x268   :  { %v2425_v50 = vpop.f32.mrf.mxu1 }
 0x269   :  { %v2521_v49 = vpop.f32.mrf.mxu3  ;;  %v2426_v44 = vadd.f32 %v2425_v50, %v6948_v0  ;;  %v8012_v0 = vld [vmem:[#allocation33_spill] sm:$0xff] }
 0x26a   :  { %v2522_v13 = vadd.f32 %v2521_v49, %v2473_v34  ;;  %v4566_v49 = vld [vmem:[%s7854_s2 + $0x578] sm:$0xf0] }
 0x26b   :  { %v4630_v50 = vld [vmem:[%s7854_s2 + $0x5f8] sm:$0xf0] }
 0x26c   :  { %v7254_v36 = vadd.f32 %v2570_v7, %v2522_v13  ;;  %v2572_v40 = vpop.f32.mrf.mxu0  ;;  %v5008_v7 = vld [vmem:[%s7854_s2 + $0x574] sm:$0xf] }
 0x26d   :  { %v8015_v13 = vld [vmem:[#allocation36_spill] sm:$0xff] }
 0x26e   :  { %v2474_v47 = vpop.f32.mrf.mxu2 }
 0x26f   :  { %v2475_v37 = vadd.f32 %v2474_v47, %v2426_v44  ;;  %v4569_v44 = vor.u32 %v5008_v7, %v4566_v49  ;;  %v4633_v47 = vor.u32 %v5024_v39, %v4630_v50  ;;  %v4986_v49 = vld [vmem:[%s7854_s2 + $0x4c4] sm:$0xf]  ;;  %v4478_v39 = vld [vmem:[%s7854_s2 + $0x4c8] sm:$0xf0] }
 0x270   :  { %v2428_v5 = vpop.f32.mrf.mxu1  ;;  %v5002_v50 = vld [vmem:[%s7854_s2 + $0x544] sm:$0xf] }
 0x271   :  { %v2523_v30 = vpop.f32.mrf.mxu3  ;;  %v2429_v29 = vadd.f32 %v2428_v5, %v6958_v61  ;;  %v4992_v61 = vld [vmem:[%s7854_s2 + $0x4f4] sm:$0xf]  ;;  %2845 = vmatpush.bf16.msra.mxu2 %v4569_v44  ;;  %2894 = vmatpush.bf16.msra.mxu3 %v4633_v47  ;;  %v4990_v5 = vld [vmem:[%s7854_s2 + $0x4e4] sm:$0xf]  ;;  %v4481_v44 = vor.u32 %v4986_v49, %v4478_v39  ;;  %v4590_v39 = vld [vmem:[%s7854_s2 + $0x5a8] sm:$0xf0] }
 0x272   :  { %v2524_v26 = vadd.f32 %v2523_v30, %v2475_v37  ;;  %v4505_v34 = vor.u32 %v4992_v61, %v4502_v25  ;;  %v4614_v61 = vld [vmem:[%s7854_s2 + $0x5d8] sm:$0xf0]  ;;  %v5018_v47 = vld [vmem:[%s7854_s2 + $0x5c4] sm:$0xf] }
 0x273   :  { %2623 = vmatmul.bf16.gmra.mxu1 %v8009_v48  ;;  %2672 = vmatmul.bf16.gmra.mxu2 %v8010_v9  ;;  %v5006_v48 = vld [vmem:[%s7854_s2 + $0x564] sm:$0xf] }
 0x274   :  { %v7257_v35 = vadd.f32 %v2572_v40, %v2524_v26  ;;  %v2575_v57 = vpop.f32.mrf.mxu0  ;;  %2796 = vmatpush.bf16.msra.mxu1 %v4505_v34  ;;  %v4494_v26 = vld [vmem:[%s7854_s2 + $0x4e8] sm:$0xf0]  ;;  %v5014_v49 = vld [vmem:[%s7854_s2 + $0x5a4] sm:$0xf] }
 0x276   :  { %2721 = vmatmul.bf16.gmra.mxu3 %v8011_v18  ;;  %v2477_v16 = vpop.f32.mrf.mxu2 }
 0x277   :  { %v2478_v6 = vadd.f32 %v2477_v16, %v2429_v29  ;;  %2770 = vmatmul.bf16.gmra.mxu0 %v8012_v0  ;;  %v4558_v29 = vld [vmem:[%s7854_s2 + $0x568] sm:$0xf0]  ;;  %v5022_v16 = vld [vmem:[%s7854_s2 + $0x5e4] sm:$0xf] }
 0x278   :  { %v2430_v31 = vpop.f32.mrf.mxu1  ;;  %v4561_v0 = vor.u32 %v5006_v48, %v4558_v29  ;;  %v8018_v29 = vld [vmem:[#allocation39_spill] sm:$0xff] }
 0x279   :  { %v2526_v14 = vpop.f32.mrf.mxu3  ;;  %v2431_v41 = vadd.f32 %v2430_v31, %v6964_v2  ;;  %v8013_v2 = vld [vmem:[#allocation34_spill] sm:$0xff] }
 0x27a   :  { %v2527_v33 = vadd.f32 %v2526_v14, %v2478_v6  ;;  %v4622_v6 = vld [vmem:[%s7854_s2 + $0x5e8] sm:$0xf0]  ;;  %2846 = vmatpush.bf16.msra.mxu2 %v4561_v0  ;;  %v4598_v0 = vld [vmem:[%s7854_s2 + $0x5b8] sm:$0xf0] }
 0x27b   :  { %v4625_v31 = vor.u32 %v5022_v16, %v4622_v6  ;;  %v4534_v6 = vld [vmem:[%s7854_s2 + $0x538] sm:$0xf0] }
 0x27c   :  { %v7264_v19 = vadd.f32 %v2575_v57, %v2527_v33  ;;  %v2577_v42 = vpop.f32.mrf.mxu0  ;;  %v8016_v57 = vld [vmem:[#allocation37_spill] sm:$0xff] }
 0x27d   :  { %2895 = vmatpush.bf16.msra.mxu3 %v4625_v31  ;;  %v8019_v31 = vld [vmem:[#allocation40_spill] sm:$0xff] }
 0x27e   :  { %v2479_v45 = vpop.f32.mrf.mxu2 }
 0x27f   :  { %v2480_v52 = vadd.f32 %v2479_v45, %v2431_v41  ;;  %v4486_v41 = vld [vmem:[%s7854_s2 + $0x4d8] sm:$0xf0]  ;;  %v5004_v45 = vld [vmem:[%s7854_s2 + $0x554] sm:$0xf] }
 0x280   :  { %v2433_v27 = vpop.f32.mrf.mxu1 }
 0x281   :  { %v2528_v10 = vpop.f32.mrf.mxu3  ;;  %v2434_v37 = vadd.f32 %v2433_v27, %v6992_v56  ;;  %v4497_v56 = vor.u32 %v4990_v5, %v4494_v26  ;;  %v4550_v27 = vld [vmem:[%s7854_s2 + $0x558] sm:$0xf0] }
 0x282   :  { %v2529_v28 = vadd.f32 %v2528_v10, %v2480_v52  ;;  %v4553_v7 = vor.u32 %v5004_v45, %v4550_v27  ;;  %v4982_v27 = vld [vmem:[%s7854_s2 + $0x4a4] sm:$0xf] }
 0x283   :  { %2628 = vmatmul.bf16.gmra.mxu1 %v8013_v2  ;;  %2677 = vmatmul.bf16.gmra.mxu2 %v8014_v59 }
 0x284   :  { %v7276_v17 = vadd.f32 %v2577_v42, %v2529_v28  ;;  %v2580_v40 = vpop.f32.mrf.mxu0  ;;  %2797 = vmatpush.bf16.msra.mxu1 %v4497_v56  ;;  %v4988_v42 = vld [vmem:[%s7854_s2 + $0x4d4] sm:$0xf]  ;;  %2847 = vmatpush.bf16.msra.mxu2 %v4553_v7  ;;  %v8017_v56 = vld [vmem:[#allocation38_spill] sm:$0xff] }
 0x285   :  { %v4489_v10 = vor.u32 %v4988_v42, %v4486_v41  ;;  %v5020_v28 = vld [vmem:[%s7854_s2 + $0x5d4] sm:$0xf] }
 0x286   :  { %2726 = vmatmul.bf16.gmra.mxu3 %v8015_v13  ;;  %v2482_v30 = vpop.f32.mrf.mxu2  ;;  %v4617_v2 = vor.u32 %v5020_v28, %v4614_v61  ;;  %v4462_v28 = vld [vmem:[%s7854_s2 + $0x4a8] sm:$0xf0]  ;;  %v4998_v61 = vld [vmem:[%s7854_s2 + $0x524] sm:$0xf] }
 0x287   :  { %v2483_v9 = vadd.f32 %v2482_v30, %v2434_v37  ;;  %2775 = vmatmul.bf16.gmra.mxu0 %v8016_v57  ;;  %v4606_v37 = vld [vmem:[%s7854_s2 + $0x5c8] sm:$0xf0]  ;;  %v5000_v57 = vld [vmem:[%s7854_s2 + $0x534] sm:$0xf] }
 0x288   :  { %v2435_v14 = vpop.f32.mrf.mxu1  ;;  %2798 = vmatpush.bf16.msra.mxu1 %v4489_v10  ;;  %2896 = vmatpush.bf16.msra.mxu3 %v4617_v2  ;;  %v4609_v26 = vor.u32 %v5018_v47, %v4606_v37  ;;  %v4537_v42 = vor.u32 %v5000_v57, %v4534_v6  ;;  %v4454_v47 = vld [vmem:[%s7854_s2 + $0x498] sm:$0xf0]  ;;  %v4996_v37 = vld [vmem:[%s7854_s2 + $0x514] sm:$0xf] }
 0x289   :  { %v2531_v18 = vpop.f32.mrf.mxu3  ;;  %v2436_v59 = vadd.f32 %v2435_v14, %v7045_v4  ;;  %v4542_v4 = vld [vmem:[%s7854_s2 + $0x548] sm:$0xf0]  ;;  %v5016_v14 = vld [vmem:[%s7854_s2 + $0x5b4] sm:$0xf] }
 0x28a   :  { %v2532_v33 = vadd.f32 %v2531_v18, %v2483_v9  ;;  %v4545_v5 = vor.u32 %v5002_v50, %v4542_v4  ;;  %v4984_v9 = vld [vmem:[%s7854_s2 + $0x4b4] sm:$0xf]  ;;  %v4470_v18 = vld [vmem:[%s7854_s2 + $0x4b8] sm:$0xf0]  ;;  %v4601_v41 = vor.u32 %v5016_v14, %v4598_v0  ;;  %v4978_v14 = vld [vmem:[%s7854_s2 + $0x484] sm:$0xf] }
 0x28b   :  { %v4473_v16 = vor.u32 %v4984_v9, %v4470_v18  ;;  %v4980_v4 = vld [vmem:[%s7854_s2 + $0x494] sm:$0xf]  ;;  %v4582_v18 = vld [vmem:[%s7854_s2 + $0x598] sm:$0xf0]  ;;  %v4446_v0 = vld [vmem:[%s7854_s2 + $0x488] sm:$0xf0] }
 0x28c   :  { %v7319_v52 = vadd.f32 %v2580_v40, %v2532_v33  ;;  %v7330_v25 = vpop.f32.mrf.mxu0  ;;  %2799 = vmatpush.bf16.msra.mxu1 %v4481_v44  ;;  %2848 = vmatpush.bf16.msra.mxu2 %v4545_v5  ;;  %v4457_v5 = vor.u32 %v4980_v4, %v4454_v47  ;;  %v5012_v9 = vld [vmem:[%s7854_s2 + $0x594] sm:$0xf] }
 0x28d   :  { %2897 = vmatpush.bf16.msra.mxu3 %v4609_v26  ;;  %v4518_v26 = vld [vmem:[%s7854_s2 + $0x518] sm:$0xf0] }
 0x28e   :  { %v2484_v34 = vpop.f32.mrf.mxu2 }
 0x28f   :  { %v2485_v13 = vadd.f32 %v2484_v34, %v2436_v59  ;;  %v8020_v59 = vld [vmem:[#allocation41_spill] sm:$0xff]  ;;  %v4526_v34 = vld [vmem:[%s7854_s2 + $0x528] sm:$0xf0] }
 0x290   :  { %v2438_v30 = vpop.f32.mrf.mxu1  ;;  %2800 = vmatpush.bf16.msra.mxu1 %v4473_v16  ;;  %2849 = vmatpush.bf16.msra.mxu2 %v4537_v42 }
 0x291   :  { %v2533_v40 = vpop.f32.mrf.mxu3  ;;  %v2439_v45 = vadd.f32 %v2438_v30, %v7097_v12  ;;  %2898 = vmatpush.bf16.msra.mxu3 %v4601_v41  ;;  %v4465_v12 = vor.u32 %v4982_v27, %v4462_v28  ;;  %v4449_v41 = vor.u32 %v4978_v14, %v4446_v0  ;;  %v8022_v0 = vld [vmem:[#allocation43_spill] sm:$0xff] }
 0x292   :  { %v7351_v48 = vadd.f32 %v2533_v40, %v2485_v13  ;;  %v4529_v13 = vor.u32 %v4998_v61, %v4526_v34  ;;  %v4593_v40 = vor.u32 %v5014_v49, %v4590_v39 }
 0x293   :  { %2633 = vmatmul.bf16.gmra.mxu1 %v8017_v56  ;;  %2682 = vmatmul.bf16.gmra.mxu2 %v8018_v29  ;;  %v4521_v56 = vor.u32 %v4996_v37, %v4518_v26  ;;  %v4585_v29 = vor.u32 %v5012_v9, %v4582_v18  ;;  %v8021_v9 = vld [vmem:[#allocation42_spill] sm:$0xff] }
 0x294   :  { %v2585_v33 = vpop.f32.mrf.mxu0  ;;  %2801 = vmatpush.bf16.msra.mxu1 %v4465_v12  ;;  %2850 = vmatpush.bf16.msra.mxu2 %v4529_v13 }
 0x295   :  { %2899 = vmatpush.bf16.msra.mxu3 %v4593_v40 }
 0x296   :  { %2731 = vmatmul.bf16.gmra.mxu3 %v8019_v31  ;;  %v2487_v10 = vpop.f32.mrf.mxu2  ;;  %v4994_v31 = vld [vmem:[%s7854_s2 + $0x504] sm:$0xf] }
 0x297   :  { %v2488_v7 = vadd.f32 %v2487_v10, %v2439_v45  ;;  %2780 = vmatmul.bf16.gmra.mxu0 %v8020_v59  ;;  %v5010_v45 = vld [vmem:[%s7854_s2 + $0x584] sm:$0xf]  ;;  %v4574_v10 = vld [vmem:[%s7854_s2 + $0x588] sm:$0xf0] }
 0x298   :  { %v2440_v50 = vpop.f32.mrf.mxu1  ;;  %2802 = vmatpush.bf16.msra.mxu1 %v4457_v5  ;;  %2851 = vmatpush.bf16.msra.mxu2 %v4521_v56  ;;  %v4577_v61 = vor.u32 %v5010_v45, %v4574_v10 }
 0x299   :  { %v2536_v2 = vpop.f32.mrf.mxu3  ;;  %v2441_v16 = vadd.f32 %v2440_v50, %v7155_v11  ;;  %2900 = vmatpush.bf16.msra.mxu3 %v4585_v29  ;;  %v4510_v11 = vld [vmem:[%s7854_s2 + $0x508] sm:$0xf0] }
 0x29a   :  { %v2537_v44 = vadd.f32 %v2536_v2, %v2488_v7  ;;  %v4513_v28 = vor.u32 %v4994_v31, %v4510_v11  ;;  %v8023_v31 = vld [vmem:[#allocation44_spill] sm:$0xff] }
 0x29c   :  { %v7403_v30 = vadd.f32 %v2585_v33, %v2537_v44  ;;  %v7414_v57 = vpop.f32.mrf.mxu0  ;;  %2803 = vmatpush.bf16.msra.mxu1 %v4449_v41  ;;  %2852 = vmatpush.bf16.msra.mxu2 %v4513_v28 }
 0x29d   :  { %2901 = vmatpush.bf16.msra.mxu3 %v4577_v61 }
 0x29e   :  { %v2489_v6 = vpop.f32.mrf.mxu2 }
 0x29f   :  { %v2490_v33 = vadd.f32 %v2489_v6, %v2441_v16 }
 0x2a0   :  { %v2443_v27 = vpop.f32.mrf.mxu1 }
 0x2a1   :  { %v2538_v42 = vpop.f32.mrf.mxu3  ;;  %v2444_v59 = vadd.f32 %v2443_v27, %v7197_v51 }
 0x2a2   :  { %v7435_v7 = vadd.f32 %v2538_v42, %v2490_v33  ;;  %v8024_v33 = vld [vmem:[#allocation45_spill] sm:$0xff] }
 0x2a3   :  { %2638 = vmatmul.bf16.gmra.mxu1 %v6350_v1  ;;  %2687 = vmatmul.bf16.gmra.mxu2 %v6352_v20 }
 0x2a4   :  { %v2590_v2 = vpop.f32.mrf.mxu0 }
 0x2a6   :  { %2736 = vmatmul.bf16.gmra.mxu3 %v6363_v43  ;;  %v2492_v12 = vpop.f32.mrf.mxu2 }
 0x2a7   :  { %v2493_v34 = vadd.f32 %v2492_v12, %v2444_v59  ;;  %2785 = vmatmul.bf16.gmra.mxu0 %v6378_v24 }
 0x2a8   :  { %v2445_v39 = vpop.f32.mrf.mxu1 }
 0x2a9   :  { %v2541_v49 = vpop.f32.mrf.mxu3  ;;  %v2446_v1 = vadd.f32 %v2445_v39, %v7201_v38  ;;  %v8025_v39 = vld [vmem:[#allocation46_spill] sm:$0xff] }
 0x2aa   :  { %v2542_v50 = vadd.f32 %v2541_v49, %v2493_v34 }
 0x2ac   :  { %v7442_v13 = vadd.f32 %v2590_v2, %v2542_v50  ;;  %v7444_v40 = vpop.f32.mrf.mxu0  ;;  %v8026_v50 = vld [vmem:[#allocation47_spill] sm:$0xff] }
 0x2ae   :  { %v2494_v44 = vpop.f32.mrf.mxu2 }
 0x2af   :  { %v2495_v20 = vadd.f32 %v2494_v44, %v2446_v1  ;;  %v8027_v1 = vld [vmem:[#allocation48_spill] sm:$0xff] }
 0x2b0   :  { %v2448_v43 = vpop.f32.mrf.mxu1 }
 0x2b1   :  { %v2543_v4 = vpop.f32.mrf.mxu3  ;;  %v2449_v51 = vadd.f32 %v2448_v43, %v7207_v58 }
 0x2b2   :  { %v7447_v47 = vadd.f32 %v2543_v4, %v2495_v20 }
 0x2b3   :  { %2643 = vmatmul.bf16.gmra.mxu1 %v6416_v23  ;;  %2692 = vmatmul.bf16.gmra.mxu2 %v6418_v3 }
 0x2b4   :  { %v2595_v24 = vpop.f32.mrf.mxu0 }
 0x2b6   :  { %2741 = vmatmul.bf16.gmra.mxu3 %v6420_v55  ;;  %v2497_v37 = vpop.f32.mrf.mxu2 }
 0x2b7   :  { %v2498_v5 = vadd.f32 %v2497_v37, %v2449_v51  ;;  %2790 = vmatmul.bf16.gmra.mxu0 %v8021_v9 }
 0x2b8   :  { %v2450_v38 = vpop.f32.mrf.mxu1 }
 0x2b9   :  { %v2546_v26 = vpop.f32.mrf.mxu3  ;;  %v2451_v23 = vadd.f32 %v2450_v38, %v7211_v32 }
 0x2ba   :  { %v2547_v18 = vadd.f32 %v2546_v26, %v2498_v5 }
 0x2bc   :  { %v7454_v56 = vadd.f32 %v2595_v24, %v2547_v18  ;;  %v7456_v29 = vpop.f32.mrf.mxu0 }
 0x2be   :  { %v2499_v16 = vpop.f32.mrf.mxu2 }
 0x2bf   :  { %v2500_v3 = vadd.f32 %v2499_v16, %v2451_v23  ;;  %v8028_v16 = vld [vmem:[#allocation49_spill] sm:$0xff] }
 0x2c0   :  { %v2609_v55 = vpop.f32.mrf.mxu1 }
 0x2c1   :  { %v2548_v6 = vpop.f32.mrf.mxu3  ;;  %v2610_v58 = vadd.f32 %v2609_v55, %v7219_v22 }
 0x2c2   :  { %v7459_v14 = vadd.f32 %v2548_v6, %v2500_v3  ;;  %v8029_v3 = vld [vmem:[#allocation50_spill] sm:$0xff]  ;;  %v8030_v6 = vld [vmem:[#allocation51_spill] sm:$0xff] }
 0x2c3   :  { %2804 = vmatmul.bf16.vlgmr.msra.gmra.mxu1 %v8022_v0  ;;  %2853 = vmatmul.bf16.vlgmr.msra.gmra.mxu2 %v8023_v31 }
 0x2c4   :  { %v2756_v42 = vpop.f32.mrf.mxu0 }
 0x2c6   :  { %2902 = vmatmul.bf16.vlgmr.msra.gmra.mxu3 %v8024_v33  ;;  %v2658_v41 = vpop.f32.mrf.mxu2 }
 0x2c7   :  { %v2659_v11 = vadd.f32 %v2658_v41, %v2610_v58 }
 0x2c8   :  { %v2611_v10 = vpop.f32.mrf.mxu1 }
 0x2c9   :  { %v2707_v45 = vpop.f32.mrf.mxu3  ;;  %v2612_v27 = vadd.f32 %v2611_v10, %v7225_v8 }
 0x2ca   :  { %v2708_v32 = vadd.f32 %v2707_v45, %v2659_v11 }
 0x2cc   :  { %v7466_v28 = vadd.f32 %v2756_v42, %v2708_v32  ;;  %v7468_v61 = vpop.f32.mrf.mxu0 }
 0x2ce   :  { %v2660_v2 = vpop.f32.mrf.mxu2 }
 0x2cf   :  { %v2661_v22 = vadd.f32 %v2660_v2, %v2612_v27 }
 0x2d0   :  { %v2614_v12 = vpop.f32.mrf.mxu1 }
 0x2d1   :  { %v2709_v59 = vpop.f32.mrf.mxu3  ;;  %v2615_v49 = vadd.f32 %v2614_v12, %v7238_v54  ;;  %v8033_v12 = vld [vmem:[#allocation54_spill] sm:$0xff] }
 0x2d2   :  { %v7470_v34 = vadd.f32 %v2709_v59, %v2661_v22  ;;  %v8031_v22 = vld [vmem:[#allocation52_spill] sm:$0xff]  ;;  %v8032_v59 = vld [vmem:[#allocation53_spill] sm:$0xff] }
 0x2d3   :  { %2809 = vmatmul.bf16.gmra.mxu1 %v8025_v39  ;;  %2858 = vmatmul.bf16.gmra.mxu2 %v8026_v50 }
 0x2d4   :  { %v2761_v44 = vpop.f32.mrf.mxu0 }
 0x2d6   :  { %2907 = vmatmul.bf16.gmra.mxu3 %v8027_v1  ;;  %v2663_v8 = vpop.f32.mrf.mxu2 }
 0x2d7   :  { %v2664_v20 = vadd.f32 %v2663_v8, %v2615_v49 }
 0x2d8   :  { %v2616_v43 = vpop.f32.mrf.mxu1 }
 0x2d9   :  { %v2712_v4 = vpop.f32.mrf.mxu3  ;;  %v2617_v51 = vadd.f32 %v2616_v43, %v7247_v60 }
 0x2da   :  { %v2713_v24 = vadd.f32 %v2712_v4, %v2664_v20 }
 0x2dc   :  { %v7477_v37 = vadd.f32 %v2761_v44, %v2713_v24  ;;  %v7479_v5 = vpop.f32.mrf.mxu0 }
 0x2de   :  { %v2665_v26 = vpop.f32.mrf.mxu2 }
 0x2df   :  { %v2666_v54 = vadd.f32 %v2665_v26, %v2617_v51 }
 0x2e0   :  { %v2619_v38 = vpop.f32.mrf.mxu1 }
 0x2e1   :  { %v2714_v9 = vpop.f32.mrf.mxu3  ;;  %v2620_v23 = vadd.f32 %v2619_v38, %v7254_v36  ;;  %v8035_v38 = vld [vmem:[#allocation56_spill] sm:$0xff] }
 0x2e2   :  { %v7481_v18 = vadd.f32 %v2714_v9, %v2666_v54  ;;  %v8034_v9 = vld [vmem:[#allocation55_spill] sm:$0xff] }
 0x2e3   :  { %2814 = vmatmul.bf16.gmra.mxu1 %v8028_v16  ;;  %2863 = vmatmul.bf16.gmra.mxu2 %v8029_v3 }
 0x2e4   :  { %v2766_v55 = vpop.f32.mrf.mxu0 }
 0x2e6   :  { %2912 = vmatmul.bf16.gmra.mxu3 %v8030_v6  ;;  %v2668_v60 = vpop.f32.mrf.mxu2 }
 0x2e7   :  { %v2669_v58 = vadd.f32 %v2668_v60, %v2620_v23  ;;  %v8036_v23 = vld [vmem:[#allocation57_spill] sm:$0xff] }
 0x2e8   :  { %v2621_v31 = vpop.f32.mrf.mxu1 }
 0x2e9   :  { %v2717_v0 = vpop.f32.mrf.mxu3  ;;  %v2622_v42 = vadd.f32 %v2621_v31, %v7257_v35 }
 0x2ea   :  { %v2718_v33 = vadd.f32 %v2717_v0, %v2669_v58 }
 0x2ec   :  { %v7488_v41 = vadd.f32 %v2766_v55, %v2718_v33  ;;  %v7490_v11 = vpop.f32.mrf.mxu0 }
 0x2ee   :  { %v2670_v45 = vpop.f32.mrf.mxu2 }
 0x2ef   :  { %v2671_v36 = vadd.f32 %v2670_v45, %v2622_v42  ;;  %v8037_v42 = vld [vmem:[#allocation58_spill] sm:$0xff]  ;;  %v8038_v45 = vld [vmem:[#allocation59_spill] sm:$0xff] }
 0x2f0   :  { %v2624_v32 = vpop.f32.mrf.mxu1 }
 0x2f1   :  { %v2719_v10 = vpop.f32.mrf.mxu3  ;;  %v2625_v2 = vadd.f32 %v2624_v32, %v7264_v19 }
 0x2f2   :  { %v7492_v27 = vadd.f32 %v2719_v10, %v2671_v36  ;;  %v8039_v36 = vld [vmem:[#allocation60_spill] sm:$0xff] }
 0x2f3   :  { %2819 = vmatmul.bf16.gmra.mxu1 %v8031_v22  ;;  %2868 = vmatmul.bf16.gmra.mxu2 %v8032_v59 }
 0x2f4   :  { %v2771_v49 = vpop.f32.mrf.mxu0 }
 0x2f6   :  { %2917 = vmatmul.bf16.gmra.mxu3 %v8033_v12  ;;  %v2673_v35 = vpop.f32.mrf.mxu2 }
 0x2f7   :  { %v2674_v39 = vadd.f32 %v2673_v35, %v2625_v2 }
 0x2f8   :  { %v2626_v1 = vpop.f32.mrf.mxu1 }
 0x2f9   :  { %v2722_v50 = vpop.f32.mrf.mxu3  ;;  %v2627_v8 = vadd.f32 %v2626_v1, %v7276_v17 }
 0x2fa   :  { %v2723_v44 = vadd.f32 %v2722_v50, %v2674_v39 }
 0x2fc   :  { %v7499_v20 = vadd.f32 %v2771_v49, %v2723_v44  ;;  %v7501_v43 = vpop.f32.mrf.mxu0 }
 0x2fe   :  { %v2675_v4 = vpop.f32.mrf.mxu2 }
 0x2ff   :  { %v2676_v19 = vadd.f32 %v2675_v4, %v2627_v8 }
 0x300   :  { %v2629_v51 = vpop.f32.mrf.mxu1 }
 0x301   :  { %v2724_v24 = vpop.f32.mrf.mxu3  ;;  %v2630_v54 = vadd.f32 %v2629_v51, %v7319_v52 }
 0x302   :  { %v7503_v26 = vadd.f32 %v2724_v24, %v2676_v19 }
 0x303   :  { %2824 = vmatmul.bf16.gmra.mxu1 %v8034_v9  ;;  %2873 = vmatmul.bf16.gmra.mxu2 %v8035_v38 }
 0x304   :  { %v2776_v55 = vpop.f32.mrf.mxu0 }
 0x306   :  { %2922 = vmatmul.bf16.gmra.mxu3 %v8036_v23  ;;  %v2678_v16 = vpop.f32.mrf.mxu2 }
 0x307   :  { %v2679_v17 = vadd.f32 %v2678_v16, %v2630_v54 }
 0x308   :  { %v7509_v6 = vpop.f32.mrf.mxu1 }
 0x309   :  { %v2727_v3 = vpop.f32.mrf.mxu3 }
 0x30a   :  { %v2728_v60 = vadd.f32 %v2727_v3, %v2679_v17 }
 0x30c   :  { %v7511_v58 = vadd.f32 %v2776_v55, %v2728_v60 }
 0x30e   :  { %v7513_v0 = vpop.f32.mrf.mxu2 }
 0x310   :  { %v2634_v52 = vpop.f32.mrf.mxu1 }
 0x311   :  { %v7515_v31 = vpop.f32.mrf.mxu3  ;;  %v2635_v33 = vadd.f32 %v2634_v52, %v7403_v30 }
 0x313   :  { %2829 = vmatmul.bf16.gmra.mxu1 %v8037_v42  ;;  %2878 = vmatmul.bf16.gmra.mxu2 %v8038_v45 }
 0x316   :  { %2927 = vmatmul.bf16.gmra.mxu3 %v8039_v36  ;;  %v2683_v10 = vpop.f32.mrf.mxu2 }
 0x317   :  { %v2684_v32 = vadd.f32 %v2683_v10, %v2635_v33 }
 0x318   :  { %v7521_v22 = vpop.f32.mrf.mxu1 }
 0x319   :  { %v2732_v2 = vpop.f32.mrf.mxu3 }
 0x31a   :  { %v7523_v59 = vadd.f32 %v2732_v2, %v2684_v32 }
 0x31e   :  { %v7525_v12 = vpop.f32.mrf.mxu2 }
 0x320   :  { %v2639_v35 = vpop.f32.mrf.mxu1 }
 0x321   :  { %v7527_v49 = vpop.f32.mrf.mxu3  ;;  %v2640_v30 = vadd.f32 %v2639_v35, %v7442_v13 }
 0x323   :  { %2834 = vmatmul.bf16.gmra.mxu1 %v6827_v63  ;;  %2883 = vmatmul.bf16.gmra.mxu2 %v6829_v15 }
 0x326   :  { %2932 = vmatmul.bf16.gmra.mxu3 %v6840_v53  ;;  %v2688_v39 = vpop.f32.mrf.mxu2 }
 0x327   :  { %v2689_v50 = vadd.f32 %v2688_v39, %v2640_v30 }
 0x328   :  { %v7533_v44 = vpop.f32.mrf.mxu1 }
 0x329   :  { %v2737_v1 = vpop.f32.mrf.mxu3 }
 0x32a   :  { %v7535_v8 = vadd.f32 %v2737_v1, %v2689_v50 }
 0x32e   :  { %v7537_v4 = vpop.f32.mrf.mxu2 }
 0x330   :  { %v2644_v24 = vpop.f32.mrf.mxu1 }
 0x331   :  { %v7539_v19 = vpop.f32.mrf.mxu3  ;;  %v2645_v13 = vadd.f32 %v2644_v24, %v7454_v56 }
 0x333   :  { %2839 = vmatmul.bf16.gmra.mxu1 %v6888_v21  ;;  %2888 = vmatmul.bf16.gmra.mxu2 %v6890_v62 }
 0x336   :  { %2937 = vmatmul.bf16.gmra.mxu3 %v6892_v46  ;;  %v2693_v63 = vpop.f32.mrf.mxu2  ;;  %v2759_v46 = vadd.f32 %v7468_v61, %v7470_v34  ;;  %v2764_v61 = vadd.f32 %v7479_v5, %v7481_v18  ;;  %v2769_v5 = vadd.f32 %v7490_v11, %v7492_v27  ;;  %v2774_v11 = vadd.f32 %v7501_v43, %v7503_v26  ;;  %v2778_v27 = vpop.f32.mrf.mxu0 }
 0x337   :  { %v2694_v15 = vadd.f32 %v2693_v63, %v2645_v13 }
 0x338   :  { %v7545_v51 = vpop.f32.mrf.mxu1 }
 0x339   :  { %v2742_v53 = vpop.f32.mrf.mxu3 }
 0x33a   :  { %v7547_v54 = vadd.f32 %v2742_v53, %v2694_v15 }
 0x33e   :  { %v7549_v9 = vpop.f32.mrf.mxu2  ;;  %v2781_v26 = vpop.f32.mrf.mxu0 }
 0x340   :  { %v2805_v23 = vpop.f32.mrf.mxu1 }
 0x341   :  { %v7551_v38 = vpop.f32.mrf.mxu3  ;;  %v2806_v56 = vadd.f32 %v2805_v23, %v7466_v28 }
 0x346   :  { %v2854_v16 = vpop.f32.mrf.mxu2 }
 0x347   :  { %v2855_v21 = vadd.f32 %v2854_v16, %v2806_v56 }
 0x348   :  { %v2807_v62 = vpop.f32.mrf.mxu1 }
 0x349   :  { %v2903_v17 = vpop.f32.mrf.mxu3  ;;  %v2808_v55 = vadd.f32 %v2807_v62, %v2759_v46 }
 0x34a   :  { %v7554_v3 = vadd.f32 %v2903_v17, %v2855_v21 }
 0x34e   :  { %v2856_v60 = vpop.f32.mrf.mxu2 }
 0x34f   :  { %v2857_v52 = vadd.f32 %v2856_v60, %v2808_v55 }
 0x350   :  { %v2810_v42 = vpop.f32.mrf.mxu1 }
 0x351   :  { %v2905_v33 = vpop.f32.mrf.mxu3  ;;  %v2811_v36 = vadd.f32 %v2810_v42, %v7477_v37 }
 0x352   :  { %v7558_v45 = vadd.f32 %v2905_v33, %v2857_v52 }
 0x354   :  { %v2944_v28 = vpack.c.bf16 %v7558_v45, %v7554_v3  ;;  %v7676_v3 = vld [vmem:[%s7856_s0 + $0x30] sm:$0xff]  ;;  %v5033_v45 = vld [vmem:[%s7857_s4 + $0x38] sm:$0xff] }
 0x355   :  { %3287 = vmatpush.bf16.msrb.mxu2 %v5033_v45 }
 0x356   :  { %v2859_v10 = vpop.f32.mrf.mxu2 }
 0x357   :  { %v2860_v32 = vadd.f32 %v2859_v10, %v2811_v36 }
 0x358   :  { %v2812_v35 = vpop.f32.mrf.mxu1 }
 0x359   :  { %v2908_v2 = vpop.f32.mrf.mxu3  ;;  %v2813_v34 = vadd.f32 %v2812_v35, %v2764_v61  ;;  %v2583_v35 = vadd.f32 %v7330_v25, %v7351_v48 }
 0x35a   :  { %v7563_v30 = vadd.f32 %v2908_v2, %v2860_v32 }
 0x35e   :  { %v2861_v39 = vpop.f32.mrf.mxu2 }
 0x35f   :  { %v2862_v50 = vadd.f32 %v2861_v39, %v2813_v34  ;;  %v2632_v39 = vadd.f32 %v7509_v6, %v2583_v35  ;;  %v2593_v35 = vadd.f32 %v7444_v40, %v7447_v47 }
 0x360   :  { %v2815_v24 = vpop.f32.mrf.mxu1 }
 0x361   :  { %v2910_v1 = vpop.f32.mrf.mxu3  ;;  %v2816_v37 = vadd.f32 %v2815_v24, %v7488_v41  ;;  %v2681_v24 = vadd.f32 %v7513_v0, %v2632_v39 }
 0x362   :  { %v7567_v13 = vadd.f32 %v2910_v1, %v2862_v50 }
 0x364   :  { %v2946_v63 = vpack.c.bf16 %v7567_v13, %v7563_v30  ;;  %v7669_v30 = vld [vmem:[%s7856_s0 + $0x28] sm:$0xff]  ;;  %v5032_v13 = vld [vmem:[%s7857_s4 + $0x30] sm:$0xff] }
 0x365   :  { %3288 = vmatpush.bf16.msrb.mxu2 %v5032_v13 }
 0x366   :  { %v2864_v15 = vpop.f32.mrf.mxu2 }
 0x367   :  { %v2865_v53 = vadd.f32 %v2864_v15, %v2816_v37  ;;  %v2730_v15 = vadd.f32 %v7515_v31, %v2681_v24 }
 0x368   :  { %v2817_v56 = vpop.f32.mrf.mxu1 }
 0x369   :  { %v2913_v23 = vpop.f32.mrf.mxu3  ;;  %v2818_v18 = vadd.f32 %v2817_v56, %v2769_v5  ;;  %v2779_v56 = vadd.f32 %v2778_v27, %v2730_v15 }
 0x36a   :  { %v7572_v16 = vadd.f32 %v2913_v23, %v2865_v53 }
 0x36e   :  { %v2866_v21 = vpop.f32.mrf.mxu2 }
 0x36f   :  { %v2867_v17 = vadd.f32 %v2866_v21, %v2818_v18  ;;  %v2783_v21 = vpop.f32.mrf.mxu0 }
 0x370   :  { %v2820_v46 = vpop.f32.mrf.mxu1 }
 0x371   :  { %v2915_v62 = vpop.f32.mrf.mxu3  ;;  %v2821_v41 = vadd.f32 %v2820_v46, %v7499_v20 }
 0x372   :  { %v7576_v55 = vadd.f32 %v2915_v62, %v2867_v17 }
 0x374   :  { %v2948_v60 = vpack.c.bf16 %v7576_v55, %v7572_v16  ;;  %v7662_v16 = vld [vmem:[%s7856_s0 + $0x20] sm:$0xff]  ;;  %v5031_v55 = vld [vmem:[%s7857_s4 + $0x28] sm:$0xff] }
 0x375   :  { %3289 = vmatpush.bf16.msrb.mxu2 %v5031_v55 }
 0x376   :  { %v2869_v52 = vpop.f32.mrf.mxu2 }
 0x377   :  { %v2870_v33 = vadd.f32 %v2869_v52, %v2821_v41 }
 0x378   :  { %v2822_v36 = vpop.f32.mrf.mxu1 }
 0x379   :  { %v2918_v42 = vpop.f32.mrf.mxu3  ;;  %v2823_v32 = vadd.f32 %v2822_v36, %v2774_v11 }
 0x37a   :  { %v7581_v10 = vadd.f32 %v2918_v42, %v2870_v33 }
 0x37e   :  { %v2871_v2 = vpop.f32.mrf.mxu2 }
 0x37f   :  { %v2872_v61 = vadd.f32 %v2871_v2, %v2823_v32 }
 0x380   :  { %v2825_v34 = vpop.f32.mrf.mxu1 }
 0x381   :  { %v2920_v20 = vpop.f32.mrf.mxu3  ;;  %v2826_v1 = vadd.f32 %v2825_v34, %v7511_v58  ;;  %v2588_v58 = vadd.f32 %v7414_v57, %v7435_v7  ;;  %v2782_v57 = vadd.f32 %v2781_v26, %v7523_v59  ;;  %v2786_v7 = vpop.f32.mrf.mxu0  ;;  %v2642_v34 = vadd.f32 %v7533_v44, %v2593_v35  ;;  %v7652_v35 = vld [vmem:[%s7856_s0 + $0x18] sm:$0xff] }
 0x382   :  { %v7588_v50 = vadd.f32 %v2920_v20, %v2872_v61  ;;  %v2598_v44 = vadd.f32 %v7456_v29, %v7459_v14 }
 0x383   :  { %v2637_v62 = vadd.f32 %v7521_v22, %v2588_v58 }
 0x384   :  { %v2950_v43 = vpack.c.bf16 %v7588_v50, %v7581_v10  ;;  %v2959_v10 = vld [vmem:[%s7858_s3] sm:$0x3]  ;;  %v5029_v50 = vld [vmem:[%s7857_s4 + $0x18] sm:$0xff] }
 0x385   :  { %v2686_v31 = vadd.f32 %v7525_v12, %v2637_v62 }
 0x386   :  { %v2874_v37 = vpop.f32.mrf.mxu2 }
 0x387   :  { %v2875_v53 = vadd.f32 %v2874_v37, %v2826_v1  ;;  %v2735_v33 = vadd.f32 %v7527_v49, %v2686_v31  ;;  %v2691_v1 = vadd.f32 %v7537_v4, %v2642_v34 }
 0x388   :  { %v2827_v48 = vpop.f32.mrf.mxu1 }
 0x389   :  { %v2923_v25 = vpop.f32.mrf.mxu3  ;;  %v2828_v6 = vadd.f32 %v2827_v48, %v2779_v56  ;;  %v2784_v11 = vadd.f32 %v2783_v21, %v2735_v33  ;;  %v2788_v59 = vpop.f32.mrf.mxu0  ;;  %v2740_v37 = vadd.f32 %v7539_v19, %v2691_v1  ;;  %v5026_v1 = vld [vmem:[%s7857_s4] sm:$0xff] }
 0x38a   :  { %v7595_v23 = vadd.f32 %v2923_v25, %v2875_v53  ;;  %v2787_v25 = vadd.f32 %v2786_v7, %v7535_v8  ;;  %v7619_v8 = vld [vmem:[%s7856_s0] sm:$0xff] }
 0x38b   :  { %v2789_v48 = vadd.f32 %v2788_v59, %v2740_v37  ;;  %3021 = vmatmul.bf16.vlgmr.msra.gmra.mxu0 %v7619_v8 }
 0x38e   :  { %v2876_v5 = vpop.f32.mrf.mxu2 }
 0x38f   :  { %v2877_v18 = vadd.f32 %v2876_v5, %v2828_v6 }
 0x390   :  { %v2830_v17 = vpop.f32.mrf.mxu1 }
 0x391   :  { %v2925_v0 = vpop.f32.mrf.mxu3  ;;  %v2831_v27 = vadd.f32 %v2830_v17, %v2782_v57  ;;  %v2791_v6 = vpop.f32.mrf.mxu0 }
 0x392   :  { %v7600_v46 = vadd.f32 %v2925_v0, %v2877_v18  ;;  %v2647_v0 = vadd.f32 %v7545_v51, %v2598_v44  ;;  %v2792_v33 = vadd.f32 %v2791_v6, %v7547_v54  ;;  %v7634_v54 = vld [vmem:[%s7856_s0 + $0x10] sm:$0xff] }
 0x394   :  { %v2952_v41 = vpack.c.bf16 %v7600_v46, %v7595_v23  ;;  %v2696_v17 = vadd.f32 %v7549_v9, %v2647_v0  ;;  %v7708_v23 = vperm.slane %v2959_v10, 0  ;;  %v5028_v46 = vld [vmem:[%s7857_s4 + $0x10] sm:$0xff] }
 0x396   :  { %v2879_v52 = vpop.f32.mrf.mxu2  ;;  %v2745_v29 = vadd.f32 %v7551_v38, %v2696_v17 }
 0x397   :  { %v2880_v32 = vadd.f32 %v2879_v52, %v2831_v27 }
 0x398   :  { %v2832_v36 = vpop.f32.mrf.mxu1 }
 0x399   :  { %v2928_v42 = vpop.f32.mrf.mxu3  ;;  %v2833_v2 = vadd.f32 %v2832_v36, %v2784_v11  ;;  %v2793_v52 = vpop.f32.mrf.mxu0 }
 0x39a   :  { %v2929_v39 = vadd.f32 %v2928_v42, %v2880_v32  ;;  %v2794_v42 = vadd.f32 %v2793_v52, %v2745_v29  ;;  %v7749_v29 = vperm.slane %v2959_v10, 1 }
 0x39e   :  { %v2881_v22 = vpop.f32.mrf.mxu2 }
 0x39f   :  { %v2882_v12 = vadd.f32 %v2881_v22, %v2833_v2  ;;  %v7628_v22 = vld [vmem:[%s7856_s0 + $0x8] sm:$0xff] }
 0x3a0   :  { %v2835_v20 = vpop.f32.mrf.mxu1  ;;  %3026 = vmatmul.bf16.gmra.mxu0 %v7628_v22 }
 0x3a1   :  { %v2930_v61 = vpop.f32.mrf.mxu3  ;;  %v2836_v40 = vadd.f32 %v2835_v20, %v2787_v25  ;;  %v5039_v20 = vld [vmem:[%s7857_s4 + $0x68] sm:$0xff] }
 0x3a2   :  { %v2931_v49 = vadd.f32 %v2930_v61, %v2882_v12  ;;  %v5027_v61 = vld [vmem:[%s7857_s4 + $0x8] sm:$0xff] }
 0x3a4   :  { %v2954_v24 = vpack.c.bf16 %v2931_v49, %v2929_v39 }
 0x3a6   :  { %v2884_v26 = vpop.f32.mrf.mxu2 }
 0x3a7   :  { %v2885_v47 = vadd.f32 %v2884_v26, %v2836_v40  ;;  %v5035_v40 = vld [vmem:[%s7857_s4 + $0x48] sm:$0xff] }
 0x3a8   :  { %v2837_v53 = vpop.f32.mrf.mxu1 }
 0x3a9   :  { %v2933_v15 = vpop.f32.mrf.mxu3  ;;  %v2838_v56 = vadd.f32 %v2837_v53, %v2789_v48  ;;  %v5036_v53 = vld [vmem:[%s7857_s4 + $0x50] sm:$0xff] }
 0x3aa   :  { %v2934_v21 = vadd.f32 %v2933_v15, %v2885_v47  ;;  %v5037_v15 = vld [vmem:[%s7857_s4 + $0x58] sm:$0xff] }
 0x3ae   :  { %v2886_v5 = vpop.f32.mrf.mxu2 }
 0x3af   :  { %v2887_v58 = vadd.f32 %v2886_v5, %v2838_v56  ;;  %v5034_v5 = vld [vmem:[%s7857_s4 + $0x40] sm:$0xff] }
 0x3b0   :  { %v2840_v18 = vpop.f32.mrf.mxu1  ;;  %3031 = vmatmul.bf16.gmra.mxu0 %v7634_v54 }
 0x3b1   :  { %v2935_v4 = vpop.f32.mrf.mxu3  ;;  %v2841_v36 = vadd.f32 %v2840_v18, %v2792_v33 }
 0x3b2   :  { %v2936_v19 = vadd.f32 %v2935_v4, %v2887_v58 }
 0x3b4   :  { %v2956_v62 = vpack.c.bf16 %v2936_v19, %v2934_v21 }
 0x3b6   :  { %v2889_v31 = vpop.f32.mrf.mxu2 }
 0x3b7   :  { %v2890_v57 = vadd.f32 %v2889_v31, %v2841_v36 }
 0x3b8   :  { %v2842_v51 = vpop.f32.mrf.mxu1 }
 0x3b9   :  { %v2938_v14 = vpop.f32.mrf.mxu3  ;;  %v2843_v7 = vadd.f32 %v2842_v51, %v2794_v42 }
 0x3ba   :  { %v2939_v2 = vadd.f32 %v2938_v14, %v2890_v57 }
 0x3be   :  { %v2891_v11 = vpop.f32.mrf.mxu2 }
 0x3bf   :  { %v2892_v27 = vadd.f32 %v2891_v11, %v2843_v7 }
 0x3c0   :  { %3036 = vmatmul.bf16.gmra.mxu0 %v7652_v35 }
 0x3c1   :  { %v2940_v32 = vpop.f32.mrf.mxu3 }
 0x3c2   :  { %v2941_v9 = vadd.f32 %v2940_v32, %v2892_v27 }
 0x3c4   :  { %v2958_v38 = vpack.c.bf16 %v2941_v9, %v2939_v2 }
 0x3c6   :  { %3062 = vmatpush.bf16.msrb.mxu1 %v2958_v38 }
 0x3ca   :  { %3063 = vmatpush.bf16.msrb.mxu1 %v2956_v62 }
 0x3ce   :  { %3064 = vmatpush.bf16.msrb.mxu1 %v2954_v24  ;;  %v5038_v24 = vld [vmem:[%s7857_s4 + $0x60] sm:$0xff] }
 0x3d0   :  { %3041 = vmatmul.bf16.gmra.mxu0 %v7662_v16 }
 0x3d2   :  { %3065 = vmatpush.bf16.msrb.mxu1 %v2952_v41  ;;  %v5040_v41 = vld [vmem:[%s7857_s4 + $0x70] sm:$0xff] }
 0x3d6   :  { %3066 = vmatpush.bf16.msrb.mxu1 %v2950_v43 }
 0x3da   :  { %3067 = vmatpush.bf16.msrb.mxu1 %v2948_v60  ;;  %v5030_v60 = vld [vmem:[%s7857_s4 + $0x20] sm:$0xff] }
 0x3db   :  { %3290 = vmatpush.bf16.msrb.mxu2 %v5030_v60 }
 0x3de   :  { %3068 = vmatpush.bf16.msrb.mxu1 %v2946_v63  ;;  %v5041_v63 = vld [vmem:[%s7857_s4 + $0x78] sm:$0xff] }
 0x3df   :  { %3336 = vmatpush.bf16.msrb.mxu3 %v5041_v63  ;;  %3291 = vmatpush.bf16.msrb.mxu2 %v5029_v50 }
 0x3e0   :  { %3046 = vmatmul.bf16.gmra.mxu0 %v7669_v30 }
 0x3e2   :  { %3069 = vmatpush.bf16.msrb.mxu1 %v2944_v28  ;;  %v7686_v28 = vld [vmem:[%s7856_s0 + $0x38] sm:$0xff] }
 0x3e3   :  { %3292 = vmatpush.bf16.msrb.mxu2 %v5028_v46  ;;  %3337 = vmatpush.bf16.msrb.mxu3 %v5040_v41 }
 0x3e5   :  { %3070 = vmatmul.bf16.vlgmr.msrb.gmra.mxu1 %v7619_v8 }
 0x3e7   :  { %3293 = vmatpush.bf16.msrb.mxu2 %v5027_v61  ;;  %3338 = vmatpush.bf16.msrb.mxu3 %v5039_v20 }
 0x3eb   :  { %3294 = vmatpush.bf16.msrb.mxu2 %v5026_v1  ;;  %3339 = vmatpush.bf16.msrb.mxu3 %v5038_v24 }
 0x3ef   :  { %3340 = vmatpush.bf16.msrb.mxu3 %v5037_v15 }
 0x3f0   :  { %3051 = vmatmul.bf16.gmra.mxu0 %v7676_v3 }
 0x3f3   :  { %3341 = vmatpush.bf16.msrb.mxu3 %v5036_v53 }
 0x3f5   :  { %3075 = vmatmul.bf16.gmra.mxu1 %v7628_v22 }
 0x3f7   :  { %3342 = vmatpush.bf16.msrb.mxu3 %v5035_v40 }
 0x3fb   :  { %3343 = vmatpush.bf16.msrb.mxu3 %v5034_v5 }
 0x400   :  { %3056 = vmatmul.bf16.gmra.mxu0 %v7686_v28 }
 0x405   :  { %3080 = vmatmul.bf16.gmra.mxu1 %v7634_v54 }
 0x408   :  { %v3022_v43 = vpop.f32.mrf.mxu0 }
 0x409   :  { %v3023_v12 = vadd.f32 %v3022_v43, %v7708_v23 }
 0x40b   :  { %v3111_v39 = vmax.f32 %v3023_v12, 0.0 }
 0x410   :  { %v3024_v34 = vpop.f32.mrf.mxu0 }
 0x411   :  { %v3025_v49 = vadd.f32 %v3024_v34, %v7708_v23 }
 0x413   :  { %v3113_v59 = vmax.f32 %v3025_v49, 0.0 }
 0x415   :  { %3085 = vmatmul.bf16.gmra.mxu1 %v7652_v35  ;;  %v3143_v26 = vpack.c.bf16 %v3113_v59, %v3111_v39 }
 0x417   :  { %3295 = vmatmul.bf16.vlgmr.msrb.gmra.mxu2 %v3143_v26 }
 0x41d   :  { %v3027_v37 = vpop.f32.mrf.mxu0 }
 0x41e   :  { %v3028_v25 = vadd.f32 %v3027_v37, %v7708_v23 }
 0x420   :  { %v3115_v56 = vmax.f32 %v3028_v25, 0.0 }
 0x425   :  { %3090 = vmatmul.bf16.gmra.mxu1 %v7662_v16  ;;  %v3029_v48 = vpop.f32.mrf.mxu0 }
 0x426   :  { %v3030_v47 = vadd.f32 %v3029_v48, %v7708_v23 }
 0x428   :  { %v3117_v6 = vmax.f32 %v3030_v47, 0.0 }
 0x42a   :  { %v3145_v44 = vpack.c.bf16 %v3117_v6, %v3115_v56 }
 0x42c   :  { %3300 = vmatmul.bf16.gmra.mxu2 %v3145_v44 }
 0x42d   :  { %v3032_v58 = vpop.f32.mrf.mxu0 }
 0x42e   :  { %v3033_v4 = vadd.f32 %v3032_v58, %v7708_v23 }
 0x430   :  { %v3119_v21 = vmax.f32 %v3033_v4, 0.0 }
 0x435   :  { %3095 = vmatmul.bf16.gmra.mxu1 %v7669_v30  ;;  %v3034_v18 = vpop.f32.mrf.mxu0 }
 0x436   :  { %v3035_v0 = vadd.f32 %v3034_v18, %v7708_v23 }
 0x438   :  { %v3121_v19 = vmax.f32 %v3035_v0, 0.0 }
 0x43a   :  { %v3147_v17 = vpack.c.bf16 %v3121_v19, %v3119_v21 }
 0x43c   :  { %3305 = vmatmul.bf16.gmra.mxu2 %v3147_v17 }
 0x43d   :  { %v3037_v62 = vpop.f32.mrf.mxu0 }
 0x43e   :  { %v3038_v14 = vadd.f32 %v3037_v62, %v7708_v23 }
 0x440   :  { %v3123_v57 = vmax.f32 %v3038_v14, 0.0 }
 0x445   :  { %3100 = vmatmul.bf16.gmra.mxu1 %v7676_v3  ;;  %v3039_v33 = vpop.f32.mrf.mxu0 }
 0x446   :  { %v3040_v42 = vadd.f32 %v3039_v33, %v7708_v23 }
 0x448   :  { %v3125_v7 = vmax.f32 %v3040_v42, 0.0 }
 0x44a   :  { %v3149_v2 = vpack.c.bf16 %v3125_v7, %v3123_v57 }
 0x44c   :  { %3310 = vmatmul.bf16.gmra.mxu2 %v3149_v2 }
 0x44d   :  { %v3042_v9 = vpop.f32.mrf.mxu0 }
 0x44e   :  { %v3043_v45 = vadd.f32 %v3042_v9, %v7708_v23 }
 0x450   :  { %v3127_v60 = vmax.f32 %v3043_v45, 0.0 }
 0x455   :  { %3105 = vmatmul.bf16.gmra.mxu1 %v7686_v28  ;;  %v3044_v63 = vpop.f32.mrf.mxu0 }
 0x456   :  { %v3045_v10 = vadd.f32 %v3044_v63, %v7708_v23 }
 0x458   :  { %v3129_v43 = vmax.f32 %v3045_v10, 0.0 }
 0x45a   :  { %v3151_v12 = vpack.c.bf16 %v3129_v43, %v3127_v60 }
 0x45c   :  { %3315 = vmatmul.bf16.gmra.mxu2 %v3151_v12 }
 0x45d   :  { %v3047_v20 = vpop.f32.mrf.mxu0 }
 0x45e   :  { %v3048_v39 = vadd.f32 %v3047_v20, %v7708_v23 }
 0x460   :  { %v3131_v59 = vmax.f32 %v3048_v39, 0.0 }
 0x462   :  { %v3071_v31 = vpop.f32.mrf.mxu1 }
 0x463   :  { %v3072_v52 = vadd.f32 %v3071_v31, %v7749_v29 }
 0x465   :  { %v3112_v11 = vmax.f32 %v3072_v52, 0.0  ;;  %v3049_v1 = vpop.f32.mrf.mxu0 }
 0x466   :  { %v3050_v26 = vadd.f32 %v3049_v1, %v7708_v23 }
 0x468   :  { %v3133_v15 = vmax.f32 %v3050_v26, 0.0 }
 0x46a   :  { %v3073_v51 = vpop.f32.mrf.mxu1  ;;  %v3153_v48 = vpack.c.bf16 %v3133_v15, %v3131_v59 }
 0x46b   :  { %v3074_v36 = vadd.f32 %v3073_v51, %v7749_v29 }
 0x46c   :  { %3320 = vmatmul.bf16.gmra.mxu2 %v3153_v48 }
 0x46d   :  { %v3114_v27 = vmax.f32 %v3074_v36, 0.0  ;;  %v3052_v47 = vpop.f32.mrf.mxu0 }
 0x46e   :  { %v3053_v6 = vadd.f32 %v3052_v47, %v7708_v23 }
 0x46f   :  { %v3144_v32 = vpack.c.bf16 %v3114_v27, %v3112_v11 }
 0x470   :  { %v3135_v4 = vmax.f32 %v3053_v6, 0.0 }
 0x471   :  { %3344 = vmatmul.bf16.vlgmr.msrb.gmra.mxu3 %v3144_v32 }
 0x472   :  { %v3076_v38 = vpop.f32.mrf.mxu1 }
 0x473   :  { %v3077_v13 = vadd.f32 %v3076_v38, %v7749_v29 }
 0x475   :  { %v3116_v46 = vmax.f32 %v3077_v13, 0.0  ;;  %v3054_v44 = vpop.f32.mrf.mxu0 }
 0x476   :  { %v3055_v18 = vadd.f32 %v3054_v44, %v7708_v23 }
 0x478   :  { %v3137_v21 = vmax.f32 %v3055_v18, 0.0 }
 0x47a   :  { %v3078_v55 = vpop.f32.mrf.mxu1  ;;  %v3155_v62 = vpack.c.bf16 %v3137_v21, %v3135_v4 }
 0x47b   :  { %v3079_v50 = vadd.f32 %v3078_v55, %v7749_v29 }
 0x47c   :  { %3325 = vmatmul.bf16.gmra.mxu2 %v3155_v62 }
 0x47d   :  { %v3118_v41 = vmax.f32 %v3079_v50, 0.0  ;;  %v3057_v14 = vpop.f32.mrf.mxu0 }
 0x47e   :  { %v3058_v33 = vadd.f32 %v3057_v14, %v7708_v23 }
 0x47f   :  { %v3146_v61 = vpack.c.bf16 %v3118_v41, %v3116_v46 }
 0x480   :  { %v3139_v57 = vmax.f32 %v3058_v33, 0.0 }
 0x481   :  { %3349 = vmatmul.bf16.gmra.mxu3 %v3146_v61 }
 0x482   :  { %v3081_v34 = vpop.f32.mrf.mxu1 }
 0x483   :  { %v3082_v49 = vadd.f32 %v3081_v34, %v7749_v29 }
 0x485   :  { %v3120_v53 = vmax.f32 %v3082_v49, 0.0  ;;  %v3059_v42 = vpop.f32.mrf.mxu0 }
 0x486   :  { %v3060_v7 = vadd.f32 %v3059_v42, %v7708_v23 }
 0x488   :  { %v3141_v27 = vmax.f32 %v3060_v7, 0.0 }
 0x48a   :  { %v3083_v24 = vpop.f32.mrf.mxu1  ;;  %v3157_v9 = vpack.c.bf16 %v3141_v27, %v3139_v57 }
 0x48b   :  { %v3084_v37 = vadd.f32 %v3083_v24, %v7749_v29 }
 0x48c   :  { %3330 = vmatmul.bf16.gmra.mxu2 %v3157_v9 }
 0x48d   :  { %v3122_v25 = vmax.f32 %v3084_v37, 0.0 }
 0x48f   :  { %v3148_v40 = vpack.c.bf16 %v3122_v25, %v3120_v53 }
 0x491   :  { %3354 = vmatmul.bf16.gmra.mxu3 %v3148_v40 }
 0x492   :  { %v3086_v56 = vpop.f32.mrf.mxu1 }
 0x493   :  { %v3087_v5 = vadd.f32 %v3086_v56, %v7749_v29 }
 0x495   :  { %v3124_v19 = vmax.f32 %v3087_v5, 0.0 }
 0x49a   :  { %v3088_v58 = vpop.f32.mrf.mxu1  ;;  %v3296_v39 = vpop.f32.mrf.mxu2 }
 0x49b   :  { %v3089_v0 = vadd.f32 %v3088_v58, %v7749_v29 }
 0x49d   :  { %v3126_v17 = vmax.f32 %v3089_v0, 0.0 }
 0x49f   :  { %v3150_v31 = vpack.c.bf16 %v3126_v17, %v3124_v19 }
 0x4a1   :  { %3359 = vmatmul.bf16.gmra.mxu3 %v3150_v31 }
 0x4a2   :  { %v3091_v52 = vpop.f32.mrf.mxu1  ;;  %v3298_v15 = vpop.f32.mrf.mxu2 }
 0x4a3   :  { %v3092_v51 = vadd.f32 %v3091_v52, %v7749_v29 }
 0x4a5   :  { %v3128_v32 = vmax.f32 %v3092_v51, 0.0 }
 0x4aa   :  { %v3093_v36 = vpop.f32.mrf.mxu1 }
 0x4ab   :  { %v3094_v11 = vadd.f32 %v3093_v36, %v7749_v29 }
 0x4ad   :  { %v3130_v2 = vmax.f32 %v3094_v11, 0.0 }
 0x4af   :  { %v3152_v38 = vpack.c.bf16 %v3130_v2, %v3128_v32  ;;  %v3301_v53 = vpop.f32.mrf.mxu2 }
 0x4b1   :  { %3364 = vmatmul.bf16.gmra.mxu3 %v3152_v38 }
 0x4b2   :  { %v3096_v45 = vpop.f32.mrf.mxu1 }
 0x4b3   :  { %v3097_v13 = vadd.f32 %v3096_v45, %v7749_v29 }
 0x4b5   :  { %v3132_v60 = vmax.f32 %v3097_v13, 0.0 }
 0x4b7   :  { %v3303_v48 = vpop.f32.mrf.mxu2 }
 0x4ba   :  { %v3098_v63 = vpop.f32.mrf.mxu1 }
 0x4bb   :  { %v3099_v55 = vadd.f32 %v3098_v63, %v7749_v29 }
 0x4bd   :  { %v3134_v10 = vmax.f32 %v3099_v55, 0.0 }
 0x4bf   :  { %v3154_v50 = vpack.c.bf16 %v3134_v10, %v3132_v60  ;;  %v3306_v6 = vpop.f32.mrf.mxu2 }
 0x4c1   :  { %3369 = vmatmul.bf16.gmra.mxu3 %v3154_v50 }
 0x4c2   :  { %v3101_v23 = vpop.f32.mrf.mxu1 }
 0x4c3   :  { %v3102_v43 = vadd.f32 %v3101_v23, %v7749_v29 }
 0x4c5   :  { %v3136_v12 = vmax.f32 %v3102_v43, 0.0 }
 0x4c7   :  { %v3308_v4 = vpop.f32.mrf.mxu2 }
 0x4ca   :  { %v3103_v46 = vpop.f32.mrf.mxu1 }
 0x4cb   :  { %v3104_v41 = vadd.f32 %v3103_v46, %v7749_v29 }
 0x4cd   :  { %v3138_v61 = vmax.f32 %v3104_v41, 0.0 }
 0x4cf   :  { %v3156_v20 = vpack.c.bf16 %v3138_v61, %v3136_v12 }
 0x4d1   :  { %3374 = vmatmul.bf16.gmra.mxu3 %v3156_v20 }
 0x4d2   :  { %v3106_v34 = vpop.f32.mrf.mxu1 }
 0x4d3   :  { %v3107_v49 = vadd.f32 %v3106_v34, %v7749_v29 }
 0x4d5   :  { %v3140_v59 = vmax.f32 %v3107_v49, 0.0 }
 0x4da   :  { %v3108_v1 = vpop.f32.mrf.mxu1 }
 0x4db   :  { %v3109_v24 = vadd.f32 %v3108_v1, %v7749_v29  ;;  %v3311_v29 = vpop.f32.mrf.mxu2 }
 0x4dd   :  { %v3142_v26 = vmax.f32 %v3109_v24, 0.0 }
 0x4df   :  { %v3158_v37 = vpack.c.bf16 %v3142_v26, %v3140_v59 }
 0x4e1   :  { %3379 = vmatmul.bf16.gmra.mxu3 %v3158_v37  ;;  %v7788_v37 = vld [vmem:[%s7859_s5] ss:$0 sm:$0xff] }
 0x4e3   :  { %v3313_v62 = vpop.f32.mrf.mxu2 }
 0x4eb   :  { %v3316_v42 = vpop.f32.mrf.mxu2 }
 0x4f3   :  { %v3318_v11 = vpop.f32.mrf.mxu2 }
 0x4f4   :  { %v3345_v25 = vpop.f32.mrf.mxu3 }
 0x4f5   :  { %v3346_v40 = vadd.f32 %v3345_v25, %v3296_v39 }
 0x4fb   :  { %v3321_v2 = vpop.f32.mrf.mxu2 }
 0x4fc   :  { %v3347_v47 = vpop.f32.mrf.mxu3 }
 0x4fd   :  { %v3348_v56 = vadd.f32 %v3347_v47, %v3298_v15 }
 0x4ff   :  { %v3385_v5 = vpack.c.bf16 %v3348_v56, %v3346_v40 }
 0x503   :  { %v3323_v38 = vpop.f32.mrf.mxu2 }
 0x504   :  { %v3350_v44 = vpop.f32.mrf.mxu3 }
 0x505   :  { %v3351_v58 = vadd.f32 %v3350_v44, %v3301_v53 }
 0x50b   :  { %v3326_v63 = vpop.f32.mrf.mxu2 }
 0x50c   :  { %v3352_v18 = vpop.f32.mrf.mxu3 }
 0x50d   :  { %v3353_v0 = vadd.f32 %v3352_v18, %v3303_v48 }
 0x50f   :  { %v3386_v21 = vpack.c.bf16 %v3353_v0, %v3351_v58 }
 0x513   :  { %v3328_v60 = vpop.f32.mrf.mxu2 }
 0x514   :  { %v3355_v19 = vpop.f32.mrf.mxu3 }
 0x515   :  { %v3356_v17 = vadd.f32 %v3355_v19, %v3306_v6 }
 0x51b   :  { %v3331_v50 = vpop.f32.mrf.mxu2 }
 0x51c   :  { %v3357_v31 = vpop.f32.mrf.mxu3 }
 0x51d   :  { %v3358_v14 = vadd.f32 %v3357_v31, %v3308_v4 }
 0x51f   :  { %v3387_v52 = vpack.c.bf16 %v3358_v14, %v3356_v17 }
 0x523   :  { %v3333_v43 = vpop.f32.mrf.mxu2 }
 0x524   :  { %v3360_v33 = vpop.f32.mrf.mxu3 }
 0x525   :  { %v3361_v51 = vadd.f32 %v3360_v33, %v3311_v29 }
 0x52c   :  { %v3362_v36 = vpop.f32.mrf.mxu3 }
 0x52d   :  { %v3363_v57 = vadd.f32 %v3362_v36, %v3313_v62 }
 0x52f   :  { %v3388_v7 = vpack.c.bf16 %v3363_v57, %v3361_v51 }
 0x534   :  { %v3365_v27 = vpop.f32.mrf.mxu3 }
 0x535   :  { %v3366_v32 = vadd.f32 %v3365_v27, %v3316_v42 }
 0x53c   :  { %v3367_v9 = vpop.f32.mrf.mxu3 }
 0x53d   :  { %v3368_v24 = vadd.f32 %v3367_v9, %v3318_v11 }
 0x53f   :  { %v3389_v26 = vpack.c.bf16 %v3368_v24, %v3366_v32 }
 0x544   :  { %v3370_v45 = vpop.f32.mrf.mxu3 }
 0x545   :  { %v3371_v1 = vadd.f32 %v3370_v45, %v3321_v2 }
 0x54c   :  { %v3372_v13 = vpop.f32.mrf.mxu3 }
 0x54d   :  { %v3373_v39 = vadd.f32 %v3372_v13, %v3323_v38 }
 0x54f   :  { %v3390_v59 = vpack.c.bf16 %v3373_v39, %v3371_v1 }
 0x554   :  { %v3375_v55 = vpop.f32.mrf.mxu3 }
 0x555   :  { %v3376_v34 = vadd.f32 %v3375_v55, %v3326_v63 }
 0x55c   :  { %v3377_v10 = vpop.f32.mrf.mxu3 }
 0x55d   :  { %v3378_v61 = vadd.f32 %v3377_v10, %v3328_v60 }
 0x55f   :  { %v3391_v49 = vpack.c.bf16 %v3378_v61, %v3376_v34 }
 0x564   :  { %v3380_v23 = vpop.f32.mrf.mxu3 }
 0x565   :  { %v3381_v41 = vadd.f32 %v3380_v23, %v3331_v50 }
 0x56c   :  { %v3382_v46 = vpop.f32.mrf.mxu3 }
 0x56d   :  { %v3383_v12 = vadd.f32 %v3382_v46, %v3333_v43 }
 0x56f   :  { %v3392_v20 = vpack.c.bf16 %v3383_v12, %v3381_v41 }
 0x571   :  { %3397 = vmatpush.bf16.msrb.mxu0 %v3392_v20 }
 0x575   :  { %3398 = vmatpush.bf16.msrb.mxu0 %v3391_v49 }
 0x579   :  { %3399 = vmatpush.bf16.msrb.mxu0 %v3390_v59 }
 0x57d   :  { %3400 = vmatpush.bf16.msrb.mxu0 %v3389_v26 }
 0x581   :  { %3401 = vmatpush.bf16.msrb.mxu0 %v3388_v7 }
 0x585   :  { %3402 = vmatpush.bf16.msrb.mxu0 %v3387_v52 }
 0x589   :  { %3403 = vmatpush.bf16.msrb.mxu0 %v3386_v21 }
 0x58d   :  { %3404 = vmatpush.bf16.msrb.mxu0 %v3385_v5 }
 0x590   :  { %3405 = vmatmul.bf16.vlgmr.msrb.gmra.mxu0 %v7619_v8 }
 0x5a0   :  { %3410 = vmatmul.bf16.gmra.mxu0 %v7628_v22 }
 0x5b0   :  { %3415 = vmatmul.bf16.gmra.mxu0 %v7634_v54 }
 0x5c0   :  { %3420 = vmatmul.bf16.gmra.mxu0 %v7652_v35 }
 0x5d0   :  { %3425 = vmatmul.bf16.gmra.mxu0 %v7662_v16 }
 0x5e0   :  { %3430 = vmatmul.bf16.gmra.mxu0 %v7669_v30 }
 0x5f0   :  { %3435 = vmatmul.bf16.gmra.mxu0 %v7676_v3 }
 0x600   :  { %3440 = vmatmul.bf16.gmra.mxu0 %v7686_v28 }
 0x60d   :  { %v3406_v8 = vpop.f32.mrf.mxu0 }
 0x60e   :  { %v3407_v22 = vadd.f32 %v7788_v37, %v3406_v8 }
 0x610   :  { %v3446_v15 = vmax.f32 %v3407_v22, 0.0 }
 0x612   :  { %3462 = vst [vmem:[%s7860_s6] sm:$0xff] %v3446_v15 }
 0x615   :  { %v3408_v54 = vpop.f32.mrf.mxu0 }
 0x616   :  { %v3409_v35 = vadd.f32 %v7788_v37, %v3408_v54 }
 0x618   :  { %v3447_v16 = vmax.f32 %v3409_v35, 0.0 }
 0x61a   :  { %3463 = vst [vmem:[%s7860_s6 + $0x8] sm:$0xff] %v3447_v16 }
 0x61d   :  { %v3411_v30 = vpop.f32.mrf.mxu0 }
 0x61e   :  { %v3412_v3 = vadd.f32 %v7788_v37, %v3411_v30 }
 0x620   :  { %v3448_v28 = vmax.f32 %v3412_v3, 0.0 }
 0x622   :  { %3464 = vst [vmem:[%s7860_s6 + $0x10] sm:$0xff] %v3448_v28 }
 0x625   :  { %v3413_v53 = vpop.f32.mrf.mxu0 }
 0x626   :  { %v3414_v25 = vadd.f32 %v7788_v37, %v3413_v53 }
 0x628   :  { %v3449_v48 = vmax.f32 %v3414_v25, 0.0 }
 0x62a   :  { %3465 = vst [vmem:[%s7860_s6 + $0x18] sm:$0xff] %v3449_v48 }
 0x62d   :  { %v3416_v40 = vpop.f32.mrf.mxu0 }
 0x62e   :  { %v3417_v47 = vadd.f32 %v7788_v37, %v3416_v40 }
 0x630   :  { %v3450_v56 = vmax.f32 %v3417_v47, 0.0 }
 0x632   :  { %3466 = vst [vmem:[%s7860_s6 + $0x20] sm:$0xff] %v3450_v56 }
 0x635   :  { %v3418_v6 = vpop.f32.mrf.mxu0 }
 0x636   :  { %v3419_v5 = vadd.f32 %v7788_v37, %v3418_v6 }
 0x638   :  { %v3451_v44 = vmax.f32 %v3419_v5, 0.0 }
 0x63a   :  { %3467 = vst [vmem:[%s7860_s6 + $0x28] sm:$0xff] %v3451_v44 }
 0x63d   :  { %v3421_v58 = vpop.f32.mrf.mxu0 }
 0x63e   :  { %v3422_v4 = vadd.f32 %v7788_v37, %v3421_v58 }
 0x640   :  { %v3452_v18 = vmax.f32 %v3422_v4, 0.0 }
 0x642   :  { %3468 = vst [vmem:[%s7860_s6 + $0x30] sm:$0xff] %v3452_v18 }
 0x645   :  { %v3423_v0 = vpop.f32.mrf.mxu0 }
 0x646   :  { %v3424_v21 = vadd.f32 %v7788_v37, %v3423_v0 }
 0x648   :  { %v3453_v29 = vmax.f32 %v3424_v21, 0.0 }
 0x64a   :  { %3469 = vst [vmem:[%s7860_s6 + $0x38] sm:$0xff] %v3453_v29 }
 0x64d   :  { %v3426_v19 = vpop.f32.mrf.mxu0 }
 0x64e   :  { %v3427_v17 = vadd.f32 %v7788_v37, %v3426_v19 }
 0x650   :  { %v3454_v62 = vmax.f32 %v3427_v17, 0.0 }
 0x652   :  { %3470 = vst [vmem:[%s7860_s6 + $0x40] sm:$0xff] %v3454_v62 }
 0x655   :  { %v3428_v31 = vpop.f32.mrf.mxu0 }
 0x656   :  { %v3429_v14 = vadd.f32 %v7788_v37, %v3428_v31 }
 0x658   :  { %v3455_v52 = vmax.f32 %v3429_v14, 0.0 }
 0x65a   :  { %3471 = vst [vmem:[%s7860_s6 + $0x48] sm:$0xff] %v3455_v52 }
 0x65d   :  { %v3431_v33 = vpop.f32.mrf.mxu0 }
 0x65e   :  { %v3432_v51 = vadd.f32 %v7788_v37, %v3431_v33 }
 0x660   :  { %v3456_v42 = vmax.f32 %v3432_v51, 0.0 }
 0x662   :  { %3472 = vst [vmem:[%s7860_s6 + $0x50] sm:$0xff] %v3456_v42 }
 0x665   :  { %v3433_v36 = vpop.f32.mrf.mxu0 }
 0x666   :  { %v3434_v57 = vadd.f32 %v7788_v37, %v3433_v36 }
 0x668   :  { %v3457_v7 = vmax.f32 %v3434_v57, 0.0 }
 0x66a   :  { %3473 = vst [vmem:[%s7860_s6 + $0x58] sm:$0xff] %v3457_v7 }
 0x66d   :  { %v3436_v11 = vpop.f32.mrf.mxu0 }
 0x66e   :  { %v3437_v27 = vadd.f32 %v7788_v37, %v3436_v11 }
 0x670   :  { %v3458_v32 = vmax.f32 %v3437_v27, 0.0 }
 0x672   :  { %3474 = vst [vmem:[%s7860_s6 + $0x60] sm:$0xff] %v3458_v32 }
 0x675   :  { %v3438_v2 = vpop.f32.mrf.mxu0 }
 0x676   :  { %v3439_v9 = vadd.f32 %v7788_v37, %v3438_v2 }
 0x678   :  { %v3459_v38 = vmax.f32 %v3439_v9, 0.0 }
 0x67a   :  { %3475 = vst [vmem:[%s7860_s6 + $0x68] sm:$0xff] %v3459_v38 }
 0x67d   :  { %v3441_v45 = vpop.f32.mrf.mxu0 }
 0x67e   :  { %v3442_v13 = vadd.f32 %v7788_v37, %v3441_v45 }
 0x680   :  { %v3460_v63 = vmax.f32 %v3442_v13, 0.0 }
 0x682   :  { %3476 = vst [vmem:[%s7860_s6 + $0x70] sm:$0xff] %v3460_v63 }
 0x685   :  { %v3443_v55 = vpop.f32.mrf.mxu0 }
 0x686   :  { %v3444_v60 = vadd.f32 %v7788_v37, %v3443_v55 }
 0x688   :  { %v3461_v10 = vmax.f32 %v3444_v60, 0.0 }
 0x68a   :  { %3477 = vst [vmem:[%s7860_s6 + $0x78] sm:$0xff] %v3461_v10 }

</bundles_post_ra>
